<compile_context>
chip_gen: v7x
topology: tpu7x:2x2x1
jax: 0.10.0
libtpu: 0.0.40
codegen_flags: <defaults>
</compile_context>

<pallas_src>
import functools

import jax
import jax.numpy as jnp
from jax.experimental import pallas as pl
from jax.experimental.pallas import tpu as pltpu

_SLACK = 8  # sublane-aligned guard band at the front/back of the padded buffers


def _zero_halo(pad_ref, ws, n):
    """Zero only the halo rows of the padded conv buffer (the interior rows
    [_SLACK+ws, _SLACK+ws+n) are fully overwritten by the caller each step)."""
    c = pad_ref.shape[1]
    top = _SLACK + ws
    pad_ref[0:top, :] = jnp.zeros((top, c), jnp.float32)
    bot_start = top + n
    bot = pad_ref.shape[0] - bot_start
    pad_ref[bot_start:pad_ref.shape[0], :] = jnp.zeros((bot, c), jnp.float32)


def _conv3x3(pad_ref, w_ref, b_ref, hs, ws):
    """3x3 'same' conv on the row-major flattened [hs*ws, Cin] activation that
    is already stored in pad_ref's interior.  Returns f32 [hs*ws, Cout]."""
    n = hs * ws
    cout = w_ref.shape[2]
    # Horizontal-pad masks, hoisted out of the tap loop (no CSE of broadcasts).
    wcoord = jax.lax.broadcasted_iota(jnp.int32, (n, 1), 0) % ws
    not_left = wcoord >= 1          # valid rows when pulling from x-1
    not_right = wcoord <= ws - 2    # valid rows when pulling from x+1
    acc = jnp.zeros((n, cout), jnp.float32)
    for k in range(9):
        dy, dx = divmod(k, 3)
        start = _SLACK + dy * ws + (dx - 1)
        slab = pad_ref[start:start + n, :]
        if dx == 0:
            slab = jnp.where(not_left, slab, 0.0)
        elif dx == 2:
            slab = jnp.where(not_right, slab, 0.0)
        # bf16 MXU operands, f32 accumulation.
        acc = acc + jnp.dot(slab.astype(jnp.bfloat16), w_ref[k],
                            preferred_element_type=jnp.float32)
    return acc + b_ref[...]


def _denoiser_kernel(h, w, x_ref, w1_ref, b1_ref, w2_ref, b2_ref, w3_ref,
                     b3_ref, o_ref, pad1_ref, pad2_ref, pad3_ref, pool_ref):
    cin = x_ref.shape[1]
    c1 = w1_ref.shape[2]
    hh, wh = h // 2, w // 2
    n = h * w          # pixels at full resolution
    m = hh * wh        # pixels at half resolution
    n2 = n // 2        # = hh * w = h * wh

    # ---------------- encoder: conv1 + ReLU -------------------------------
    _zero_halo(pad1_ref, w, n)
    # lane-dense input block (1, cin, h*w) -> pixel-major [h*w, cin] in VMEM.
    pad1_ref[_SLACK + w:_SLACK + w + n, :] = jnp.transpose(x_ref[0], (1, 0))
    a1 = jnp.maximum(_conv3x3(pad1_ref, w1_ref, b1_ref, h, w), 0.0)     # [n, c1]

    # ---------------- encoder: MaxPool2d(2, 2) ----------------------------
    # y-pool: pair image rows via a tile-aligned reshape (w % 8 == 0).
    a1_4 = a1.reshape(hh, 2, w, c1)
    pool_ref[...] = jnp.maximum(a1_4[:, 0], a1_4[:, 1]).reshape(n2, c1)
    # x-pool: adjacent rows of the flattened buffer -> stride-2 sublane reads.
    p1 = jnp.maximum(pool_ref[pl.ds(0, m, 2), :],
                     pool_ref[pl.ds(1, m, 2), :])                       # [m, c1]

    # ---------------- decoder: conv2 + ReLU -------------------------------
    _zero_halo(pad2_ref, wh, m)
    pad2_ref[_SLACK + wh:_SLACK + wh + m, :] = p1
    a2 = jnp.maximum(_conv3x3(pad2_ref, w2_ref, b2_ref, hh, wh), 0.0)   # [m, c1]

    # ---------------- decoder: Upsample(x2, nearest) ----------------------
    _zero_halo(pad3_ref, w, n)
    # y-repeat: duplicate each block of wh rows (tile-aligned, wh % 8 == 0).
    a2_3 = a2.reshape(hh, wh, c1)
    u_y = jnp.concatenate([a2_3[:, None], a2_3[:, None]], axis=1)
    u_y = u_y.reshape(n2, c1)                                           # [n2, c1]
    # x-repeat: two stride-2 sublane stores directly into conv3's interior.
    base = _SLACK + w
    pad3_ref[pl.ds(base, n2, 2), :] = u_y        # even output columns
    pad3_ref[pl.ds(base + 1, n2, 2), :] = u_y    # odd output columns

    # ---------------- decoder: conv3 (no activation) ------------------------
    y = _conv3x3(pad3_ref, w3_ref, b3_ref, h, w)                        # [n, cin]
    # lane-dense output block (1, cin, h*w).
    o_ref[0] = jnp.transpose(y, (1, 0)).astype(o_ref.dtype)


def _to_taps(wgt):
    """[Cout, Cin, 3, 3] (PyTorch layout) -> [9, Cin, Cout]; tap k = dy*3+dx."""
    cout, cin = wgt.shape[0], wgt.shape[1]
    return jnp.transpose(wgt, (2, 3, 1, 0)).reshape(9, cin, cout)


@jax.jit
def denoiser_forward(x, params):
    """x: [B, 3, H, W] float32 (NCHW, as in the PyTorch module)."""
    (w1, b1), (w2, b2), (w3, b3) = params
    bsz, cin, h, w = x.shape
    c1 = w1.shape[0]
    assert h % 2 == 0 and w % 16 == 0, "need even H and W a multiple of 16"
    hw, hwh = h * w, (h // 2) * (w // 2)

    # Lane-dense kernel I/O: (B, 3, H*W) is just a free reshape of NCHW.
    x_flat = x.reshape(bsz, cin, hw)

    # bf16 weights for single-pass MXU; biases stay f32 (added to f32 acc).
    w1t = _to_taps(w1).astype(jnp.bfloat16)
    w2t = _to_taps(w2).astype(jnp.bfloat16)
    w3t = _to_taps(w3).astype(jnp.bfloat16)
    b1r, b2r, b3r = b1.reshape(1, -1), b2.reshape(1, -1), b3.reshape(1, -1)

    flops = 2 * bsz * (9 * hw * cin * c1 + 9 * hwh * c1 * c1 + 9 * hw * c1 * cin)
    bytes_accessed = (4 * 2 * bsz * hw * cin
                      + 2 * 9 * (cin * c1 + c1 * c1 + c1 * cin)
                      + 4 * (2 * c1 + cin))

    out_flat = pl.pallas_call(
        functools.partial(_denoiser_kernel, h, w),
        out_shape=jax.ShapeDtypeStruct((bsz, cin, hw), jnp.float32),
        grid=(bsz,),
        in_specs=[
            # per-image tile: pipelined over the batch grid, lane-dense
            pl.BlockSpec((1, cin, hw), lambda b: (b, 0, 0)),
            # weights / biases: constant index_map -> VMEM resident
            pl.BlockSpec((9, cin, c1), lambda b: (0, 0, 0)),
            pl.BlockSpec((1, c1), lambda b: (0, 0)),
            pl.BlockSpec((9, c1, c1), lambda b: (0, 0, 0)),
            pl.BlockSpec((1, c1), lambda b: (0, 0)),
            pl.BlockSpec((9, c1, cin), lambda b: (0, 0, 0)),
            pl.BlockSpec((1, cin), lambda b: (0, 0)),
        ],
        out_specs=pl.BlockSpec((1, cin, hw), lambda b: (b, 0, 0)),
        scratch_shapes=[
            pltpu.VMEM(((h + 2) * w + 2 * _SLACK, cin), jnp.float32),          # pad1
            pltpu.VMEM(((h // 2 + 2) * (w // 2) + 2 * _SLACK, c1), jnp.float32),  # pad2
            pltpu.VMEM(((h + 2) * w + 2 * _SLACK, c1), jnp.float32),            # pad3
            pltpu.VMEM((hw // 2, c1), jnp.float32),                              # pool
        ],
        compiler_params=pltpu.CompilerParams(
            dimension_semantics=("parallel",),
            vmem_limit_bytes=32 * 1024 * 1024),
        cost_estimate=pl.CostEstimate(flops=flops, transcendentals=0,
                                      bytes_accessed=bytes_accessed),
    )(x_flat, w1t, b1r, w2t, b2r, w3t, b3r)

    return out_flat.reshape(bsz, cin, h, w)


def denoiser_reference(x, params):
    """Pure-JAX (XLA, f32) reference matching the PyTorch forward."""
    (w1, b1), (w2, b2), (w3, b3) = params
    dn = ("NCHW", "OIHW", "NCHW")
    prec = jax.lax.Precision.HIGHEST

    def conv(h, wgt, bias):
        y = jax.lax.conv_general_dilated(h, wgt, (1, 1), "SAME",
                                         dimension_numbers=dn, precision=prec)
        return y + bias[None, :, None, None]

    h = jnp.maximum(conv(x, w1, b1), 0.0)                               # conv1+ReLU
    h = jax.lax.reduce_window(h, -jnp.inf, jax.lax.max,
                              (1, 1, 2, 2), (1, 1, 2, 2), "VALID")      # maxpool
    h = jnp.maximum(conv(h, w2, b2), 0.0)                               # conv2+ReLU
    h = jnp.repeat(jnp.repeat(h, 2, axis=2), 2, axis=3)                 # nearest x2
    return conv(h, w3, b3)                                              # conv3


def init_params(key):
    """Deterministic init mimicking nn.Conv2d (uniform +-1/sqrt(fan_in))."""
    sizes = [(64, 3), (64, 64), (3, 64)]
    params = []
    for cout, cin in sizes:
        key, kw, kb = jax.random.split(key, 3)
        bound = 1.0 / (cin * 9) ** 0.5
        wgt = jax.random.uniform(kw, (cout, cin, 3, 3), jnp.float32,
                                 minval=-bound, maxval=bound)
        bias = jax.random.uniform(kb, (cout,), jnp.float32,
                                  minval=-bound, maxval=bound)
        params.append((wgt, bias))
    return params


if __name__ == "__main__":
    key = jax.random.PRNGKey(0)
    key, kx = jax.random.split(key)

    B, CIN, H, W = 2, 3, 16, 16
    x = jax.random.normal(kx, (B, CIN, H, W), jnp.float32)
    params = init_params(key)

    out = jax.block_until_ready(denoiser_forward(x, params))
    ref = denoiser_reference(x, params)

    assert out.shape == (B, CIN, H, W), out.shape
    max_err = float(jnp.max(jnp.abs(out - ref)))
    # bf16 MXU operands with f32 accumulation vs f32 HIGHEST reference.
    assert jnp.allclose(out, ref, atol=5e-2, rtol=5e-2), \
        f"max abs diff {max_err}"
    print("KERNEL_OK")
</pallas_src>

<mosaic_0001>
module attributes {stable_mosaic.version = 11 : i64} {
  func.func @_denoiser_kernel(%arg0: i32, %arg1: memref<1x3x256xf32, #tpu.memory_space<vmem>>, %arg2: memref<9x3x64xbf16, #tpu.memory_space<vmem>>, %arg3: memref<1x64xf32, #tpu.memory_space<vmem>>, %arg4: memref<9x64x64xbf16, #tpu.memory_space<vmem>>, %arg5: memref<1x64xf32, #tpu.memory_space<vmem>>, %arg6: memref<9x64x3xbf16, #tpu.memory_space<vmem>>, %arg7: memref<1x3xf32, #tpu.memory_space<vmem>>, %arg8: memref<1x3x256xf32, #tpu.memory_space<vmem>>, %arg9: memref<304x3xf32, #tpu.memory_space<vmem>>, %arg10: memref<96x64xf32, #tpu.memory_space<vmem>>, %arg11: memref<304x64xf32, #tpu.memory_space<vmem>>, %arg12: memref<128x64xf32, #tpu.memory_space<vmem>>) attributes {dimension_semantics = [#tpu.dimension_semantics<parallel>], iteration_bounds = array<i64: 2>, scalar_prefetch = 0 : i64, scratch_operands = 4 : i64, tpu.core_type = #tpu.core_type<tc>, window_params = [{transform_indices = @transform_0, window_bounds = array<i64: 1, 3, 256>}, {pipeline_mode = #tpu.pipeline_mode<synchronous>, transform_indices = @transform_1, window_bounds = array<i64: 9, 3, 64>}, {pipeline_mode = #tpu.pipeline_mode<synchronous>, transform_indices = @transform_2, window_bounds = array<i64: 1, 64>}, {pipeline_mode = #tpu.pipeline_mode<synchronous>, transform_indices = @transform_3, window_bounds = array<i64: 9, 64, 64>}, {pipeline_mode = #tpu.pipeline_mode<synchronous>, transform_indices = @transform_4, window_bounds = array<i64: 1, 64>}, {pipeline_mode = #tpu.pipeline_mode<synchronous>, transform_indices = @transform_5, window_bounds = array<i64: 9, 64, 3>}, {pipeline_mode = #tpu.pipeline_mode<synchronous>, transform_indices = @transform_6, window_bounds = array<i64: 1, 3>}, {transform_indices = @transform_7, window_bounds = array<i64: 1, 3, 256>}]} {
    %cst = arith.constant 0.000000e+00 : f32
    %0 = vector.broadcast %cst : f32 to vector<24x3xf32>
    %c0 = arith.constant 0 : index
    %c0_0 = arith.constant 0 : index
    %1 = vector.load %arg9[%c0, %c0_0] : memref<304x3xf32, #tpu.memory_space<vmem>>, vector<24x3xf32>
    tpu.vector_store %arg9[%c0, %c0_0], %0 {strides = array<i32>} : memref<304x3xf32, #tpu.memory_space<vmem>>, vector<24x3xf32>,
    %cst_1 = arith.constant 0.000000e+00 : f32
    %2 = vector.broadcast %cst_1 : f32 to vector<24x3xf32>
    %c280 = arith.constant 280 : index
    %c0_2 = arith.constant 0 : index
    %3 = vector.load %arg9[%c280, %c0_2] : memref<304x3xf32, #tpu.memory_space<vmem>>, vector<24x3xf32>
    tpu.vector_store %arg9[%c280, %c0_2], %2 {strides = array<i32>} : memref<304x3xf32, #tpu.memory_space<vmem>>, vector<24x3xf32>,
    %c0_3 = arith.constant 0 : index
    %c0_4 = arith.constant 0 : index
    %c0_5 = arith.constant 0 : index
    %4 = vector.load %arg1[%c0_3, %c0_4, %c0_5] : memref<1x3x256xf32, #tpu.memory_space<vmem>>, vector<1x3x256xf32>
    %5 = vector.shape_cast %4 : vector<1x3x256xf32> to vector<3x256xf32>
    %6 = tpu.transpose %5, [1, 0] : vector<3x256xf32> -> vector<256x3xf32>
    %c24 = arith.constant 24 : index
    %c0_6 = arith.constant 0 : index
    %7 = vector.load %arg9[%c24, %c0_6] : memref<304x3xf32, #tpu.memory_space<vmem>>, vector<256x3xf32>
    tpu.vector_store %arg9[%c24, %c0_6], %6 {strides = array<i32>} : memref<304x3xf32, #tpu.memory_space<vmem>>, vector<256x3xf32>,
    %8 = tpu.iota {dimensions = array<i32: 0>} : vector<256x1xi32>
    %c16_i32 = arith.constant 16 : i32
    %c0_i32 = arith.constant 0 : i32
    %9 = arith.cmpi eq, %c16_i32, %c0_i32 : i32
    %c1_i32 = arith.constant 1 : i32
    %10 = arith.select %9, %c1_i32, %c16_i32 : i32
    %11 = vector.broadcast %10 : i32 to vector<256x1xi32>
    %12 = arith.remsi %8, %11 : vector<256x1xi32>
    %c0_i32_7 = arith.constant 0 : i32
    %13 = vector.broadcast %c0_i32_7 : i32 to vector<256x1xi32>
    %14 = arith.cmpi ne, %12, %13 : vector<256x1xi32>
    %c0_i32_8 = arith.constant 0 : i32
    %15 = vector.broadcast %c0_i32_8 : i32 to vector<256x1xi32>
    %16 = arith.cmpi slt, %12, %15 : vector<256x1xi32>
    %c0_i32_9 = arith.constant 0 : i32
    %17 = arith.cmpi slt, %10, %c0_i32_9 : i32
    %18 = vector.broadcast %17 : i1 to vector<256x1xi1>
    %19 = vector.broadcast %18 : vector<256x1xi1> to vector<256x1xi1>
    %20 = arith.xori %16, %19 : vector<256x1xi1>
    %21 = arith.andi %20, %14 : vector<256x1xi1>
    %22 = vector.broadcast %10 : i32 to vector<256x1xi32>
    %23 = arith.addi %12, %22 : vector<256x1xi32>
    %24 = arith.select %21, %23, %12 : vector<256x1xi1>, vector<256x1xi32>
    %c1_i32_10 = arith.constant 1 : i32
    %25 = vector.broadcast %c1_i32_10 : i32 to vector<256x1xi32>
    %26 = arith.cmpi sge, %24, %25 : vector<256x1xi32>
    %c14_i32 = arith.constant 14 : i32
    %27 = vector.broadcast %c14_i32 : i32 to vector<256x1xi32>
    %28 = arith.cmpi sle, %24, %27 : vector<256x1xi32>
    %cst_11 = arith.constant 0.000000e+00 : f32
    %29 = vector.broadcast %cst_11 : f32 to vector<256x64xf32>
    %c7 = arith.constant 7 : index
    %c0_12 = arith.constant 0 : index
    %30 = vector.load %arg9[%c7, %c0_12] : memref<304x3xf32, #tpu.memory_space<vmem>>, vector<256x3xf32>
    %cst_13 = arith.constant 0.000000e+00 : f32
    %31 = vector.shape_cast %26 : vector<256x1xi1> to vector<256x1xi1>
    %32 = vector.broadcast %31 : vector<256x1xi1> to vector<256x3xi1>
    %33 = vector.broadcast %cst_13 : f32 to vector<256x3xf32>
    %34 = arith.select %32, %30, %33 : vector<256x3xi1>, vector<256x3xf32>
    %35 = arith.truncf %34 : vector<256x3xf32> to vector<256x3xbf16>
    %c0_14 = arith.constant 0 : index
    %c0_15 = arith.constant 0 : index
    %c0_16 = arith.constant 0 : index
    %36 = vector.load %arg2[%c0_14, %c0_15, %c0_16] : memref<9x3x64xbf16, #tpu.memory_space<vmem>>, vector<1x3x64xbf16>
    %37 = vector.shape_cast %36 : vector<1x3x64xbf16> to vector<3x64xbf16>
    %cst_17 = arith.constant dense<0.000000e+00> : vector<256x64xf32>
    %38 = tpu.matmul %35, %37, %cst_17 {dimension_numbers = #tpu.dot_dimension_numbers<[1], [0], [0], [1], [0, 0, 1, 1], [], []>} : vector<256x3xbf16>, vector<3x64xbf16>, vector<256x64xf32> -> vector<256x64xf32>
    %39 = arith.addf %29, %38 : vector<256x64xf32>
    %c8 = arith.constant 8 : index
    %c0_18 = arith.constant 0 : index
    %40 = vector.load %arg9[%c8, %c0_18] : memref<304x3xf32, #tpu.memory_space<vmem>>, vector<256x3xf32>
    %41 = arith.truncf %40 : vector<256x3xf32> to vector<256x3xbf16>
    %c1 = arith.constant 1 : index
    %c0_19 = arith.constant 0 : index
    %c0_20 = arith.constant 0 : index
    %42 = vector.load %arg2[%c1, %c0_19, %c0_20] : memref<9x3x64xbf16, #tpu.memory_space<vmem>>, vector<1x3x64xbf16>
    %43 = vector.shape_cast %42 : vector<1x3x64xbf16> to vector<3x64xbf16>
    %cst_21 = arith.constant dense<0.000000e+00> : vector<256x64xf32>
    %44 = tpu.matmul %41, %43, %cst_21 {dimension_numbers = #tpu.dot_dimension_numbers<[1], [0], [0], [1], [0, 0, 1, 1], [], []>} : vector<256x3xbf16>, vector<3x64xbf16>, vector<256x64xf32> -> vector<256x64xf32>
    %45 = arith.addf %39, %44 : vector<256x64xf32>
    %c9 = arith.constant 9 : index
    %c0_22 = arith.constant 0 : index
    %46 = vector.load %arg9[%c9, %c0_22] : memref<304x3xf32, #tpu.memory_space<vmem>>, vector<256x3xf32>
    %cst_23 = arith.constant 0.000000e+00 : f32
    %47 = vector.shape_cast %28 : vector<256x1xi1> to vector<256x1xi1>
    %48 = vector.broadcast %47 : vector<256x1xi1> to vector<256x3xi1>
    %49 = vector.broadcast %cst_23 : f32 to vector<256x3xf32>
    %50 = arith.select %48, %46, %49 : vector<256x3xi1>, vector<256x3xf32>
    %51 = arith.truncf %50 : vector<256x3xf32> to vector<256x3xbf16>
    %c2 = arith.constant 2 : index
    %c0_24 = arith.constant 0 : index
    %c0_25 = arith.constant 0 : index
    %52 = vector.load %arg2[%c2, %c0_24, %c0_25] : memref<9x3x64xbf16, #tpu.memory_space<vmem>>, vector<1x3x64xbf16>
    %53 = vector.shape_cast %52 : vector<1x3x64xbf16> to vector<3x64xbf16>
    %cst_26 = arith.constant dense<0.000000e+00> : vector<256x64xf32>
    %54 = tpu.matmul %51, %53, %cst_26 {dimension_numbers = #tpu.dot_dimension_numbers<[1], [0], [0], [1], [0, 0, 1, 1], [], []>} : vector<256x3xbf16>, vector<3x64xbf16>, vector<256x64xf32> -> vector<256x64xf32>
    %55 = arith.addf %45, %54 : vector<256x64xf32>
    %c23 = arith.constant 23 : index
    %c0_27 = arith.constant 0 : index
    %56 = vector.load %arg9[%c23, %c0_27] : memref<304x3xf32, #tpu.memory_space<vmem>>, vector<256x3xf32>
    %cst_28 = arith.constant 0.000000e+00 : f32
    %57 = vector.shape_cast %26 : vector<256x1xi1> to vector<256x1xi1>
    %58 = vector.broadcast %57 : vector<256x1xi1> to vector<256x3xi1>
    %59 = vector.broadcast %cst_28 : f32 to vector<256x3xf32>
    %60 = arith.select %58, %56, %59 : vector<256x3xi1>, vector<256x3xf32>
    %61 = arith.truncf %60 : vector<256x3xf32> to vector<256x3xbf16>
    %c3 = arith.constant 3 : index
    %c0_29 = arith.constant 0 : index
    %c0_30 = arith.constant 0 : index
    %62 = vector.load %arg2[%c3, %c0_29, %c0_30] : memref<9x3x64xbf16, #tpu.memory_space<vmem>>, vector<1x3x64xbf16>
    %63 = vector.shape_cast %62 : vector<1x3x64xbf16> to vector<3x64xbf16>
    %cst_31 = arith.constant dense<0.000000e+00> : vector<256x64xf32>
    %64 = tpu.matmul %61, %63, %cst_31 {dimension_numbers = #tpu.dot_dimension_numbers<[1], [0], [0], [1], [0, 0, 1, 1], [], []>} : vector<256x3xbf16>, vector<3x64xbf16>, vector<256x64xf32> -> vector<256x64xf32>
    %65 = arith.addf %55, %64 : vector<256x64xf32>
    %c24_32 = arith.constant 24 : index
    %c0_33 = arith.constant 0 : index
    %66 = vector.load %arg9[%c24_32, %c0_33] : memref<304x3xf32, #tpu.memory_space<vmem>>, vector<256x3xf32>
    %67 = arith.truncf %66 : vector<256x3xf32> to vector<256x3xbf16>
    %c4 = arith.constant 4 : index
    %c0_34 = arith.constant 0 : index
    %c0_35 = arith.constant 0 : index
    %68 = vector.load %arg2[%c4, %c0_34, %c0_35] : memref<9x3x64xbf16, #tpu.memory_space<vmem>>, vector<1x3x64xbf16>
    %69 = vector.shape_cast %68 : vector<1x3x64xbf16> to vector<3x64xbf16>
    %cst_36 = arith.constant dense<0.000000e+00> : vector<256x64xf32>
    %70 = tpu.matmul %67, %69, %cst_36 {dimension_numbers = #tpu.dot_dimension_numbers<[1], [0], [0], [1], [0, 0, 1, 1], [], []>} : vector<256x3xbf16>, vector<3x64xbf16>, vector<256x64xf32> -> vector<256x64xf32>
    %71 = arith.addf %65, %70 : vector<256x64xf32>
    %c25 = arith.constant 25 : index
    %c0_37 = arith.constant 0 : index
    %72 = vector.load %arg9[%c25, %c0_37] : memref<304x3xf32, #tpu.memory_space<vmem>>, vector<256x3xf32>
    %cst_38 = arith.constant 0.000000e+00 : f32
    %73 = vector.shape_cast %28 : vector<256x1xi1> to vector<256x1xi1>
    %74 = vector.broadcast %73 : vector<256x1xi1> to vector<256x3xi1>
    %75 = vector.broadcast %cst_38 : f32 to vector<256x3xf32>
    %76 = arith.select %74, %72, %75 : vector<256x3xi1>, vector<256x3xf32>
    %77 = arith.truncf %76 : vector<256x3xf32> to vector<256x3xbf16>
    %c5 = arith.constant 5 : index
    %c0_39 = arith.constant 0 : index
    %c0_40 = arith.constant 0 : index
    %78 = vector.load %arg2[%c5, %c0_39, %c0_40] : memref<9x3x64xbf16, #tpu.memory_space<vmem>>, vector<1x3x64xbf16>
    %79 = vector.shape_cast %78 : vector<1x3x64xbf16> to vector<3x64xbf16>
    %cst_41 = arith.constant dense<0.000000e+00> : vector<256x64xf32>
    %80 = tpu.matmul %77, %79, %cst_41 {dimension_numbers = #tpu.dot_dimension_numbers<[1], [0], [0], [1], [0, 0, 1, 1], [], []>} : vector<256x3xbf16>, vector<3x64xbf16>, vector<256x64xf32> -> vector<256x64xf32>
    %81 = arith.addf %71, %80 : vector<256x64xf32>
    %c39 = arith.constant 39 : index
    %c0_42 = arith.constant 0 : index
    %82 = vector.load %arg9[%c39, %c0_42] : memref<304x3xf32, #tpu.memory_space<vmem>>, vector<256x3xf32>
    %cst_43 = arith.constant 0.000000e+00 : f32
    %83 = vector.shape_cast %26 : vector<256x1xi1> to vector<256x1xi1>
    %84 = vector.broadcast %83 : vector<256x1xi1> to vector<256x3xi1>
    %85 = vector.broadcast %cst_43 : f32 to vector<256x3xf32>
    %86 = arith.select %84, %82, %85 : vector<256x3xi1>, vector<256x3xf32>
    %87 = arith.truncf %86 : vector<256x3xf32> to vector<256x3xbf16>
    %c6 = arith.constant 6 : index
    %c0_44 = arith.constant 0 : index
    %c0_45 = arith.constant 0 : index
    %88 = vector.load %arg2[%c6, %c0_44, %c0_45] : memref<9x3x64xbf16, #tpu.memory_space<vmem>>, vector<1x3x64xbf16>
    %89 = vector.shape_cast %88 : vector<1x3x64xbf16> to vector<3x64xbf16>
    %cst_46 = arith.constant dense<0.000000e+00> : vector<256x64xf32>
    %90 = tpu.matmul %87, %89, %cst_46 {dimension_numbers = #tpu.dot_dimension_numbers<[1], [0], [0], [1], [0, 0, 1, 1], [], []>} : vector<256x3xbf16>, vector<3x64xbf16>, vector<256x64xf32> -> vector<256x64xf32>
    %91 = arith.addf %81, %90 : vector<256x64xf32>
    %c40 = arith.constant 40 : index
    %c0_47 = arith.constant 0 : index
    %92 = vector.load %arg9[%c40, %c0_47] : memref<304x3xf32, #tpu.memory_space<vmem>>, vector<256x3xf32>
    %93 = arith.truncf %92 : vector<256x3xf32> to vector<256x3xbf16>
    %c7_48 = arith.constant 7 : index
    %c0_49 = arith.constant 0 : index
    %c0_50 = arith.constant 0 : index
    %94 = vector.load %arg2[%c7_48, %c0_49, %c0_50] : memref<9x3x64xbf16, #tpu.memory_space<vmem>>, vector<1x3x64xbf16>
    %95 = vector.shape_cast %94 : vector<1x3x64xbf16> to vector<3x64xbf16>
    %cst_51 = arith.constant dense<0.000000e+00> : vector<256x64xf32>
    %96 = tpu.matmul %93, %95, %cst_51 {dimension_numbers = #tpu.dot_dimension_numbers<[1], [0], [0], [1], [0, 0, 1, 1], [], []>} : vector<256x3xbf16>, vector<3x64xbf16>, vector<256x64xf32> -> vector<256x64xf32>
    %97 = arith.addf %91, %96 : vector<256x64xf32>
    %c41 = arith.constant 41 : index
    %c0_52 = arith.constant 0 : index
    %98 = vector.load %arg9[%c41, %c0_52] : memref<304x3xf32, #tpu.memory_space<vmem>>, vector<256x3xf32>
    %cst_53 = arith.constant 0.000000e+00 : f32
    %99 = vector.shape_cast %28 : vector<256x1xi1> to vector<256x1xi1>
    %100 = vector.broadcast %99 : vector<256x1xi1> to vector<256x3xi1>
    %101 = vector.broadcast %cst_53 : f32 to vector<256x3xf32>
    %102 = arith.select %100, %98, %101 : vector<256x3xi1>, vector<256x3xf32>
    %103 = arith.truncf %102 : vector<256x3xf32> to vector<256x3xbf16>
    %c8_54 = arith.constant 8 : index
    %c0_55 = arith.constant 0 : index
    %c0_56 = arith.constant 0 : index
    %104 = vector.load %arg2[%c8_54, %c0_55, %c0_56] : memref<9x3x64xbf16, #tpu.memory_space<vmem>>, vector<1x3x64xbf16>
    %105 = vector.shape_cast %104 : vector<1x3x64xbf16> to vector<3x64xbf16>
    %cst_57 = arith.constant dense<0.000000e+00> : vector<256x64xf32>
    %106 = tpu.matmul %103, %105, %cst_57 {dimension_numbers = #tpu.dot_dimension_numbers<[1], [0], [0], [1], [0, 0, 1, 1], [], []>} : vector<256x3xbf16>, vector<3x64xbf16>, vector<256x64xf32> -> vector<256x64xf32>
    %107 = arith.addf %97, %106 : vector<256x64xf32>
    %c0_58 = arith.constant 0 : index
    %c0_59 = arith.constant 0 : index
    %108 = vector.load %arg3[%c0_58, %c0_59] : memref<1x64xf32, #tpu.memory_space<vmem>>, vector<1x64xf32>
    %109 = vector.broadcast %108 : vector<1x64xf32> to vector<256x64xf32>
    %110 = arith.addf %107, %109 : vector<256x64xf32>
    %cst_60 = arith.constant 0.000000e+00 : f32
    %111 = vector.broadcast %cst_60 : f32 to vector<256x64xf32>
    %112 = arith.maximumf %110, %111 : vector<256x64xf32>
    %113 = vector.shape_cast %112 : vector<256x64xf32> to vector<8x2x16x64xf32>
    %114 = vector.extract_strided_slice %113 {offsets = [0, 0, 0, 0], sizes = [8, 1, 16, 64], strides = [1, 1, 1, 1]} : vector<8x2x16x64xf32> to vector<8x1x16x64xf32>
    %115 = vector.shape_cast %114 : vector<8x1x16x64xf32> to vector<8x16x64xf32>
    %116 = vector.extract_strided_slice %113 {offsets = [0, 1, 0, 0], sizes = [8, 1, 16, 64], strides = [1, 1, 1, 1]} : vector<8x2x16x64xf32> to vector<8x1x16x64xf32>
    %117 = vector.shape_cast %116 : vector<8x1x16x64xf32> to vector<8x16x64xf32>
    %118 = arith.maximumf %115, %117 : vector<8x16x64xf32>
    %119 = vector.shape_cast %118 : vector<8x16x64xf32> to vector<128x64xf32>
    %c0_61 = arith.constant 0 : index
    %c0_62 = arith.constant 0 : index
    %120 = vector.load %arg12[%c0_61, %c0_62] : memref<128x64xf32, #tpu.memory_space<vmem>>, vector<128x64xf32>
    tpu.vector_store %arg12[%c0_61, %c0_62], %119 {strides = array<i32>} : memref<128x64xf32, #tpu.memory_space<vmem>>, vector<128x64xf32>,
    %c0_63 = arith.constant 0 : index
    %c0_64 = arith.constant 0 : index
    %121 = tpu.strided_load %arg12[%c0_63, %c0_64] {strides = array<i32: 2, 1>} : memref<128x64xf32, #tpu.memory_space<vmem>>, vector<64x64xf32>
    %c1_65 = arith.constant 1 : index
    %c0_66 = arith.constant 0 : index
    %122 = tpu.strided_load %arg12[%c1_65, %c0_66] {strides = array<i32: 2, 1>} : memref<128x64xf32, #tpu.memory_space<vmem>>, vector<64x64xf32>
    %123 = arith.maximumf %121, %122 : vector<64x64xf32>
    %cst_67 = arith.constant 0.000000e+00 : f32
    %124 = vector.broadcast %cst_67 : f32 to vector<16x64xf32>
    %c0_68 = arith.constant 0 : index
    %c0_69 = arith.constant 0 : index
    %125 = vector.load %arg10[%c0_68, %c0_69] : memref<96x64xf32, #tpu.memory_space<vmem>>, vector<16x64xf32>
    tpu.vector_store %arg10[%c0_68, %c0_69], %124 {strides = array<i32>} : memref<96x64xf32, #tpu.memory_space<vmem>>, vector<16x64xf32>,
    %cst_70 = arith.constant 0.000000e+00 : f32
    %126 = vector.broadcast %cst_70 : f32 to vector<16x64xf32>
    %c80 = arith.constant 80 : index
    %c0_71 = arith.constant 0 : index
    %127 = vector.load %arg10[%c80, %c0_71] : memref<96x64xf32, #tpu.memory_space<vmem>>, vector<16x64xf32>
    tpu.vector_store %arg10[%c80, %c0_71], %126 {strides = array<i32>} : memref<96x64xf32, #tpu.memory_space<vmem>>, vector<16x64xf32>,
    %c16 = arith.constant 16 : index
    %c0_72 = arith.constant 0 : index
    %128 = vector.load %arg10[%c16, %c0_72] : memref<96x64xf32, #tpu.memory_space<vmem>>, vector<64x64xf32>
    tpu.vector_store %arg10[%c16, %c0_72], %123 {strides = array<i32>} : memref<96x64xf32, #tpu.memory_space<vmem>>, vector<64x64xf32>,
    %129 = tpu.iota {dimensions = array<i32: 0>} : vector<64x1xi32>
    %c8_i32 = arith.constant 8 : i32
    %c0_i32_73 = arith.constant 0 : i32
    %130 = arith.cmpi eq, %c8_i32, %c0_i32_73 : i32
    %c1_i32_74 = arith.constant 1 : i32
    %131 = arith.select %130, %c1_i32_74, %c8_i32 : i32
    %132 = vector.broadcast %131 : i32 to vector<64x1xi32>
    %133 = arith.remsi %129, %132 : vector<64x1xi32>
    %c0_i32_75 = arith.constant 0 : i32
    %134 = vector.broadcast %c0_i32_75 : i32 to vector<64x1xi32>
    %135 = arith.cmpi ne, %133, %134 : vector<64x1xi32>
    %c0_i32_76 = arith.constant 0 : i32
    %136 = vector.broadcast %c0_i32_76 : i32 to vector<64x1xi32>
    %137 = arith.cmpi slt, %133, %136 : vector<64x1xi32>
    %c0_i32_77 = arith.constant 0 : i32
    %138 = arith.cmpi slt, %131, %c0_i32_77 : i32
    %139 = vector.broadcast %138 : i1 to vector<64x1xi1>
    %140 = vector.broadcast %139 : vector<64x1xi1> to vector<64x1xi1>
    %141 = arith.xori %137, %140 : vector<64x1xi1>
    %142 = arith.andi %141, %135 : vector<64x1xi1>
    %143 = vector.broadcast %131 : i32 to vector<64x1xi32>
    %144 = arith.addi %133, %143 : vector<64x1xi32>
    %145 = arith.select %142, %144, %133 : vector<64x1xi1>, vector<64x1xi32>
    %c1_i32_78 = arith.constant 1 : i32
    %146 = vector.broadcast %c1_i32_78 : i32 to vector<64x1xi32>
    %147 = arith.cmpi sge, %145, %146 : vector<64x1xi32>
    %c6_i32 = arith.constant 6 : i32
    %148 = vector.broadcast %c6_i32 : i32 to vector<64x1xi32>
    %149 = arith.cmpi sle, %145, %148 : vector<64x1xi32>
    %cst_79 = arith.constant 0.000000e+00 : f32
    %150 = vector.broadcast %cst_79 : f32 to vector<64x64xf32>
    %c7_80 = arith.constant 7 : index
    %c0_81 = arith.constant 0 : index
    %151 = vector.load %arg10[%c7_80, %c0_81] : memref<96x64xf32, #tpu.memory_space<vmem>>, vector<64x64xf32>
    %cst_82 = arith.constant 0.000000e+00 : f32
    %152 = vector.shape_cast %147 : vector<64x1xi1> to vector<64x1xi1>
    %153 = vector.broadcast %152 : vector<64x1xi1> to vector<64x64xi1>
    %154 = vector.broadcast %cst_82 : f32 to vector<64x64xf32>
    %155 = arith.select %153, %151, %154 : vector<64x64xi1>, vector<64x64xf32>
    %156 = arith.truncf %155 : vector<64x64xf32> to vector<64x64xbf16>
    %c0_83 = arith.constant 0 : index
    %c0_84 = arith.constant 0 : index
    %c0_85 = arith.constant 0 : index
    %157 = vector.load %arg4[%c0_83, %c0_84, %c0_85] : memref<9x64x64xbf16, #tpu.memory_space<vmem>>, vector<1x64x64xbf16>
    %158 = vector.shape_cast %157 : vector<1x64x64xbf16> to vector<64x64xbf16>
    %cst_86 = arith.constant dense<0.000000e+00> : vector<64x64xf32>
    %159 = tpu.matmul %156, %158, %cst_86 {dimension_numbers = #tpu.dot_dimension_numbers<[1], [0], [0], [1], [0, 0, 1, 1], [], []>} : vector<64x64xbf16>, vector<64x64xbf16>, vector<64x64xf32> -> vector<64x64xf32>
    %160 = arith.addf %150, %159 : vector<64x64xf32>
    %c8_87 = arith.constant 8 : index
    %c0_88 = arith.constant 0 : index
    %161 = vector.load %arg10[%c8_87, %c0_88] : memref<96x64xf32, #tpu.memory_space<vmem>>, vector<64x64xf32>
    %162 = arith.truncf %161 : vector<64x64xf32> to vector<64x64xbf16>
    %c1_89 = arith.constant 1 : index
    %c0_90 = arith.constant 0 : index
    %c0_91 = arith.constant 0 : index
    %163 = vector.load %arg4[%c1_89, %c0_90, %c0_91] : memref<9x64x64xbf16, #tpu.memory_space<vmem>>, vector<1x64x64xbf16>
    %164 = vector.shape_cast %163 : vector<1x64x64xbf16> to vector<64x64xbf16>
    %cst_92 = arith.constant dense<0.000000e+00> : vector<64x64xf32>
    %165 = tpu.matmul %162, %164, %cst_92 {dimension_numbers = #tpu.dot_dimension_numbers<[1], [0], [0], [1], [0, 0, 1, 1], [], []>} : vector<64x64xbf16>, vector<64x64xbf16>, vector<64x64xf32> -> vector<64x64xf32>
    %166 = arith.addf %160, %165 : vector<64x64xf32>
    %c9_93 = arith.constant 9 : index
    %c0_94 = arith.constant 0 : index
    %167 = vector.load %arg10[%c9_93, %c0_94] : memref<96x64xf32, #tpu.memory_space<vmem>>, vector<64x64xf32>
    %cst_95 = arith.constant 0.000000e+00 : f32
    %168 = vector.shape_cast %149 : vector<64x1xi1> to vector<64x1xi1>
    %169 = vector.broadcast %168 : vector<64x1xi1> to vector<64x64xi1>
    %170 = vector.broadcast %cst_95 : f32 to vector<64x64xf32>
    %171 = arith.select %169, %167, %170 : vector<64x64xi1>, vector<64x64xf32>
    %172 = arith.truncf %171 : vector<64x64xf32> to vector<64x64xbf16>
    %c2_96 = arith.constant 2 : index
    %c0_97 = arith.constant 0 : index
    %c0_98 = arith.constant 0 : index
    %173 = vector.load %arg4[%c2_96, %c0_97, %c0_98] : memref<9x64x64xbf16, #tpu.memory_space<vmem>>, vector<1x64x64xbf16>
    %174 = vector.shape_cast %173 : vector<1x64x64xbf16> to vector<64x64xbf16>
    %cst_99 = arith.constant dense<0.000000e+00> : vector<64x64xf32>
    %175 = tpu.matmul %172, %174, %cst_99 {dimension_numbers = #tpu.dot_dimension_numbers<[1], [0], [0], [1], [0, 0, 1, 1], [], []>} : vector<64x64xbf16>, vector<64x64xbf16>, vector<64x64xf32> -> vector<64x64xf32>
    %176 = arith.addf %166, %175 : vector<64x64xf32>
    %c15 = arith.constant 15 : index
    %c0_100 = arith.constant 0 : index
    %177 = vector.load %arg10[%c15, %c0_100] : memref<96x64xf32, #tpu.memory_space<vmem>>, vector<64x64xf32>
    %cst_101 = arith.constant 0.000000e+00 : f32
    %178 = vector.shape_cast %147 : vector<64x1xi1> to vector<64x1xi1>
    %179 = vector.broadcast %178 : vector<64x1xi1> to vector<64x64xi1>
    %180 = vector.broadcast %cst_101 : f32 to vector<64x64xf32>
    %181 = arith.select %179, %177, %180 : vector<64x64xi1>, vector<64x64xf32>
    %182 = arith.truncf %181 : vector<64x64xf32> to vector<64x64xbf16>
    %c3_102 = arith.constant 3 : index
    %c0_103 = arith.constant 0 : index
    %c0_104 = arith.constant 0 : index
    %183 = vector.load %arg4[%c3_102, %c0_103, %c0_104] : memref<9x64x64xbf16, #tpu.memory_space<vmem>>, vector<1x64x64xbf16>
    %184 = vector.shape_cast %183 : vector<1x64x64xbf16> to vector<64x64xbf16>
    %cst_105 = arith.constant dense<0.000000e+00> : vector<64x64xf32>
    %185 = tpu.matmul %182, %184, %cst_105 {dimension_numbers = #tpu.dot_dimension_numbers<[1], [0], [0], [1], [0, 0, 1, 1], [], []>} : vector<64x64xbf16>, vector<64x64xbf16>, vector<64x64xf32> -> vector<64x64xf32>
    %186 = arith.addf %176, %185 : vector<64x64xf32>
    %c16_106 = arith.constant 16 : index
    %c0_107 = arith.constant 0 : index
    %187 = vector.load %arg10[%c16_106, %c0_107] : memref<96x64xf32, #tpu.memory_space<vmem>>, vector<64x64xf32>
    %188 = arith.truncf %187 : vector<64x64xf32> to vector<64x64xbf16>
    %c4_108 = arith.constant 4 : index
    %c0_109 = arith.constant 0 : index
    %c0_110 = arith.constant 0 : index
    %189 = vector.load %arg4[%c4_108, %c0_109, %c0_110] : memref<9x64x64xbf16, #tpu.memory_space<vmem>>, vector<1x64x64xbf16>
    %190 = vector.shape_cast %189 : vector<1x64x64xbf16> to vector<64x64xbf16>
    %cst_111 = arith.constant dense<0.000000e+00> : vector<64x64xf32>
    %191 = tpu.matmul %188, %190, %cst_111 {dimension_numbers = #tpu.dot_dimension_numbers<[1], [0], [0], [1], [0, 0, 1, 1], [], []>} : vector<64x64xbf16>, vector<64x64xbf16>, vector<64x64xf32> -> vector<64x64xf32>
    %192 = arith.addf %186, %191 : vector<64x64xf32>
    %c17 = arith.constant 17 : index
    %c0_112 = arith.constant 0 : index
    %193 = vector.load %arg10[%c17, %c0_112] : memref<96x64xf32, #tpu.memory_space<vmem>>, vector<64x64xf32>
    %cst_113 = arith.constant 0.000000e+00 : f32
    %194 = vector.shape_cast %149 : vector<64x1xi1> to vector<64x1xi1>
    %195 = vector.broadcast %194 : vector<64x1xi1> to vector<64x64xi1>
    %196 = vector.broadcast %cst_113 : f32 to vector<64x64xf32>
    %197 = arith.select %195, %193, %196 : vector<64x64xi1>, vector<64x64xf32>
    %198 = arith.truncf %197 : vector<64x64xf32> to vector<64x64xbf16>
    %c5_114 = arith.constant 5 : index
    %c0_115 = arith.constant 0 : index
    %c0_116 = arith.constant 0 : index
    %199 = vector.load %arg4[%c5_114, %c0_115, %c0_116] : memref<9x64x64xbf16, #tpu.memory_space<vmem>>, vector<1x64x64xbf16>
    %200 = vector.shape_cast %199 : vector<1x64x64xbf16> to vector<64x64xbf16>
    %cst_117 = arith.constant dense<0.000000e+00> : vector<64x64xf32>
    %201 = tpu.matmul %198, %200, %cst_117 {dimension_numbers = #tpu.dot_dimension_numbers<[1], [0], [0], [1], [0, 0, 1, 1], [], []>} : vector<64x64xbf16>, vector<64x64xbf16>, vector<64x64xf32> -> vector<64x64xf32>
    %202 = arith.addf %192, %201 : vector<64x64xf32>
    %c23_118 = arith.constant 23 : index
    %c0_119 = arith.constant 0 : index
    %203 = vector.load %arg10[%c23_118, %c0_119] : memref<96x64xf32, #tpu.memory_space<vmem>>, vector<64x64xf32>
    %cst_120 = arith.constant 0.000000e+00 : f32
    %204 = vector.shape_cast %147 : vector<64x1xi1> to vector<64x1xi1>
    %205 = vector.broadcast %204 : vector<64x1xi1> to vector<64x64xi1>
    %206 = vector.broadcast %cst_120 : f32 to vector<64x64xf32>
    %207 = arith.select %205, %203, %206 : vector<64x64xi1>, vector<64x64xf32>
    %208 = arith.truncf %207 : vector<64x64xf32> to vector<64x64xbf16>
    %c6_121 = arith.constant 6 : index
    %c0_122 = arith.constant 0 : index
    %c0_123 = arith.constant 0 : index
    %209 = vector.load %arg4[%c6_121, %c0_122, %c0_123] : memref<9x64x64xbf16, #tpu.memory_space<vmem>>, vector<1x64x64xbf16>
    %210 = vector.shape_cast %209 : vector<1x64x64xbf16> to vector<64x64xbf16>
    %cst_124 = arith.constant dense<0.000000e+00> : vector<64x64xf32>
    %211 = tpu.matmul %208, %210, %cst_124 {dimension_numbers = #tpu.dot_dimension_numbers<[1], [0], [0], [1], [0, 0, 1, 1], [], []>} : vector<64x64xbf16>, vector<64x64xbf16>, vector<64x64xf32> -> vector<64x64xf32>
    %212 = arith.addf %202, %211 : vector<64x64xf32>
    %c24_125 = arith.constant 24 : index
    %c0_126 = arith.constant 0 : index
    %213 = vector.load %arg10[%c24_125, %c0_126] : memref<96x64xf32, #tpu.memory_space<vmem>>, vector<64x64xf32>
    %214 = arith.truncf %213 : vector<64x64xf32> to vector<64x64xbf16>
    %c7_127 = arith.constant 7 : index
    %c0_128 = arith.constant 0 : index
    %c0_129 = arith.constant 0 : index
    %215 = vector.load %arg4[%c7_127, %c0_128, %c0_129] : memref<9x64x64xbf16, #tpu.memory_space<vmem>>, vector<1x64x64xbf16>
    %216 = vector.shape_cast %215 : vector<1x64x64xbf16> to vector<64x64xbf16>
    %cst_130 = arith.constant dense<0.000000e+00> : vector<64x64xf32>
    %217 = tpu.matmul %214, %216, %cst_130 {dimension_numbers = #tpu.dot_dimension_numbers<[1], [0], [0], [1], [0, 0, 1, 1], [], []>} : vector<64x64xbf16>, vector<64x64xbf16>, vector<64x64xf32> -> vector<64x64xf32>
    %218 = arith.addf %212, %217 : vector<64x64xf32>
    %c25_131 = arith.constant 25 : index
    %c0_132 = arith.constant 0 : index
    %219 = vector.load %arg10[%c25_131, %c0_132] : memref<96x64xf32, #tpu.memory_space<vmem>>, vector<64x64xf32>
    %cst_133 = arith.constant 0.000000e+00 : f32
    %220 = vector.shape_cast %149 : vector<64x1xi1> to vector<64x1xi1>
    %221 = vector.broadcast %220 : vector<64x1xi1> to vector<64x64xi1>
    %222 = vector.broadcast %cst_133 : f32 to vector<64x64xf32>
    %223 = arith.select %221, %219, %222 : vector<64x64xi1>, vector<64x64xf32>
    %224 = arith.truncf %223 : vector<64x64xf32> to vector<64x64xbf16>
    %c8_134 = arith.constant 8 : index
    %c0_135 = arith.constant 0 : index
    %c0_136 = arith.constant 0 : index
    %225 = vector.load %arg4[%c8_134, %c0_135, %c0_136] : memref<9x64x64xbf16, #tpu.memory_space<vmem>>, vector<1x64x64xbf16>
    %226 = vector.shape_cast %225 : vector<1x64x64xbf16> to vector<64x64xbf16>
    %cst_137 = arith.constant dense<0.000000e+00> : vector<64x64xf32>
    %227 = tpu.matmul %224, %226, %cst_137 {dimension_numbers = #tpu.dot_dimension_numbers<[1], [0], [0], [1], [0, 0, 1, 1], [], []>} : vector<64x64xbf16>, vector<64x64xbf16>, vector<64x64xf32> -> vector<64x64xf32>
    %228 = arith.addf %218, %227 : vector<64x64xf32>
    %c0_138 = arith.constant 0 : index
    %c0_139 = arith.constant 0 : index
    %229 = vector.load %arg5[%c0_138, %c0_139] : memref<1x64xf32, #tpu.memory_space<vmem>>, vector<1x64xf32>
    %230 = vector.broadcast %229 : vector<1x64xf32> to vector<64x64xf32>
    %231 = arith.addf %228, %230 : vector<64x64xf32>
    %cst_140 = arith.constant 0.000000e+00 : f32
    %232 = vector.broadcast %cst_140 : f32 to vector<64x64xf32>
    %233 = arith.maximumf %231, %232 : vector<64x64xf32>
    %cst_141 = arith.constant 0.000000e+00 : f32
    %234 = vector.broadcast %cst_141 : f32 to vector<24x64xf32>
    %c0_142 = arith.constant 0 : index
    %c0_143 = arith.constant 0 : index
    %235 = vector.load %arg11[%c0_142, %c0_143] : memref<304x64xf32, #tpu.memory_space<vmem>>, vector<24x64xf32>
    tpu.vector_store %arg11[%c0_142, %c0_143], %234 {strides = array<i32>} : memref<304x64xf32, #tpu.memory_space<vmem>>, vector<24x64xf32>,
    %cst_144 = arith.constant 0.000000e+00 : f32
    %236 = vector.broadcast %cst_144 : f32 to vector<24x64xf32>
    %c280_145 = arith.constant 280 : index
    %c0_146 = arith.constant 0 : index
    %237 = vector.load %arg11[%c280_145, %c0_146] : memref<304x64xf32, #tpu.memory_space<vmem>>, vector<24x64xf32>
    tpu.vector_store %arg11[%c280_145, %c0_146], %236 {strides = array<i32>} : memref<304x64xf32, #tpu.memory_space<vmem>>, vector<24x64xf32>,
    %238 = vector.shape_cast %233 : vector<64x64xf32> to vector<8x8x64xf32>
    %239 = vector.shape_cast %238 : vector<8x8x64xf32> to vector<8x1x8x64xf32>
    %240 = vector.shape_cast %238 : vector<8x8x64xf32> to vector<8x1x8x64xf32>
    %241 = tpu.concatenate %239, %240 in 1 : vector<8x1x8x64xf32>, vector<8x1x8x64xf32> -> vector<8x2x8x64xf32>
    %242 = vector.shape_cast %241 : vector<8x2x8x64xf32> to vector<128x64xf32>
    %c24_147 = arith.constant 24 : index
    %c0_148 = arith.constant 0 : index
    %243 = tpu.strided_load %arg11[%c24_147, %c0_148] {strides = array<i32: 2, 1>} : memref<304x64xf32, #tpu.memory_space<vmem>>, vector<128x64xf32>
    tpu.strided_store %arg11[%c24_147, %c0_148], %242 {strides = array<i32: 2, 1>} : memref<304x64xf32, #tpu.memory_space<vmem>>, vector<128x64xf32>
    %c25_149 = arith.constant 25 : index
    %c0_150 = arith.constant 0 : index
    %244 = tpu.strided_load %arg11[%c25_149, %c0_150] {strides = array<i32: 2, 1>} : memref<304x64xf32, #tpu.memory_space<vmem>>, vector<128x64xf32>
    tpu.strided_store %arg11[%c25_149, %c0_150], %242 {strides = array<i32: 2, 1>} : memref<304x64xf32, #tpu.memory_space<vmem>>, vector<128x64xf32>
    %245 = tpu.iota {dimensions = array<i32: 0>} : vector<256x1xi32>
    %c16_i32_151 = arith.constant 16 : i32
    %c0_i32_152 = arith.constant 0 : i32
    %246 = arith.cmpi eq, %c16_i32_151, %c0_i32_152 : i32
    %c1_i32_153 = arith.constant 1 : i32
    %247 = arith.select %246, %c1_i32_153, %c16_i32_151 : i32
    %248 = vector.broadcast %247 : i32 to vector<256x1xi32>
    %249 = arith.remsi %245, %248 : vector<256x1xi32>
    %c0_i32_154 = arith.constant 0 : i32
    %250 = vector.broadcast %c0_i32_154 : i32 to vector<256x1xi32>
    %251 = arith.cmpi ne, %249, %250 : vector<256x1xi32>
    %c0_i32_155 = arith.constant 0 : i32
    %252 = vector.broadcast %c0_i32_155 : i32 to vector<256x1xi32>
    %253 = arith.cmpi slt, %249, %252 : vector<256x1xi32>
    %c0_i32_156 = arith.constant 0 : i32
    %254 = arith.cmpi slt, %247, %c0_i32_156 : i32
    %255 = vector.broadcast %254 : i1 to vector<256x1xi1>
    %256 = vector.broadcast %255 : vector<256x1xi1> to vector<256x1xi1>
    %257 = arith.xori %253, %256 : vector<256x1xi1>
    %258 = arith.andi %257, %251 : vector<256x1xi1>
    %259 = vector.broadcast %247 : i32 to vector<256x1xi32>
    %260 = arith.addi %249, %259 : vector<256x1xi32>
    %261 = arith.select %258, %260, %249 : vector<256x1xi1>, vector<256x1xi32>
    %c1_i32_157 = arith.constant 1 : i32
    %262 = vector.broadcast %c1_i32_157 : i32 to vector<256x1xi32>
    %263 = arith.cmpi sge, %261, %262 : vector<256x1xi32>
    %c14_i32_158 = arith.constant 14 : i32
    %264 = vector.broadcast %c14_i32_158 : i32 to vector<256x1xi32>
    %265 = arith.cmpi sle, %261, %264 : vector<256x1xi32>
    %cst_159 = arith.constant 0.000000e+00 : f32
    %266 = vector.broadcast %cst_159 : f32 to vector<256x3xf32>
    %c7_160 = arith.constant 7 : index
    %c0_161 = arith.constant 0 : index
    %267 = vector.load %arg11[%c7_160, %c0_161] : memref<304x64xf32, #tpu.memory_space<vmem>>, vector<256x64xf32>
    %cst_162 = arith.constant 0.000000e+00 : f32
    %268 = vector.shape_cast %263 : vector<256x1xi1> to vector<256x1xi1>
    %269 = vector.broadcast %268 : vector<256x1xi1> to vector<256x64xi1>
    %270 = vector.broadcast %cst_162 : f32 to vector<256x64xf32>
    %271 = arith.select %269, %267, %270 : vector<256x64xi1>, vector<256x64xf32>
    %272 = arith.truncf %271 : vector<256x64xf32> to vector<256x64xbf16>
    %c0_163 = arith.constant 0 : index
    %c0_164 = arith.constant 0 : index
    %c0_165 = arith.constant 0 : index
    %273 = vector.load %arg6[%c0_163, %c0_164, %c0_165] : memref<9x64x3xbf16, #tpu.memory_space<vmem>>, vector<1x64x3xbf16>
    %274 = vector.shape_cast %273 : vector<1x64x3xbf16> to vector<64x3xbf16>
    %cst_166 = arith.constant dense<0.000000e+00> : vector<256x3xf32>
    %275 = tpu.matmul %272, %274, %cst_166 {dimension_numbers = #tpu.dot_dimension_numbers<[1], [0], [0], [1], [0, 0, 1, 1], [], []>} : vector<256x64xbf16>, vector<64x3xbf16>, vector<256x3xf32> -> vector<256x3xf32>
    %276 = arith.addf %266, %275 : vector<256x3xf32>
    %c8_167 = arith.constant 8 : index
    %c0_168 = arith.constant 0 : index
    %277 = vector.load %arg11[%c8_167, %c0_168] : memref<304x64xf32, #tpu.memory_space<vmem>>, vector<256x64xf32>
    %278 = arith.truncf %277 : vector<256x64xf32> to vector<256x64xbf16>
    %c1_169 = arith.constant 1 : index
    %c0_170 = arith.constant 0 : index
    %c0_171 = arith.constant 0 : index
    %279 = vector.load %arg6[%c1_169, %c0_170, %c0_171] : memref<9x64x3xbf16, #tpu.memory_space<vmem>>, vector<1x64x3xbf16>
    %280 = vector.shape_cast %279 : vector<1x64x3xbf16> to vector<64x3xbf16>
    %cst_172 = arith.constant dense<0.000000e+00> : vector<256x3xf32>
    %281 = tpu.matmul %278, %280, %cst_172 {dimension_numbers = #tpu.dot_dimension_numbers<[1], [0], [0], [1], [0, 0, 1, 1], [], []>} : vector<256x64xbf16>, vector<64x3xbf16>, vector<256x3xf32> -> vector<256x3xf32>
    %282 = arith.addf %276, %281 : vector<256x3xf32>
    %c9_173 = arith.constant 9 : index
    %c0_174 = arith.constant 0 : index
    %283 = vector.load %arg11[%c9_173, %c0_174] : memref<304x64xf32, #tpu.memory_space<vmem>>, vector<256x64xf32>
    %cst_175 = arith.constant 0.000000e+00 : f32
    %284 = vector.shape_cast %265 : vector<256x1xi1> to vector<256x1xi1>
    %285 = vector.broadcast %284 : vector<256x1xi1> to vector<256x64xi1>
    %286 = vector.broadcast %cst_175 : f32 to vector<256x64xf32>
    %287 = arith.select %285, %283, %286 : vector<256x64xi1>, vector<256x64xf32>
    %288 = arith.truncf %287 : vector<256x64xf32> to vector<256x64xbf16>
    %c2_176 = arith.constant 2 : index
    %c0_177 = arith.constant 0 : index
    %c0_178 = arith.constant 0 : index
    %289 = vector.load %arg6[%c2_176, %c0_177, %c0_178] : memref<9x64x3xbf16, #tpu.memory_space<vmem>>, vector<1x64x3xbf16>
    %290 = vector.shape_cast %289 : vector<1x64x3xbf16> to vector<64x3xbf16>
    %cst_179 = arith.constant dense<0.000000e+00> : vector<256x3xf32>
    %291 = tpu.matmul %288, %290, %cst_179 {dimension_numbers = #tpu.dot_dimension_numbers<[1], [0], [0], [1], [0, 0, 1, 1], [], []>} : vector<256x64xbf16>, vector<64x3xbf16>, vector<256x3xf32> -> vector<256x3xf32>
    %292 = arith.addf %282, %291 : vector<256x3xf32>
    %c23_180 = arith.constant 23 : index
    %c0_181 = arith.constant 0 : index
    %293 = vector.load %arg11[%c23_180, %c0_181] : memref<304x64xf32, #tpu.memory_space<vmem>>, vector<256x64xf32>
    %cst_182 = arith.constant 0.000000e+00 : f32
    %294 = vector.shape_cast %263 : vector<256x1xi1> to vector<256x1xi1>
    %295 = vector.broadcast %294 : vector<256x1xi1> to vector<256x64xi1>
    %296 = vector.broadcast %cst_182 : f32 to vector<256x64xf32>
    %297 = arith.select %295, %293, %296 : vector<256x64xi1>, vector<256x64xf32>
    %298 = arith.truncf %297 : vector<256x64xf32> to vector<256x64xbf16>
    %c3_183 = arith.constant 3 : index
    %c0_184 = arith.constant 0 : index
    %c0_185 = arith.constant 0 : index
    %299 = vector.load %arg6[%c3_183, %c0_184, %c0_185] : memref<9x64x3xbf16, #tpu.memory_space<vmem>>, vector<1x64x3xbf16>
    %300 = vector.shape_cast %299 : vector<1x64x3xbf16> to vector<64x3xbf16>
    %cst_186 = arith.constant dense<0.000000e+00> : vector<256x3xf32>
    %301 = tpu.matmul %298, %300, %cst_186 {dimension_numbers = #tpu.dot_dimension_numbers<[1], [0], [0], [1], [0, 0, 1, 1], [], []>} : vector<256x64xbf16>, vector<64x3xbf16>, vector<256x3xf32> -> vector<256x3xf32>
    %302 = arith.addf %292, %301 : vector<256x3xf32>
    %c24_187 = arith.constant 24 : index
    %c0_188 = arith.constant 0 : index
    %303 = vector.load %arg11[%c24_187, %c0_188] : memref<304x64xf32, #tpu.memory_space<vmem>>, vector<256x64xf32>
    %304 = arith.truncf %303 : vector<256x64xf32> to vector<256x64xbf16>
    %c4_189 = arith.constant 4 : index
    %c0_190 = arith.constant 0 : index
    %c0_191 = arith.constant 0 : index
    %305 = vector.load %arg6[%c4_189, %c0_190, %c0_191] : memref<9x64x3xbf16, #tpu.memory_space<vmem>>, vector<1x64x3xbf16>
    %306 = vector.shape_cast %305 : vector<1x64x3xbf16> to vector<64x3xbf16>
    %cst_192 = arith.constant dense<0.000000e+00> : vector<256x3xf32>
    %307 = tpu.matmul %304, %306, %cst_192 {dimension_numbers = #tpu.dot_dimension_numbers<[1], [0], [0], [1], [0, 0, 1, 1], [], []>} : vector<256x64xbf16>, vector<64x3xbf16>, vector<256x3xf32> -> vector<256x3xf32>
    %308 = arith.addf %302, %307 : vector<256x3xf32>
    %c25_193 = arith.constant 25 : index
    %c0_194 = arith.constant 0 : index
    %309 = vector.load %arg11[%c25_193, %c0_194] : memref<304x64xf32, #tpu.memory_space<vmem>>, vector<256x64xf32>
    %cst_195 = arith.constant 0.000000e+00 : f32
    %310 = vector.shape_cast %265 : vector<256x1xi1> to vector<256x1xi1>
    %311 = vector.broadcast %310 : vector<256x1xi1> to vector<256x64xi1>
    %312 = vector.broadcast %cst_195 : f32 to vector<256x64xf32>
    %313 = arith.select %311, %309, %312 : vector<256x64xi1>, vector<256x64xf32>
    %314 = arith.truncf %313 : vector<256x64xf32> to vector<256x64xbf16>
    %c5_196 = arith.constant 5 : index
    %c0_197 = arith.constant 0 : index
    %c0_198 = arith.constant 0 : index
    %315 = vector.load %arg6[%c5_196, %c0_197, %c0_198] : memref<9x64x3xbf16, #tpu.memory_space<vmem>>, vector<1x64x3xbf16>
    %316 = vector.shape_cast %315 : vector<1x64x3xbf16> to vector<64x3xbf16>
    %cst_199 = arith.constant dense<0.000000e+00> : vector<256x3xf32>
    %317 = tpu.matmul %314, %316, %cst_199 {dimension_numbers = #tpu.dot_dimension_numbers<[1], [0], [0], [1], [0, 0, 1, 1], [], []>} : vector<256x64xbf16>, vector<64x3xbf16>, vector<256x3xf32> -> vector<256x3xf32>
    %318 = arith.addf %308, %317 : vector<256x3xf32>
    %c39_200 = arith.constant 39 : index
    %c0_201 = arith.constant 0 : index
    %319 = vector.load %arg11[%c39_200, %c0_201] : memref<304x64xf32, #tpu.memory_space<vmem>>, vector<256x64xf32>
    %cst_202 = arith.constant 0.000000e+00 : f32
    %320 = vector.shape_cast %263 : vector<256x1xi1> to vector<256x1xi1>
    %321 = vector.broadcast %320 : vector<256x1xi1> to vector<256x64xi1>
    %322 = vector.broadcast %cst_202 : f32 to vector<256x64xf32>
    %323 = arith.select %321, %319, %322 : vector<256x64xi1>, vector<256x64xf32>
    %324 = arith.truncf %323 : vector<256x64xf32> to vector<256x64xbf16>
    %c6_203 = arith.constant 6 : index
    %c0_204 = arith.constant 0 : index
    %c0_205 = arith.constant 0 : index
    %325 = vector.load %arg6[%c6_203, %c0_204, %c0_205] : memref<9x64x3xbf16, #tpu.memory_space<vmem>>, vector<1x64x3xbf16>
    %326 = vector.shape_cast %325 : vector<1x64x3xbf16> to vector<64x3xbf16>
    %cst_206 = arith.constant dense<0.000000e+00> : vector<256x3xf32>
    %327 = tpu.matmul %324, %326, %cst_206 {dimension_numbers = #tpu.dot_dimension_numbers<[1], [0], [0], [1], [0, 0, 1, 1], [], []>} : vector<256x64xbf16>, vector<64x3xbf16>, vector<256x3xf32> -> vector<256x3xf32>
    %328 = arith.addf %318, %327 : vector<256x3xf32>
    %c40_207 = arith.constant 40 : index
    %c0_208 = arith.constant 0 : index
    %329 = vector.load %arg11[%c40_207, %c0_208] : memref<304x64xf32, #tpu.memory_space<vmem>>, vector<256x64xf32>
    %330 = arith.truncf %329 : vector<256x64xf32> to vector<256x64xbf16>
    %c7_209 = arith.constant 7 : index
    %c0_210 = arith.constant 0 : index
    %c0_211 = arith.constant 0 : index
    %331 = vector.load %arg6[%c7_209, %c0_210, %c0_211] : memref<9x64x3xbf16, #tpu.memory_space<vmem>>, vector<1x64x3xbf16>
    %332 = vector.shape_cast %331 : vector<1x64x3xbf16> to vector<64x3xbf16>
    %cst_212 = arith.constant dense<0.000000e+00> : vector<256x3xf32>
    %333 = tpu.matmul %330, %332, %cst_212 {dimension_numbers = #tpu.dot_dimension_numbers<[1], [0], [0], [1], [0, 0, 1, 1], [], []>} : vector<256x64xbf16>, vector<64x3xbf16>, vector<256x3xf32> -> vector<256x3xf32>
    %334 = arith.addf %328, %333 : vector<256x3xf32>
    %c41_213 = arith.constant 41 : index
    %c0_214 = arith.constant 0 : index
    %335 = vector.load %arg11[%c41_213, %c0_214] : memref<304x64xf32, #tpu.memory_space<vmem>>, vector<256x64xf32>
    %cst_215 = arith.constant 0.000000e+00 : f32
    %336 = vector.shape_cast %265 : vector<256x1xi1> to vector<256x1xi1>
    %337 = vector.broadcast %336 : vector<256x1xi1> to vector<256x64xi1>
    %338 = vector.broadcast %cst_215 : f32 to vector<256x64xf32>
    %339 = arith.select %337, %335, %338 : vector<256x64xi1>, vector<256x64xf32>
    %340 = arith.truncf %339 : vector<256x64xf32> to vector<256x64xbf16>
    %c8_216 = arith.constant 8 : index
    %c0_217 = arith.constant 0 : index
    %c0_218 = arith.constant 0 : index
    %341 = vector.load %arg6[%c8_216, %c0_217, %c0_218] : memref<9x64x3xbf16, #tpu.memory_space<vmem>>, vector<1x64x3xbf16>
    %342 = vector.shape_cast %341 : vector<1x64x3xbf16> to vector<64x3xbf16>
    %cst_219 = arith.constant dense<0.000000e+00> : vector<256x3xf32>
    %343 = tpu.matmul %340, %342, %cst_219 {dimension_numbers = #tpu.dot_dimension_numbers<[1], [0], [0], [1], [0, 0, 1, 1], [], []>} : vector<256x64xbf16>, vector<64x3xbf16>, vector<256x3xf32> -> vector<256x3xf32>
    %344 = arith.addf %334, %343 : vector<256x3xf32>
    %c0_220 = arith.constant 0 : index
    %c0_221 = arith.constant 0 : index
    %345 = vector.load %arg7[%c0_220, %c0_221] : memref<1x3xf32, #tpu.memory_space<vmem>>, vector<1x3xf32>
    %346 = vector.broadcast %345 : vector<1x3xf32> to vector<256x3xf32>
    %347 = arith.addf %344, %346 : vector<256x3xf32>
    %348 = tpu.transpose %347, [1, 0] : vector<256x3xf32> -> vector<3x256xf32>
    %c0_222 = arith.constant 0 : index
    %c0_223 = arith.constant 0 : index
    %c0_224 = arith.constant 0 : index
    %349 = vector.load %arg8[%c0_222, %c0_223, %c0_224] : memref<1x3x256xf32, #tpu.memory_space<vmem>>, vector<1x3x256xf32>
    %350 = vector.shape_cast %349 : vector<1x3x256xf32> to vector<3x256xf32>
    %351 = vector.shape_cast %348 : vector<3x256xf32> to vector<1x3x256xf32>
    tpu.vector_store %arg8[%c0_222, %c0_223, %c0_224], %351 {strides = array<i32>} : memref<1x3x256xf32, #tpu.memory_space<vmem>>, vector<1x3x256xf32>,
    return
  }
  func.func @transform_0(%arg0: i32) -> (i32, i32, i32) {
    %c0_i32 = arith.constant 0 : i32
    %c0_i32_0 = arith.constant 0 : i32
    %c0_i32_1 = arith.constant 0 : i32
    return %arg0, %c0_i32, %c0_i32_0 : i32, i32, i32
  }
  func.func @transform_1(%arg0: i32) -> (i32, i32, i32) {
    %c0_i32 = arith.constant 0 : i32
    %c0_i32_0 = arith.constant 0 : i32
    %c0_i32_1 = arith.constant 0 : i32
    %c0_i32_2 = arith.constant 0 : i32
    return %c0_i32, %c0_i32_0, %c0_i32_1 : i32, i32, i32
  }
  func.func @transform_2(%arg0: i32) -> (i32, i32) {
    %c0_i32 = arith.constant 0 : i32
    %c0_i32_0 = arith.constant 0 : i32
    %c0_i32_1 = arith.constant 0 : i32
    return %c0_i32, %c0_i32_0 : i32, i32
  }
  func.func @transform_3(%arg0: i32) -> (i32, i32, i32) {
    %c0_i32 = arith.constant 0 : i32
    %c0_i32_0 = arith.constant 0 : i32
    %c0_i32_1 = arith.constant 0 : i32
    %c0_i32_2 = arith.constant 0 : i32
    return %c0_i32, %c0_i32_0, %c0_i32_1 : i32, i32, i32
  }
  func.func @transform_4(%arg0: i32) -> (i32, i32) {
    %c0_i32 = arith.constant 0 : i32
    %c0_i32_0 = arith.constant 0 : i32
    %c0_i32_1 = arith.constant 0 : i32
    return %c0_i32, %c0_i32_0 : i32, i32
  }
  func.func @transform_5(%arg0: i32) -> (i32, i32, i32) {
    %c0_i32 = arith.constant 0 : i32
    %c0_i32_0 = arith.constant 0 : i32
    %c0_i32_1 = arith.constant 0 : i32
    %c0_i32_2 = arith.constant 0 : i32
    return %c0_i32, %c0_i32_0, %c0_i32_1 : i32, i32, i32
  }
  func.func @transform_6(%arg0: i32) -> (i32, i32) {
    %c0_i32 = arith.constant 0 : i32
    %c0_i32_0 = arith.constant 0 : i32
    %c0_i32_1 = arith.constant 0 : i32
    return %c0_i32, %c0_i32_0 : i32, i32
  }
  func.func @transform_7(%arg0: i32) -> (i32, i32, i32) {
    %c0_i32 = arith.constant 0 : i32
    %c0_i32_0 = arith.constant 0 : i32
    %c0_i32_1 = arith.constant 0 : i32
    return %arg0, %c0_i32, %c0_i32_0 : i32, i32, i32
  }
}

</mosaic_0001>

<bundles_post_ra>
// kernel: denoiser_forward.1
= control target key start
LH: loop header
LB: loop body
LE: loop exit
PB: predicated region body
PF: predicated region fallthrough
CT: control target
= control target key end

     0   :  { %s11026_s24 = smov 0   ;;  %s13763_s0 = inlined_call_operand.vmem [shape: f32[2,3,256], index: 0, kind: input, shape index: {}]   ;;  %s13764_s1 = inlined_call_operand.vmem [shape: bf16[9,3,64], index: 1, kind: input, shape index: {}]   ;;  %s13765_s2 = inlined_call_operand.vmem [shape: f32[1,64], index: 2, kind: input, shape index: {}]   ;;  %s13766_s3 = inlined_call_operand.vmem [shape: bf16[9,64,64], index: 3, kind: input, shape index: {}]   ;;  %s13767_s4 = inlined_call_operand.vmem [shape: f32[1,64], index: 4, kind: input, shape index: {}]   ;;  %s13768_s5 = inlined_call_operand.vmem [shape: bf16[9,64,3], index: 5, kind: input, shape index: {}]   ;;  %s13769_s6 = inlined_call_operand.vmem [shape: f32[1,3], index: 6, kind: input, shape index: {}]   ;;  %s13770_s7 = inlined_call_operand.vmem [shape: f32[2,3,256], index: 7, kind: output, shape index: {}]  }
   0x1 LB: > { %s8554_s25 = sadd.s32 4294967295, %s10982_s24   ;;  %p8558_p0 = scmp.ge.s32.totalorder %s10982_s24, 1  ;;  %s10982_s24 = sphi %s11026_s24, %s17_s24  }
   0x2   : > { %p237_p1 = scmp.lt.s32.totalorder %s10982_s24, 3 }
   0x4   : > { %p238_p2 = pnand %p8558_p0, %p237_p1 }
   0x6   : > { %241 = sbr.rel (%p238_p2) target bundleno = 2229 (0x8b5), region = 48 }
   0xd   : > { %p269_p3 = scmp.lt.s32.totalorder %s8554_s25, 1  ;;  %vm13869_vm0 = vcmask 23552   ;;  %v13771_v1 = vmov 0.0   ;;  %vm1111_vm1 = vcmask 1040384   ;;  %vm1112_vm2 = vcmask 1041408  }
   0xe   : > { %282 = vst.msk [vmem:[#allocation2 + $0x8] sm:$0xff] %vm13869_vm0, %v13771_v1  ;;  %283 = vst.msk [vmem:[#allocation2 + $0x10] sm:$0xff] %vm13869_vm0, %v13771_v1  ;;  %v10985_v2 = vmov 65535   ;;  %v8563_v4 = vld [vmem:[%s13764_s1 + $0x2] sm:$0x3]  ;;  %v387_v13 = vlaneseq  ;;  %v13983_v20 = vmov 0 }
   0xf   : > { %s14787_s25 = smov (!%p269_p3, %s8554_s25), 1  ;;  %281 = vst.msk [vmem:[#allocation2] sm:$0xff] %vm13869_vm0, %v13771_v1  ;;  %284 = vst.msk [vmem:[#allocation2 + $0x118] sm:$0xff] %vm13869_vm0, %v13771_v1  ;;  %v1113_v3 = vsel %vm1111_vm1, 4294967295, %v10985_v2  ;;  %v1012_v11 = vld [vmem:[%s13764_s1] sm:$0x3] }
  0x10   : > { %s9100_s26 = sshll.u32 %s14787_s25, 3  ;;  %285 = vst.msk [vmem:[#allocation2 + $0x120] sm:$0xff] %vm13869_vm0, %v13771_v1  ;;  %286 = vst.msk [vmem:[#allocation2 + $0x128] sm:$0xff] %vm13869_vm0, %v13771_v1  ;;  %v11057_v5 = vsel %vm1112_vm2, %v1113_v3, 0  ;;  %v11066_v15 = vshrl.u32 %v387_v13, 7  ;;  %v13989_v35 = vmov 0 }
  0x11   : > { %s273_s29 = scalar_lea.vmem %s13763_s0, %s9100_s26  ;;  %v1116_v6 = vand.u32 %v8563_v4, %v11057_v5  ;;  %v1328_v12 = vand.u32 %v11057_v5, %v1012_v11  ;;  %v8596_v22 = vld [vmem:[%s13764_s1 + $0x4] sm:$0x3]  ;;  %v13996_v42 = vmov 0  ;;  %v14003_v56 = vmov 0  ;;  %s278_s17 = scalar_lea.vmem %s13770_s7, %s9100_s26 }
  0x12   : > { %v287_v0 = vld [vmem:[%s273_s29] sm:$0x77]  ;;  %v424_v17 = vand.u32 15, %v11066_v15  ;;  %v11071_v19 = vadd.s32 8, %v11066_v15  ;;  %v11084_v23 = vadd.s32 16, %v11066_v15  ;;  %v11096_v31 = vand.u32 %v8596_v22, %v11057_v5 }
  0x13   : > { %291 = vxpose.xlu0.b32.start.end [1/1] (short) %v287_v0, 128  ;;  %9507 = vmatprep.subr.bf16.mxu0 %v1116_v6  ;;  %v289_v10 = vcombine.high %v287_v0, %v287_v0  ;;  %v11109_v36 = vadd.s32 24, %v11066_v15  ;;  %v11130_v43 = vadd.s32 32, %v11066_v15  ;;  %v11158_v57 = vadd.s32 40, %v11066_v15 }
  0x14   : > { %9508 = vmatpush3.bf16.msra.mxu0 %v1116_v6  ;;  %13982 = vst [vmem:[#allocation6_spill] sm:$0xff] %v11071_v19  ;;  %vm11074_vm3 = vcmp.ge.s32.totalorder %v424_v17, 1  ;;  %13986 = vst [vmem:[#allocation8_spill] sm:$0xff] %v11084_v23  ;;  %v431_v28 = vand.u32 15, %v11071_v19  ;;  %v438_v33 = vand.u32 15, %v11084_v23  ;;  %v14010_v0 = vmov 0 }
  0x15   : > { %v1013_v7 = vld [vmem:[#allocation2 + $0x8] sm:$0xff]  ;;  %v1014_v8 = vld [vmem:[#allocation2 + $0x10] sm:$0xff]  ;;  %9541 = vmatprep.subr.bf16.mxu0 %v1328_v12  ;;  %v13984_v20 = vsel %vm11074_vm3, 4294967295, %v13983_v20  ;;  %13992 = vst [vmem:[#allocation12_spill] sm:$0xff] %v11109_v36  ;;  %13999 = vst [vmem:[#allocation17_spill] sm:$0xff] %v11130_v43  ;;  %v445_v48 = vand.u32 15, %v11109_v36 }
  0x16   : > { %v1045_v9 = vpack.c.bf16 %v1014_v8, %v1013_v7  ;;  %13985 = vst [vmem:[#allocation7_spill] sm:$0xff] %v13984_v20  ;;  %vm11104_vm4 = vcmp.le.s32.totalorder %v431_v28, 14  ;;  %vm11125_vm5 = vcmp.ge.s32.totalorder %v438_v33, 1  ;;  %v452_v54 = vand.u32 15, %v11130_v43  ;;  %14006 = vst [vmem:[#allocation22_spill] sm:$0xff] %v11158_v57 }
  0x17   : > { %v13990_v35 = vsel %vm11104_vm4, 4294967295, %v13989_v35  ;;  %v13997_v42 = vsel %vm11125_vm5, 4294967295, %v13996_v42  ;;  %vm11153_vm6 = vcmp.le.s32.totalorder %v445_v48, 14  ;;  %v11181_v2 = vadd.s32 48, %v11066_v15 }
  0x18   : > { %9509 = vmatprep.mubr.msk.bf16.mxu0 %vm13869_vm0, %v1045_v9  ;;  %13991 = vst [vmem:[#allocation11_spill] sm:$0xff] %v13990_v35  ;;  %13998 = vst [vmem:[#allocation16_spill] sm:$0xff] %v13997_v42  ;;  %v14004_v56 = vsel %vm11153_vm6, 4294967295, %v14003_v56  ;;  %vm11176_vm7 = vcmp.ge.s32.totalorder %v452_v54, 1  ;;  %v459_v9 = vand.u32 15, %v11158_v57  ;;  %v11212_v22 = vadd.s32 56, %v11066_v15 }
  0x19   : > { %14005 = vst [vmem:[#allocation21_spill] sm:$0xff] %v14004_v56  ;;  %v14011_v0 = vsel %vm11176_vm7, 4294967295, %v14010_v0  ;;  %14013 = vst [vmem:[#allocation27_spill] sm:$0xff] %v11181_v2  ;;  %v14045_v43 = vmov 0  ;;  %v399_v36 = vadd.s32 88, %v11066_v15 }
  0x1a   : > { %14012 = vst [vmem:[#allocation26_spill] sm:$0xff] %v14011_v0  ;;  %vm11207_vm8 = vcmp.le.s32.totalorder %v459_v9, 14  ;;  %14021 = vst [vmem:[#allocation33_spill] sm:$0xff] %v11212_v22  ;;  %v14032_v9 = vmov 0 }
  0x50   : > { %323 = vxpose.xlu0.b32.start.end [1/1] (short) %v289_v10, 128 }
  0x93   : > { %v307_v14 = vpop.trf.xlu0 }
  0x94   : > { %355 = vst.msk [vmem:[#allocation2 + $0x18] sm:$0xff] %vm13869_vm0, %v307_v14 }
  0x97   : > { %v308_v16 = vpop.trf.xlu0 }
  0x98   : > { %356 = vst.msk [vmem:[#allocation2 + $0x20] sm:$0xff] %vm13869_vm0, %v308_v16  ;;  %v466_v16 = vand.u32 15, %v11181_v2 }
  0x9a   : > { %vm11230_vm9 = vcmp.ge.s32.totalorder %v466_v16, 1 }
  0x9b   : > { %v309_v18 = vpop.trf.xlu0  ;;  %v11078_v21 = vld [vmem:[#allocation2 + $0x17] sm:$0xff] }
  0x9c   : > { %357 = vst.msk [vmem:[#allocation2 + $0x28] sm:$0xff] %vm13869_vm0, %v309_v18  ;;  %v1015_v25 = vld [vmem:[#allocation2 + $0x18] sm:$0xff]  ;;  %v1913_v29 = vsel %vm11074_vm3, %v11078_v21, 0.0  ;;  %v14018_v18 = vmov 0 }
  0x9d   : > { %v14019_v18 = vsel %vm11207_vm8, 4294967295, %v14018_v18 }
  0x9e   : > { %14020 = vst [vmem:[#allocation32_spill] sm:$0xff] %v14019_v18  ;;  %v14162_v18 = vmov 0 }
  0x9f   : > { %v310_v24 = vpop.trf.xlu0  ;;  %v1016_v26 = vld [vmem:[#allocation2 + $0x20] sm:$0xff] }
  0xa0   : > { %v11086_v27 = vld [vmem:[#allocation2 + $0x1f] sm:$0xff]  ;;  %358 = vst.msk [vmem:[#allocation2 + $0x30] sm:$0xff] %vm13869_vm0, %v310_v24  ;;  %v11093_v30 = vpack.c.bf16 %v1016_v26, %v1015_v25 }
  0xa1   : > { %v11099_v32 = vpack.c.bf16 %v11086_v27, %v1913_v29  ;;  %v11117_v39 = vld [vmem:[#allocation2 + $0x19] sm:$0xff] }
  0xa2   : > { %13987 = vst [vmem:[#allocation9_spill] sm:$0xff] %v11093_v30  ;;  %9510 = vmatmul.mubr.msk.bf16.vlgmr.msra.gmra.mrb[0].mxu0 %vm13869_vm0, %v11093_v30  ;;  %13994 = vst [vmem:[#allocation14_spill] sm:$0xff] %v11117_v39 }
  0xa3   : > { %13988 = vst [vmem:[#allocation10_spill] sm:$0xff] %v11099_v32  ;;  %v311_v34 = vpop.trf.xlu0  ;;  %9542 = vmatpush3.bf16.msra.mxu0 %v1328_v12  ;;  %v11111_v37 = vld [vmem:[#allocation2 + $0x21] sm:$0xff] }
  0xa4   : > { %13993 = vst [vmem:[#allocation13_spill] sm:$0xff] %v11111_v37  ;;  %359 = vst.msk [vmem:[#allocation2 + $0x38] sm:$0xff] %vm13869_vm0, %v311_v34  ;;  %9575 = vmatprep.subr.bf16.mxu0 %v11096_v31  ;;  %v11115_v38 = vld [vmem:[#allocation2 + $0x27] sm:$0xff]  ;;  %v2534_v40 = vsel %vm11104_vm4, %v11111_v37, 0.0  ;;  %v14025_v34 = vmov 0 }
  0xa5   : > { %v11123_v41 = vpack.c.bf16 %v2534_v40, %v11117_v39  ;;  %v1017_v45 = vld [vmem:[#allocation2 + $0x28] sm:$0xff]  ;;  %v1915_v49 = vsel %vm11125_vm5, %v11115_v38, 0.0  ;;  %v2859_v50 = vsel %vm11074_vm3, %v11115_v38, 0.0  ;;  %v14026_v34 = vsel %vm11230_vm9, 4294967295, %v14025_v34 }
  0xa6   : > { %14027 = vst [vmem:[#allocation37_spill] sm:$0xff] %v14026_v34  ;;  %v396_v40 = vadd.s32 64, %v11066_v15 }
  0xa7   : > { %13995 = vst [vmem:[#allocation15_spill] sm:$0xff] %v11123_v41  ;;  %v312_v44 = vpop.trf.xlu0  ;;  %v1018_v46 = vld [vmem:[#allocation2 + $0x30] sm:$0xff] }
  0xa8   : > { %v11132_v47 = vld [vmem:[#allocation2 + $0x2f] sm:$0xff]  ;;  %360 = vst.msk [vmem:[#allocation2 + $0x40] sm:$0xff] %vm13869_vm0, %v312_v44  ;;  %v11142_v51 = vpack.c.bf16 %v1018_v46, %v1017_v45 }
  0xa9   : > { %v11145_v52 = vpack.c.bf16 %v11132_v47, %v1915_v49  ;;  %v11148_v53 = vpack.c.bf16 %v11132_v47, %v2859_v50  ;;  %v11165_v60 = vld [vmem:[#allocation2 + $0x29] sm:$0xff]  ;;  %v473_v50 = vand.u32 15, %v11212_v22 }
  0xaa   : > { %14000 = vst [vmem:[#allocation18_spill] sm:$0xff] %v11142_v51  ;;  %9513 = vmatprep.mubr.msk.bf16.mxu0 %vm13869_vm0, %v11142_v51  ;;  %14008 = vst [vmem:[#allocation24_spill] sm:$0xff] %v11165_v60 }
  0xab   : > { %14001 = vst [vmem:[#allocation19_spill] sm:$0xff] %v11145_v52  ;;  %14002 = vst [vmem:[#allocation20_spill] sm:$0xff] %v11148_v53  ;;  %v313_v55 = vpop.trf.xlu0  ;;  %v11160_v58 = vld [vmem:[#allocation2 + $0x31] sm:$0xff]  ;;  %vm11258_vm10 = vcmp.le.s32.totalorder %v473_v50, 14  ;;  %v14058_v53 = vmov 0 }
  0xac   : > { %14007 = vst [vmem:[#allocation23_spill] sm:$0xff] %v11160_v58  ;;  %361 = vst.msk [vmem:[#allocation2 + $0x48] sm:$0xff] %vm13869_vm0, %v313_v55  ;;  %v11163_v59 = vld [vmem:[#allocation2 + $0x37] sm:$0xff]  ;;  %v2536_v61 = vsel %vm11153_vm6, %v11160_v58, 0.0  ;;  %v3480_v63 = vsel %vm11104_vm4, %v11160_v58, 0.0  ;;  %v14033_v9 = vsel %vm11258_vm10, 4294967295, %v14032_v9 }
  0xad   : > { %v11171_v62 = vpack.c.bf16 %v2536_v61, %v11165_v60  ;;  %v11184_v3 = vpack.c.bf16 %v3480_v63, %v11165_v60  ;;  %v1019_v6 = vld [vmem:[#allocation2 + $0x38] sm:$0xff]  ;;  %v1917_v10 = vsel %vm11176_vm7, %v11163_v59, 0.0  ;;  %v2861_v11 = vsel %vm11125_vm5, %v11163_v59, 0.0  ;;  %14034 = vst [vmem:[#allocation42_spill] sm:$0xff] %v14033_v9 }
  0xaf   : > { %14009 = vst [vmem:[#allocation25_spill] sm:$0xff] %v11171_v62  ;;  %14014 = vst [vmem:[#allocation28_spill] sm:$0xff] %v11184_v3  ;;  %v314_v4 = vpop.trf.xlu0  ;;  %v1020_v7 = vld [vmem:[#allocation2 + $0x40] sm:$0xff] }
  0xb0   : > { %v11186_v8 = vld [vmem:[#allocation2 + $0x3f] sm:$0xff]  ;;  %362 = vst.msk [vmem:[#allocation2 + $0x50] sm:$0xff] %vm13869_vm0, %v314_v4  ;;  %v11196_v12 = vpack.c.bf16 %v1020_v7, %v1019_v6  ;;  %v480_v6 = vand.u32 15, %v396_v40 }
  0xb1   : > { %v11199_v13 = vpack.c.bf16 %v11186_v8, %v1917_v10  ;;  %v11202_v14 = vpack.c.bf16 %v11186_v8, %v2861_v11  ;;  %v11219_v26 = vld [vmem:[#allocation2 + $0x39] sm:$0xff]  ;;  %v397_v10 = vadd.s32 72, %v11066_v15 }
  0xb2   : > { %14015 = vst [vmem:[#allocation29_spill] sm:$0xff] %v11196_v12  ;;  %9514 = vmatmul.mubr.msk.bf16.gmra.mrb[4].mxu0 %vm13869_vm0, %v11196_v12  ;;  %14023 = vst [vmem:[#allocation35_spill] sm:$0xff] %v11219_v26  ;;  %vm11279_vm11 = vcmp.ge.s32.totalorder %v480_v6, 1  ;;  %v403_v12 = vadd.s32 120, %v11066_v15 }
  0xb3   : > { %14016 = vst [vmem:[#allocation30_spill] sm:$0xff] %v11199_v13  ;;  %14017 = vst [vmem:[#allocation31_spill] sm:$0xff] %v11202_v14  ;;  %v315_v17 = vpop.trf.xlu0  ;;  %v11214_v24 = vld [vmem:[#allocation2 + $0x41] sm:$0xff]  ;;  %v405_v13 = vadd.s32 136, %v11066_v15 }
  0xb4   : > { %14022 = vst [vmem:[#allocation34_spill] sm:$0xff] %v11214_v24  ;;  %363 = vst.msk [vmem:[#allocation2 + $0x58] sm:$0xff] %vm13869_vm0, %v315_v17  ;;  %v11217_v25 = vld [vmem:[#allocation2 + $0x47] sm:$0xff]  ;;  %v2538_v28 = vsel %vm11207_vm8, %v11214_v24, 0.0  ;;  %v3482_v33 = vsel %vm11153_vm6, %v11214_v24, 0.0  ;;  %v415_v24 = vadd.s32 216, %v11066_v15 }
  0xb5   : > { %v11225_v29 = vpack.c.bf16 %v2538_v28, %v11219_v26  ;;  %v11236_v44 = vpack.c.bf16 %v3482_v33, %v11219_v26  ;;  %v1021_v46 = vld [vmem:[#allocation2 + $0x48] sm:$0xff]  ;;  %v1919_v54 = vsel %vm11230_vm9, %v11217_v25, 0.0  ;;  %v2863_v55 = vsel %vm11176_vm7, %v11217_v25, 0.0 }
  0xb7   : > { %14024 = vst [vmem:[#allocation36_spill] sm:$0xff] %v11225_v29  ;;  %14028 = vst [vmem:[#allocation38_spill] sm:$0xff] %v11236_v44  ;;  %v316_v45 = vpop.trf.xlu0  ;;  %v1022_v48 = vld [vmem:[#allocation2 + $0x50] sm:$0xff] }
  0xb8   : > { %v11238_v49 = vld [vmem:[#allocation2 + $0x4f] sm:$0xff]  ;;  %364 = vst.msk [vmem:[#allocation2 + $0x60] sm:$0xff] %vm13869_vm0, %v316_v45  ;;  %v11248_v61 = vpack.c.bf16 %v1022_v48, %v1021_v46  ;;  %v14038_v45 = vmov 0  ;;  %v398_v46 = vadd.s32 80, %v11066_v15 }
  0xb9   : > { %v11251_v63 = vpack.c.bf16 %v11238_v49, %v1919_v54  ;;  %v11254_v4 = vpack.c.bf16 %v11238_v49, %v2863_v55  ;;  %v11268_v17 = vld [vmem:[#allocation2 + $0x49] sm:$0xff]  ;;  %v14039_v45 = vsel %vm11279_vm11, 4294967295, %v14038_v45 }
  0xba   : > { %14029 = vst [vmem:[#allocation39_spill] sm:$0xff] %v11248_v61  ;;  %9517 = vmatprep.mubr.msk.bf16.mxu0 %vm13869_vm0, %v11248_v61  ;;  %14036 = vst [vmem:[#allocation44_spill] sm:$0xff] %v11268_v17 }
  0xbb   : > { %14030 = vst [vmem:[#allocation40_spill] sm:$0xff] %v11251_v63  ;;  %14031 = vst [vmem:[#allocation41_spill] sm:$0xff] %v11254_v4  ;;  %v317_v7 = vpop.trf.xlu0  ;;  %v11263_v11 = vld [vmem:[#allocation2 + $0x51] sm:$0xff]  ;;  %v14084_v63 = vmov 0 }
  0xbc   : > { %14035 = vst [vmem:[#allocation43_spill] sm:$0xff] %v11263_v11  ;;  %365 = vst.msk [vmem:[#allocation2 + $0x68] sm:$0xff] %vm13869_vm0, %v317_v7  ;;  %v11266_v16 = vld [vmem:[#allocation2 + $0x57] sm:$0xff]  ;;  %v2540_v28 = vsel %vm11258_vm10, %v11263_v11, 0.0  ;;  %v3484_v40 = vsel %vm11207_vm8, %v11263_v11, 0.0 }
  0xbd   : > { %v11274_v33 = vpack.c.bf16 %v2540_v28, %v11268_v17  ;;  %14040 = vst [vmem:[#allocation46_spill] sm:$0xff] %v14039_v45  ;;  %v11285_v48 = vpack.c.bf16 %v3484_v40, %v11268_v17  ;;  %v1023_v54 = vld [vmem:[#allocation2 + $0x58] sm:$0xff]  ;;  %v487_v28 = vand.u32 15, %v397_v10  ;;  %v1921_v1 = vsel %vm11279_vm11, %v11266_v16, 0.0 }
  0xbe   : > { %v2865_v6 = vsel %vm11230_vm9, %v11266_v16, 0.0  ;;  %v494_v10 = vand.u32 15, %v398_v46 }
  0xbf   : > { %14037 = vst [vmem:[#allocation45_spill] sm:$0xff] %v11274_v33  ;;  %14041 = vst [vmem:[#allocation47_spill] sm:$0xff] %v11285_v48  ;;  %v318_v50 = vpop.trf.xlu0  ;;  %v1024_v55 = vld [vmem:[#allocation2 + $0x60] sm:$0xff]  ;;  %vm11306_vm12 = vcmp.le.s32.totalorder %v487_v28, 14 }
  0xc0   : > { %v11287_v7 = vld [vmem:[#allocation2 + $0x5f] sm:$0xff]  ;;  %366 = vst.msk [vmem:[#allocation2 + $0x70] sm:$0xff] %vm13869_vm0, %v318_v50  ;;  %v11296_v22 = vpack.c.bf16 %v1024_v55, %v1023_v54  ;;  %v14046_v43 = vsel %vm11306_vm12, 4294967295, %v14045_v43  ;;  %vm11327_vm13 = vcmp.ge.s32.totalorder %v494_v10, 1 }
  0xc1   : > { %v11299_v40 = vpack.c.bf16 %v11287_v7, %v1921_v1  ;;  %v11302_v2 = vpack.c.bf16 %v11287_v7, %v2865_v6  ;;  %14047 = vst [vmem:[#allocation51_spill] sm:$0xff] %v14046_v43  ;;  %v11316_v54 = vld [vmem:[#allocation2 + $0x59] sm:$0xff]  ;;  %v14051_v6 = vmov 0  ;;  %v413_v43 = vadd.s32 200, %v11066_v15 }
  0xc2   : > { %14042 = vst [vmem:[#allocation48_spill] sm:$0xff] %v11296_v22  ;;  %9518 = vmatmul.mubr.msk.bf16.gmra.mrb[8].mxu0 %vm13869_vm0, %v11296_v22  ;;  %14049 = vst [vmem:[#allocation53_spill] sm:$0xff] %v11316_v54  ;;  %v14052_v6 = vsel %vm11327_vm13, 4294967295, %v14051_v6 }
  0xc3   : > { %14043 = vst [vmem:[#allocation49_spill] sm:$0xff] %v11299_v40  ;;  %14044 = vst [vmem:[#allocation50_spill] sm:$0xff] %v11302_v2  ;;  %v319_v57 = vpop.trf.xlu0  ;;  %v11311_v50 = vld [vmem:[#allocation2 + $0x61] sm:$0xff] }
  0xc4   : > { %14048 = vst [vmem:[#allocation52_spill] sm:$0xff] %v11311_v50  ;;  %367 = vst.msk [vmem:[#allocation2 + $0x78] sm:$0xff] %vm13869_vm0, %v319_v57  ;;  %v11314_v1 = vld [vmem:[#allocation2 + $0x67] sm:$0xff]  ;;  %v2542_v55 = vsel %vm11306_vm12, %v11311_v50, 0.0  ;;  %v3486_v28 = vsel %vm11258_vm10, %v11311_v50, 0.0  ;;  %v400_v57 = vadd.s32 96, %v11066_v15 }
  0xc5   : > { %v11322_v46 = vpack.c.bf16 %v2542_v55, %v11316_v54  ;;  %14053 = vst [vmem:[#allocation55_spill] sm:$0xff] %v14052_v6  ;;  %v11333_v23 = vpack.c.bf16 %v3486_v28, %v11316_v54  ;;  %v1025_v48 = vld [vmem:[#allocation2 + $0x68] sm:$0xff]  ;;  %v501_v55 = vand.u32 15, %v399_v36  ;;  %v1923_v2 = vsel %vm11327_vm13, %v11314_v1, 0.0 }
  0xc6   : > { %v2867_v10 = vsel %vm11279_vm11, %v11314_v1, 0.0  ;;  %v508_v36 = vand.u32 15, %v400_v57  ;;  %v411_v50 = vadd.s32 184, %v11066_v15 }
  0xc7   : > { %14050 = vst [vmem:[#allocation54_spill] sm:$0xff] %v11322_v46  ;;  %14054 = vst [vmem:[#allocation56_spill] sm:$0xff] %v11333_v23  ;;  %v320_v19 = vpop.trf.xlu0  ;;  %v1026_v44 = vld [vmem:[#allocation2 + $0x70] sm:$0xff]  ;;  %vm11354_vm14 = vcmp.le.s32.totalorder %v501_v55, 14 }
  0xc8   : > { %v11335_v3 = vld [vmem:[#allocation2 + $0x6f] sm:$0xff]  ;;  %368 = vst.msk [vmem:[#allocation2 + $0x80] sm:$0xff] %vm13869_vm0, %v320_v19  ;;  %v11344_v4 = vpack.c.bf16 %v1026_v44, %v1025_v48  ;;  %v14059_v53 = vsel %vm11354_vm14, 4294967295, %v14058_v53  ;;  %vm11375_vm15 = vcmp.ge.s32.totalorder %v508_v36, 1 }
  0xc9   : > { %v11347_v28 = vpack.c.bf16 %v11335_v3, %v1923_v2  ;;  %v11350_v23 = vpack.c.bf16 %v11335_v3, %v2867_v10  ;;  %14060 = vst [vmem:[#allocation60_spill] sm:$0xff] %v14059_v53  ;;  %v401_v2 = vadd.s32 104, %v11066_v15  ;;  %v11364_v44 = vld [vmem:[#allocation2 + $0x69] sm:$0xff]  ;;  %v14064_v10 = vmov 0 }
  0xca   : > { %14055 = vst [vmem:[#allocation57_spill] sm:$0xff] %v11344_v4  ;;  %9521 = vmatprep.mubr.msk.bf16.mxu0 %vm13869_vm0, %v11344_v4  ;;  %14062 = vst [vmem:[#allocation62_spill] sm:$0xff] %v11364_v44  ;;  %v14065_v10 = vsel %vm11375_vm15, 4294967295, %v14064_v10 }
  0xcb   : > { %14056 = vst [vmem:[#allocation58_spill] sm:$0xff] %v11347_v28  ;;  %14057 = vst [vmem:[#allocation59_spill] sm:$0xff] %v11350_v23  ;;  %v321_v14 = vpop.trf.xlu0  ;;  %v11358_v46 = vld [vmem:[#allocation2 + $0x71] sm:$0xff]  ;;  %v515_v4 = vand.u32 15, %v401_v2  ;;  %v529_v28 = vand.u32 15, %v403_v12 }
  0xcc   : > { %14061 = vst [vmem:[#allocation61_spill] sm:$0xff] %v11358_v46  ;;  %369 = vst.msk [vmem:[#allocation2 + $0x88] sm:$0xff] %vm13869_vm0, %v321_v14  ;;  %v11361_v19 = vld [vmem:[#allocation2 + $0x77] sm:$0xff]  ;;  %v2544_v48 = vsel %vm11354_vm14, %v11358_v46, 0.0  ;;  %v3488_v55 = vsel %vm11306_vm12, %v11358_v46, 0.0  ;;  %v402_v14 = vadd.s32 112, %v11066_v15 }
  0xcd   : > { %v11370_v57 = vpack.c.bf16 %v2544_v48, %v11364_v44  ;;  %14066 = vst [vmem:[#allocation64_spill] sm:$0xff] %v14065_v10  ;;  %v11381_v23 = vpack.c.bf16 %v3488_v55, %v11364_v44  ;;  %v1027_v29 = vld [vmem:[#allocation2 + $0x78] sm:$0xff]  ;;  %v1925_v48 = vsel %vm11375_vm15, %v11361_v19, 0.0  ;;  %v2869_v36 = vsel %vm11327_vm13, %v11361_v19, 0.0 }
  0xce   : > { %v522_v22 = vand.u32 15, %v402_v14  ;;  %vm11406_vm1 = vcmp.le.s32.totalorder %v515_v4, 14  ;;  %v404_v4 = vadd.s32 128, %v11066_v15 }
  0xcf   : > { %14063 = vst [vmem:[#allocation63_spill] sm:$0xff] %v11370_v57  ;;  %14067 = vst [vmem:[#allocation65_spill] sm:$0xff] %v11381_v23  ;;  %v322_v33 = vpop.trf.xlu0  ;;  %v1028_v62 = vld [vmem:[#allocation2 + $0x80] sm:$0xff] }
  0xd0   : > { %v11383_v41 = vld [vmem:[#allocation2 + $0x7f] sm:$0xff]  ;;  %370 = vst.msk [vmem:[#allocation2 + $0x90] sm:$0xff] %vm13869_vm0, %v322_v33  ;;  %v11392_v57 = vpack.c.bf16 %v1028_v62, %v1027_v29  ;;  %v14071_v62 = vmov 0  ;;  %vm11420_vm2 = vcmp.ge.s32.totalorder %v522_v22, 1  ;;  %v536_v12 = vand.u32 15, %v404_v4 }
  0xd1   : > { %v11395_v55 = vpack.c.bf16 %v11383_v41, %v1925_v48  ;;  %v11398_v23 = vpack.c.bf16 %v11383_v41, %v2869_v36  ;;  %v14072_v62 = vsel %vm11406_vm1, 4294967295, %v14071_v62  ;;  %v11412_v33 = vld [vmem:[#allocation2 + $0x79] sm:$0xff] }
  0xd2   : > { %14068 = vst [vmem:[#allocation66_spill] sm:$0xff] %v11392_v57  ;;  %9522 = vmatmul.mubr.msk.bf16.gmra.mrb[12].mxu0 %vm13869_vm0, %v11392_v57  ;;  %14073 = vst [vmem:[#allocation69_spill] sm:$0xff] %v14072_v62  ;;  %vm11471_vm12 = vcmp.ge.s32.totalorder %v536_v12, 1  ;;  %v409_v62 = vadd.s32 168, %v11066_v15 }
  0xd3   : > { %14069 = vst [vmem:[#allocation67_spill] sm:$0xff] %v11395_v55  ;;  %14070 = vst [vmem:[#allocation68_spill] sm:$0xff] %v11398_v23  ;;  %v339_v61 = vpop.trf.xlu0  ;;  %v11404_v51 = vld [vmem:[#allocation2 + $0x87] sm:$0xff] }
  0xd4   : > { %371 = vst.msk [vmem:[#allocation2 + $0x98] sm:$0xff] %vm13869_vm0, %v339_v61  ;;  %v11410_v29 = vld [vmem:[#allocation2 + $0x81] sm:$0xff]  ;;  %14075 = vst [vmem:[#allocation71_spill] sm:$0xff] %v11412_v33  ;;  %v14076_v61 = vmov 0  ;;  %v1927_v22 = vsel %vm11420_vm2, %v11404_v51, 0.0  ;;  %v2871_v40 = vsel %vm11375_vm15, %v11404_v51, 0.0 }
  0xd5   : > { %14074 = vst [vmem:[#allocation70_spill] sm:$0xff] %v11410_v29  ;;  %v2546_v2 = vsel %vm11406_vm1, %v11410_v29, 0.0  ;;  %v3490_v14 = vsel %vm11354_vm14, %v11410_v29, 0.0  ;;  %v14077_v61 = vsel %vm11420_vm2, 4294967295, %v14076_v61  ;;  %v1029_v57 = vld [vmem:[#allocation2 + $0x88] sm:$0xff]  ;;  %vm11450_vm14 = vcmp.le.s32.totalorder %v529_v28, 14 }
  0xd6   : > { %14078 = vst [vmem:[#allocation72_spill] sm:$0xff] %v14077_v61  ;;  %v11426_v48 = vpack.c.bf16 %v2546_v2, %v11412_v33  ;;  %v11429_v36 = vpack.c.bf16 %v3490_v14, %v11412_v33  ;;  %v14085_v63 = vsel %vm11450_vm14, 4294967295, %v14084_v63  ;;  %v407_v29 = vadd.s32 152, %v11066_v15 }
  0xd7   : > { %v340_v23 = vpop.trf.xlu0  ;;  %v1030_v30 = vld [vmem:[#allocation2 + $0x90] sm:$0xff]  ;;  %14086 = vst [vmem:[#allocation78_spill] sm:$0xff] %v14085_v63  ;;  %v14110_v63 = vmov 0 }
  0xd8   : > { %14079 = vst [vmem:[#allocation73_spill] sm:$0xff] %v11426_v48  ;;  %14080 = vst [vmem:[#allocation74_spill] sm:$0xff] %v11429_v36  ;;  %v11431_v55 = vld [vmem:[#allocation2 + $0x8f] sm:$0xff]  ;;  %v11440_v2 = vpack.c.bf16 %v1030_v30, %v1029_v57 }
  0xd9   : > { %372 = vst.msk [vmem:[#allocation2 + $0xa0] sm:$0xff] %vm13869_vm0, %v340_v23  ;;  %v11443_v14 = vpack.c.bf16 %v11431_v55, %v1927_v22  ;;  %v11446_v36 = vpack.c.bf16 %v11431_v55, %v2871_v40  ;;  %v11460_v57 = vld [vmem:[#allocation2 + $0x89] sm:$0xff]  ;;  %v14090_v22 = vmov 0 }
  0xda   : > { %14081 = vst [vmem:[#allocation75_spill] sm:$0xff] %v11440_v2  ;;  %9525 = vmatprep.mubr.msk.bf16.mxu0 %vm13869_vm0, %v11440_v2  ;;  %14088 = vst [vmem:[#allocation80_spill] sm:$0xff] %v11460_v57  ;;  %v14091_v22 = vsel %vm11471_vm12, 4294967295, %v14090_v22 }
  0xdb   : > { %14082 = vst [vmem:[#allocation76_spill] sm:$0xff] %v11443_v14  ;;  %14083 = vst [vmem:[#allocation77_spill] sm:$0xff] %v11446_v36  ;;  %v341_v48 = vpop.trf.xlu0  ;;  %v11455_v23 = vld [vmem:[#allocation2 + $0x91] sm:$0xff] }
  0xdc   : > { %14087 = vst [vmem:[#allocation79_spill] sm:$0xff] %v11455_v23  ;;  %373 = vst.msk [vmem:[#allocation2 + $0xa8] sm:$0xff] %vm13869_vm0, %v341_v48  ;;  %v11458_v30 = vld [vmem:[#allocation2 + $0x97] sm:$0xff]  ;;  %v2548_v40 = vsel %vm11450_vm14, %v11455_v23, 0.0  ;;  %v3492_v28 = vsel %vm11406_vm1, %v11455_v23, 0.0  ;;  %v406_v48 = vadd.s32 144, %v11066_v15 }
  0xdd   : > { %v11466_v4 = vpack.c.bf16 %v2548_v40, %v11460_v57  ;;  %14092 = vst [vmem:[#allocation82_spill] sm:$0xff] %v14091_v22  ;;  %v11477_v36 = vpack.c.bf16 %v3492_v28, %v11460_v57  ;;  %v1031_v14 = vld [vmem:[#allocation2 + $0x98] sm:$0xff]  ;;  %v543_v40 = vand.u32 15, %v405_v13  ;;  %v2873_v12 = vsel %vm11420_vm2, %v11458_v30, 0.0 }
  0xde   : > { %v550_v13 = vand.u32 15, %v406_v48  ;;  %v14097_v23 = vmov 0 }
  0xdf   : > { %14089 = vst [vmem:[#allocation81_spill] sm:$0xff] %v11466_v4  ;;  %14093 = vst [vmem:[#allocation83_spill] sm:$0xff] %v11477_v36  ;;  %v342_v2 = vpop.trf.xlu0  ;;  %v1929_v4 = vsel %vm11471_vm12, %v11458_v30, 0.0  ;;  %vm11498_vm1 = vcmp.le.s32.totalorder %v543_v40, 14 }
  0xe0   : > { %v1032_v52 = vld [vmem:[#allocation2 + $0xa0] sm:$0xff]  ;;  %374 = vst.msk [vmem:[#allocation2 + $0xb0] sm:$0xff] %vm13869_vm0, %v342_v2  ;;  %v14098_v23 = vsel %vm11498_vm1, 4294967295, %v14097_v23  ;;  %vm11519_vm10 = vcmp.ge.s32.totalorder %v550_v13, 1 }
  0xe1   : > { %v11479_v32 = vld [vmem:[#allocation2 + $0x9f] sm:$0xff]  ;;  %v11488_v33 = vpack.c.bf16 %v1032_v52, %v1031_v14  ;;  %14099 = vst [vmem:[#allocation87_spill] sm:$0xff] %v14098_v23  ;;  %v14123_v23 = vmov 0 }
  0xe2   : > { %v11491_v28 = vpack.c.bf16 %v11479_v32, %v1929_v4  ;;  %v11494_v36 = vpack.c.bf16 %v11479_v32, %v2873_v12  ;;  %v11508_v14 = vld [vmem:[#allocation2 + $0x99] sm:$0xff]  ;;  %v14103_v12 = vmov 0 }
  0xe3   : > { %14094 = vst [vmem:[#allocation84_spill] sm:$0xff] %v11488_v33  ;;  %9526 = vmatmul.mubr.msk.bf16.gmra.mrb[16].mxu0 %vm13869_vm0, %v11488_v33  ;;  %v343_v57 = vpop.trf.xlu0  ;;  %v11503_v2 = vld [vmem:[#allocation2 + $0xa1] sm:$0xff]  ;;  %14101 = vst [vmem:[#allocation89_spill] sm:$0xff] %v11508_v14  ;;  %v14104_v12 = vsel %vm11519_vm10, 4294967295, %v14103_v12 }
  0xe4   : > { %14095 = vst [vmem:[#allocation85_spill] sm:$0xff] %v11491_v28  ;;  %14096 = vst [vmem:[#allocation86_spill] sm:$0xff] %v11494_v36  ;;  %v11506_v52 = vld [vmem:[#allocation2 + $0xa7] sm:$0xff]  ;;  %v2550_v4 = vsel %vm11498_vm1, %v11503_v2, 0.0  ;;  %v3494_v40 = vsel %vm11450_vm14, %v11503_v2, 0.0 }
  0xe5   : > { %14100 = vst [vmem:[#allocation88_spill] sm:$0xff] %v11503_v2  ;;  %375 = vst.msk [vmem:[#allocation2 + $0xb8] sm:$0xff] %vm13869_vm0, %v343_v57  ;;  %v11514_v48 = vpack.c.bf16 %v2550_v4, %v11508_v14  ;;  %v408_v57 = vadd.s32 160, %v11066_v15  ;;  %v11525_v36 = vpack.c.bf16 %v3494_v40, %v11508_v14  ;;  %v1033_v28 = vld [vmem:[#allocation2 + $0xa8] sm:$0xff]  ;;  %v557_v4 = vand.u32 15, %v407_v29 }
  0xe6   : > { %14105 = vst [vmem:[#allocation91_spill] sm:$0xff] %v14104_v12  ;;  %v2875_v13 = vsel %vm11471_vm12, %v11506_v52, 0.0 }
  0xe7   : > { %14102 = vst [vmem:[#allocation90_spill] sm:$0xff] %v11514_v48  ;;  %14106 = vst [vmem:[#allocation92_spill] sm:$0xff] %v11525_v36  ;;  %v344_v33 = vpop.trf.xlu0  ;;  %v1034_v44 = vld [vmem:[#allocation2 + $0xb0] sm:$0xff]  ;;  %v1931_v48 = vsel %vm11519_vm10, %v11506_v52, 0.0  ;;  %v564_v29 = vand.u32 15, %v408_v57  ;;  %vm11546_vm14 = vcmp.le.s32.totalorder %v557_v4, 14 }
  0xe8   : > { %v11527_v54 = vld [vmem:[#allocation2 + $0xaf] sm:$0xff]  ;;  %376 = vst.msk [vmem:[#allocation2 + $0xc0] sm:$0xff] %vm13869_vm0, %v344_v33  ;;  %v11536_v2 = vpack.c.bf16 %v1034_v44, %v1033_v28  ;;  %v14111_v63 = vsel %vm11546_vm14, 4294967295, %v14110_v63 }
  0xe9   : > { %v11539_v40 = vpack.c.bf16 %v11527_v54, %v1931_v48  ;;  %v11542_v36 = vpack.c.bf16 %v11527_v54, %v2875_v13  ;;  %14112 = vst [vmem:[#allocation96_spill] sm:$0xff] %v14111_v63  ;;  %v11556_v28 = vld [vmem:[#allocation2 + $0xa9] sm:$0xff]  ;;  %vm11567_vm8 = vcmp.ge.s32.totalorder %v564_v29, 1  ;;  %v14116_v13 = vmov 0 }
  0xea   : > { %14107 = vst [vmem:[#allocation93_spill] sm:$0xff] %v11536_v2  ;;  %9529 = vmatprep.mubr.msk.bf16.mxu0 %vm13869_vm0, %v11536_v2  ;;  %14114 = vst [vmem:[#allocation98_spill] sm:$0xff] %v11556_v28  ;;  %v14117_v13 = vsel %vm11567_vm8, 4294967295, %v14116_v13  ;;  %v14136_v63 = vmov 0 }
  0xeb   : > { %14108 = vst [vmem:[#allocation94_spill] sm:$0xff] %v11539_v40  ;;  %14109 = vst [vmem:[#allocation95_spill] sm:$0xff] %v11542_v36  ;;  %v345_v14 = vpop.trf.xlu0 }
  0xec   : > { %v11551_v33 = vld [vmem:[#allocation2 + $0xb1] sm:$0xff]  ;;  %377 = vst.msk [vmem:[#allocation2 + $0xc8] sm:$0xff] %vm13869_vm0, %v345_v14  ;;  %14118 = vst [vmem:[#allocation100_spill] sm:$0xff] %v14117_v13  ;;  %v410_v14 = vadd.s32 176, %v11066_v15 }
  0xed   : > { %14113 = vst [vmem:[#allocation97_spill] sm:$0xff] %v11551_v33  ;;  %v11554_v44 = vld [vmem:[#allocation2 + $0xb7] sm:$0xff]  ;;  %v2552_v48 = vsel %vm11546_vm14, %v11551_v33, 0.0  ;;  %v3496_v4 = vsel %vm11498_vm1, %v11551_v33, 0.0 }
  0xee   : > { %v11562_v57 = vpack.c.bf16 %v2552_v48, %v11556_v28  ;;  %v11573_v36 = vpack.c.bf16 %v3496_v4, %v11556_v28  ;;  %v1035_v40 = vld [vmem:[#allocation2 + $0xb8] sm:$0xff]  ;;  %v571_v48 = vand.u32 15, %v409_v62  ;;  %v2877_v29 = vsel %vm11519_vm10, %v11554_v44, 0.0 }
  0xef   : > { %v346_v2 = vpop.trf.xlu0  ;;  %v1036_v46 = vld [vmem:[#allocation2 + $0xc0] sm:$0xff]  ;;  %v578_v62 = vand.u32 15, %v410_v14 }
  0xf0   : > { %14115 = vst [vmem:[#allocation99_spill] sm:$0xff] %v11562_v57  ;;  %14119 = vst [vmem:[#allocation101_spill] sm:$0xff] %v11573_v36  ;;  %v11575_v53 = vld [vmem:[#allocation2 + $0xbf] sm:$0xff]  ;;  %v1933_v57 = vsel %vm11567_vm8, %v11554_v44, 0.0  ;;  %v11584_v33 = vpack.c.bf16 %v1036_v46, %v1035_v40  ;;  %vm11594_vm1 = vcmp.le.s32.totalorder %v571_v48, 14 }
  0xf1   : > { %378 = vst.msk [vmem:[#allocation2 + $0xd0] sm:$0xff] %vm13869_vm0, %v346_v2  ;;  %v11587_v4 = vpack.c.bf16 %v11575_v53, %v1933_v57  ;;  %v11590_v36 = vpack.c.bf16 %v11575_v53, %v2877_v29  ;;  %v14124_v23 = vsel %vm11594_vm1, 4294967295, %v14123_v23  ;;  %v11604_v40 = vld [vmem:[#allocation2 + $0xb9] sm:$0xff]  ;;  %vm11615_vm6 = vcmp.ge.s32.totalorder %v578_v62, 1 }
  0xf2   : > { %14120 = vst [vmem:[#allocation102_spill] sm:$0xff] %v11584_v33  ;;  %9530 = vmatmul.mubr.msk.bf16.gmra.mrb[20].mxu0 %vm13869_vm0, %v11584_v33  ;;  %14125 = vst [vmem:[#allocation105_spill] sm:$0xff] %v14124_v23  ;;  %v14129_v29 = vmov 0  ;;  %v14149_v23 = vmov 0 }
  0xf3   : > { %14121 = vst [vmem:[#allocation103_spill] sm:$0xff] %v11587_v4  ;;  %14122 = vst [vmem:[#allocation104_spill] sm:$0xff] %v11590_v36  ;;  %v347_v28 = vpop.trf.xlu0  ;;  %v11599_v2 = vld [vmem:[#allocation2 + $0xc1] sm:$0xff]  ;;  %v14130_v29 = vsel %vm11615_vm6, 4294967295, %v14129_v29 }
  0xf4   : > { %14126 = vst [vmem:[#allocation106_spill] sm:$0xff] %v11599_v2  ;;  %379 = vst.msk [vmem:[#allocation2 + $0xd8] sm:$0xff] %vm13869_vm0, %v347_v28  ;;  %v11602_v46 = vld [vmem:[#allocation2 + $0xc7] sm:$0xff]  ;;  %v2554_v57 = vsel %vm11594_vm1, %v11599_v2, 0.0  ;;  %v3498_v48 = vsel %vm11546_vm14, %v11599_v2, 0.0  ;;  %v412_v28 = vadd.s32 192, %v11066_v15 }
  0xf5   : > { %14127 = vst [vmem:[#allocation107_spill] sm:$0xff] %v11604_v40  ;;  %v11610_v14 = vpack.c.bf16 %v2554_v57, %v11604_v40  ;;  %14131 = vst [vmem:[#allocation109_spill] sm:$0xff] %v14130_v29  ;;  %v11621_v36 = vpack.c.bf16 %v3498_v48, %v11604_v40  ;;  %v1037_v4 = vld [vmem:[#allocation2 + $0xc8] sm:$0xff]  ;;  %v585_v57 = vand.u32 15, %v411_v50  ;;  %v2879_v62 = vsel %vm11567_vm8, %v11602_v46, 0.0 }
  0xf6   : > { %v592_v50 = vand.u32 15, %v412_v28 }
  0xf7   : > { %14128 = vst [vmem:[#allocation108_spill] sm:$0xff] %v11610_v14  ;;  %14132 = vst [vmem:[#allocation110_spill] sm:$0xff] %v11621_v36  ;;  %v348_v33 = vpop.trf.xlu0  ;;  %v1935_v14 = vsel %vm11615_vm6, %v11602_v46, 0.0  ;;  %vm11642_vm14 = vcmp.le.s32.totalorder %v585_v57, 14 }
  0xf8   : > { %v1038_v17 = vld [vmem:[#allocation2 + $0xd0] sm:$0xff]  ;;  %380 = vst.msk [vmem:[#allocation2 + $0xe0] sm:$0xff] %vm13869_vm0, %v348_v33  ;;  %v14137_v63 = vsel %vm11642_vm14, 4294967295, %v14136_v63  ;;  %vm11663_vm4 = vcmp.ge.s32.totalorder %v592_v50, 1 }
  0xf9   : > { %v11623_v26 = vld [vmem:[#allocation2 + $0xcf] sm:$0xff]  ;;  %v11632_v2 = vpack.c.bf16 %v1038_v17, %v1037_v4  ;;  %14138 = vst [vmem:[#allocation114_spill] sm:$0xff] %v14137_v63 }
  0xfa   : > { %v11635_v48 = vpack.c.bf16 %v11623_v26, %v1935_v14  ;;  %v11638_v36 = vpack.c.bf16 %v11623_v26, %v2879_v62  ;;  %v11652_v4 = vld [vmem:[#allocation2 + $0xc9] sm:$0xff]  ;;  %v14142_v62 = vmov 0 }
  0xfb   : > { %14133 = vst [vmem:[#allocation111_spill] sm:$0xff] %v11632_v2  ;;  %9533 = vmatprep.mubr.msk.bf16.mxu0 %vm13869_vm0, %v11632_v2  ;;  %v349_v40 = vpop.trf.xlu0  ;;  %v11647_v33 = vld [vmem:[#allocation2 + $0xd1] sm:$0xff]  ;;  %14140 = vst [vmem:[#allocation116_spill] sm:$0xff] %v11652_v4  ;;  %v14143_v62 = vsel %vm11663_vm4, 4294967295, %v14142_v62 }
  0xfc   : > { %14134 = vst [vmem:[#allocation112_spill] sm:$0xff] %v11635_v48  ;;  %14135 = vst [vmem:[#allocation113_spill] sm:$0xff] %v11638_v36  ;;  %v11650_v17 = vld [vmem:[#allocation2 + $0xd7] sm:$0xff]  ;;  %v2556_v14 = vsel %vm11642_vm14, %v11647_v33, 0.0  ;;  %v3500_v57 = vsel %vm11594_vm1, %v11647_v33, 0.0 }
  0xfd   : > { %14139 = vst [vmem:[#allocation115_spill] sm:$0xff] %v11647_v33  ;;  %381 = vst.msk [vmem:[#allocation2 + $0xe8] sm:$0xff] %vm13869_vm0, %v349_v40  ;;  %v11658_v28 = vpack.c.bf16 %v2556_v14, %v11652_v4  ;;  %v414_v40 = vadd.s32 208, %v11066_v15  ;;  %v11669_v36 = vpack.c.bf16 %v3500_v57, %v11652_v4  ;;  %v1039_v48 = vld [vmem:[#allocation2 + $0xd8] sm:$0xff]  ;;  %v599_v14 = vand.u32 15, %v413_v43 }
  0xfe   : > { %14144 = vst [vmem:[#allocation118_spill] sm:$0xff] %v14143_v62  ;;  %v2881_v50 = vsel %vm11615_vm6, %v11650_v17, 0.0 }
  0xff   : > { %14141 = vst [vmem:[#allocation117_spill] sm:$0xff] %v11658_v28  ;;  %14145 = vst [vmem:[#allocation119_spill] sm:$0xff] %v11669_v36  ;;  %v350_v2 = vpop.trf.xlu0  ;;  %v1040_v11 = vld [vmem:[#allocation2 + $0xe0] sm:$0xff]  ;;  %v1937_v28 = vsel %vm11663_vm4, %v11650_v17, 0.0  ;;  %v606_v43 = vand.u32 15, %v414_v40  ;;  %vm11690_vm1 = vcmp.le.s32.totalorder %v599_v14, 14 }
 0x100   : > { %v11671_v9 = vld [vmem:[#allocation2 + $0xdf] sm:$0xff]  ;;  %382 = vst.msk [vmem:[#allocation2 + $0xf0] sm:$0xff] %vm13869_vm0, %v350_v2  ;;  %v11680_v33 = vpack.c.bf16 %v1040_v11, %v1039_v48  ;;  %v14150_v23 = vsel %vm11690_vm1, 4294967295, %v14149_v23 }
 0x101   : > { %v11683_v57 = vpack.c.bf16 %v11671_v9, %v1937_v28  ;;  %v11686_v36 = vpack.c.bf16 %v11671_v9, %v2881_v50  ;;  %14151 = vst [vmem:[#allocation123_spill] sm:$0xff] %v14150_v23  ;;  %v11700_v48 = vld [vmem:[#allocation2 + $0xd9] sm:$0xff]  ;;  %vm11711_vm6 = vcmp.ge.s32.totalorder %v606_v43, 1  ;;  %v14155_v50 = vmov 0 }
 0x102   : > { %14146 = vst [vmem:[#allocation120_spill] sm:$0xff] %v11680_v33  ;;  %9534 = vmatmul.mubr.msk.bf16.gmra.mrb[24].mxu0 %vm13869_vm0, %v11680_v33  ;;  %14153 = vst [vmem:[#allocation125_spill] sm:$0xff] %v11700_v48  ;;  %v14156_v50 = vsel %vm11711_vm6, 4294967295, %v14155_v50 }
 0x103   : > { %14147 = vst [vmem:[#allocation121_spill] sm:$0xff] %v11683_v57  ;;  %14148 = vst [vmem:[#allocation122_spill] sm:$0xff] %v11686_v36  ;;  %v351_v4 = vpop.trf.xlu0 }
 0x104   : > { %v11695_v2 = vld [vmem:[#allocation2 + $0xe1] sm:$0xff]  ;;  %383 = vst.msk [vmem:[#allocation2 + $0xf8] sm:$0xff] %vm13869_vm0, %v351_v4  ;;  %14157 = vst [vmem:[#allocation127_spill] sm:$0xff] %v14156_v50  ;;  %v416_v4 = vadd.s32 224, %v11066_v15 }
 0x105   : > { %14152 = vst [vmem:[#allocation124_spill] sm:$0xff] %v11695_v2  ;;  %v11698_v11 = vld [vmem:[#allocation2 + $0xe7] sm:$0xff]  ;;  %v2558_v28 = vsel %vm11690_vm1, %v11695_v2, 0.0  ;;  %v3502_v14 = vsel %vm11642_vm14, %v11695_v2, 0.0 }
 0x106   : > { %v11706_v40 = vpack.c.bf16 %v2558_v28, %v11700_v48  ;;  %v11717_v36 = vpack.c.bf16 %v3502_v14, %v11700_v48  ;;  %v1041_v57 = vld [vmem:[#allocation2 + $0xe8] sm:$0xff]  ;;  %v613_v28 = vand.u32 15, %v415_v24  ;;  %v2883_v43 = vsel %vm11663_vm4, %v11698_v11, 0.0 }
 0x107   : > { %v352_v33 = vpop.trf.xlu0  ;;  %v1042_v60 = vld [vmem:[#allocation2 + $0xf0] sm:$0xff]  ;;  %v868_v48 = vld [vmem:[#allocation2 + $0x7] sm:$0xff]  ;;  %v620_v24 = vand.u32 15, %v416_v4 }
 0x108   : > { %14154 = vst [vmem:[#allocation126_spill] sm:$0xff] %v11706_v40  ;;  %14158 = vst [vmem:[#allocation128_spill] sm:$0xff] %v11717_v36  ;;  %v11719_v39 = vld [vmem:[#allocation2 + $0xef] sm:$0xff]  ;;  %v1939_v40 = vsel %vm11711_vm6, %v11698_v11, 0.0  ;;  %v11728_v2 = vpack.c.bf16 %v1042_v60, %v1041_v57  ;;  %vm11738_vm14 = vcmp.le.s32.totalorder %v613_v28, 14 }
 0x109   : > { %384 = vst.msk [vmem:[#allocation2 + $0x100] sm:$0xff] %vm13869_vm0, %v352_v33  ;;  %v11731_v14 = vpack.c.bf16 %v11719_v39, %v1939_v40  ;;  %v11734_v36 = vpack.c.bf16 %v11719_v39, %v2883_v43  ;;  %v14163_v18 = vsel %vm11738_vm14, 4294967295, %v14162_v18  ;;  %v417_v33 = vadd.s32 232, %v11066_v15  ;;  %v869_v57 = vld [vmem:[#allocation2 + $0xf] sm:$0xff] }
 0x10a   : > { %14159 = vst [vmem:[#allocation129_spill] sm:$0xff] %v11728_v2  ;;  %9537 = vmatprep.mubr.msk.bf16.mxu0 %vm13869_vm0, %v11728_v2  ;;  %14164 = vst [vmem:[#allocation132_spill] sm:$0xff] %v14163_v18  ;;  %v964_v40 = vsel %vm11074_vm3, %v868_v48, 0.0  ;;  %vm14170_vm3 = vcmask 23552  }
 0x10b   : > { %14160 = vst [vmem:[#allocation130_spill] sm:$0xff] %v11731_v14  ;;  %14161 = vst [vmem:[#allocation131_spill] sm:$0xff] %v11734_v36  ;;  %v353_v63 = vpop.trf.xlu0  ;;  %v11743_v60 = vld [vmem:[#allocation2 + $0xf1] sm:$0xff]  ;;  %v11750_v36 = vld [vmem:[#allocation2 + $0xe9] sm:$0xff]  ;;  %v996_v56 = vpack.c.bf16 %v869_v57, %v964_v40  ;;  %v627_v35 = vand.u32 15, %v417_v33  ;;  %v14176_v33 = vmov 0 }
 0x10c   : > { %385 = vst.msk [vmem:[#allocation2 + $0x108] sm:$0xff] %vm13869_vm0, %v353_v63  ;;  %v11748_v43 = vld [vmem:[#allocation2 + $0xf7] sm:$0xff]  ;;  %v2560_v4 = vsel %vm11738_vm14, %v11743_v60, 0.0  ;;  %v3504_v2 = vsel %vm11690_vm1, %v11743_v60, 0.0  ;;  %vm11761_vm0 = vcmp.ge.s32.totalorder %v620_v24, 1  ;;  %v14166_v63 = vmov 0  ;;  %vm14174_vm1 = vmmov %vm14170_vm3 }
 0x10d   : > { %v11756_v28 = vpack.c.bf16 %v2560_v4, %v11750_v36  ;;  %v14167_v63 = vsel %vm11761_vm0, 4294967295, %v14166_v63  ;;  %v11766_v48 = vpack.c.bf16 %v3504_v2, %v11750_v36  ;;  %v1043_v14 = vld [vmem:[#allocation2 + $0xf8] sm:$0xff]  ;;  %v1941_v4 = vsel %vm11761_vm0, %v11748_v43, 0.0  ;;  %vm14175_vm4 = vmmov %vm14174_vm1 }
 0x10e   : > { %14168 = vst [vmem:[#allocation134_spill] sm:$0xff] %v14167_v63  ;;  %v2885_v24 = vsel %vm11711_vm6, %v11748_v43, 0.0  ;;  %vm11788_vm8 = vcmp.le.s32.totalorder %v627_v35, 14 }
 0x10f   : > { %14165 = vst [vmem:[#allocation133_spill] sm:$0xff] %v11756_v28  ;;  %14169 = vst [vmem:[#allocation135_spill] sm:$0xff] %v11766_v48  ;;  %v354_v20 = vpop.trf.xlu0  ;;  %v14177_v33 = vsel %vm11788_vm8, 4294967295, %v14176_v33  ;;  %v966_v48 = vsel %vm11125_vm5, %v11078_v21, 0.0 }
 0x110   : > { %v1044_v58 = vld [vmem:[#allocation2 + $0x100] sm:$0xff]  ;;  %386 = vst.msk [vmem:[#allocation2 + $0x110] sm:$0xff] %vm14170_vm3, %v354_v20  ;;  %14178 = vst [vmem:[#allocation139_spill] sm:$0xff] %v14177_v33 }
 0x111   : > { %v11768_v37 = vld [vmem:[#allocation2 + $0xff] sm:$0xff]  ;;  %v11777_v28 = vpack.c.bf16 %v1044_v58, %v1043_v14  ;;  %vm14182_vm3 = vmmov %vm14174_vm1 }
 0x112   : > { %v11780_v2 = vpack.c.bf16 %v11768_v37, %v1941_v4  ;;  %v11783_v57 = vpack.c.bf16 %v11768_v37, %v2885_v24  ;;  %v11794_v20 = vld [vmem:[#allocation2 + $0xf9] sm:$0xff]  ;;  %v8613_v4 = vld [vmem:[%s13764_s1 + $0x6] sm:$0x3] }
 0x113   : > { %14171 = vst [vmem:[#allocation136_spill] sm:$0xff] %v11777_v28  ;;  %9538 = vmatmul.mubr.msk.bf16.gmra.mrb[28].mxu0 %vm14174_vm1, %v11777_v28  ;;  %v11792_v40 = vld [vmem:[#allocation2 + $0x101] sm:$0xff] }
 0x114   : > { %14172 = vst [vmem:[#allocation137_spill] sm:$0xff] %v11780_v2  ;;  %14173 = vst [vmem:[#allocation138_spill] sm:$0xff] %v11783_v57  ;;  %9543 = vmatprep.mubr.msk.bf16.mxu0 %vm14175_vm4, %v996_v56  ;;  %v11796_v58 = vld [vmem:[#allocation2 + $0x107] sm:$0xff]  ;;  %v2562_v14 = vsel %vm11788_vm8, %v11792_v40, 0.0  ;;  %v3506_v35 = vsel %vm11738_vm14, %v11792_v40, 0.0  ;;  %v968_v2 = vsel %vm11176_vm7, %v11115_v38, 0.0 }
 0x115   : > { %14179 = vst [vmem:[#allocation140_spill] sm:$0xff] %v11796_v58  ;;  %v11805_v56 = vpack.c.bf16 %v2562_v14, %v11794_v20  ;;  %v11811_v24 = vpack.c.bf16 %v3506_v35, %v11794_v20  ;;  %v2887_v14 = vsel %vm11761_vm0, %v11796_v58, 0.0  ;;  %v11828_v35 = vand.u32 %v8613_v4, %v11057_v5  ;;  %vm14183_vm4 = vmmov %vm14174_vm1 }
 0x116   : > { %v998_v42 = vpack.c.bf16 %v11132_v47, %v968_v2  ;;  %v970_v38 = vsel %vm11230_vm9, %v11163_v59, 0.0  ;;  %v976_v59 = vsel %vm11375_vm15, %v11314_v1, 0.0  ;;  %v14197_v4 = vmov 0 }
 0x117   : > { %14180 = vst [vmem:[#allocation141_spill] sm:$0xff] %v11805_v56  ;;  %14181 = vst [vmem:[#allocation142_spill] sm:$0xff] %v11811_v24  ;;  %v11816_v57 = vld [vmem:[#allocation2 + $0x10f] sm:$0xff]  ;;  %v997_v56 = vpack.c.bf16 %v11086_v27, %v966_v48  ;;  %v999_v47 = vpack.c.bf16 %v11186_v8, %v970_v38  ;;  %v972_v48 = vsel %vm11279_vm11, %v11217_v25, 0.0  ;;  %v1002_v8 = vpack.c.bf16 %v11335_v3, %v976_v59  ;;  %v14204_v38 = vld [vmem:[#allocation13_spill] sm:$0xff] }
 0x118   : > { %v11818_v28 = vld [vmem:[#allocation2 + $0x109] sm:$0xff]  ;;  %v11830_v24 = vld [vmem:[#allocation2 + $0x111] sm:$0xff]  ;;  %v11833_v21 = vpack.c.bf16 %v11816_v57, %v2887_v14  ;;  %v1000_v2 = vpack.c.bf16 %v11238_v49, %v972_v48  ;;  %vm14186_vm11 = vmmov %vm14174_vm1  ;;  %v978_v25 = vsel %vm11420_vm2, %v11361_v19, 0.0  ;;  %v982_v3 = vsel %vm11519_vm10, %v11458_v30, 0.0 }
 0x119   : > { %v3508_v58 = vsel %vm11788_vm8, %v11830_v24, 0.0  ;;  %v1003_v49 = vpack.c.bf16 %v11383_v41, %v978_v25  ;;  %v1005_v1 = vpack.c.bf16 %v11479_v32, %v982_v3  ;;  %v14211_v25 = vld [vmem:[#allocation24_spill] sm:$0xff] }
 0x11a   : > { %v11841_v27 = vpack.c.bf16 %v3508_v58, %v11818_v28 }
 0x11b   : > { %9544 = vmatmul.mubr.msk.bf16.vlgmr.msra.gmra.mrb[0].mxu0 %vm14182_vm3, %v997_v56  ;;  %vm14184_vm3 = vmmov %vm14174_vm1  ;;  %v1491_v56 = vld [vmem:[#allocation2 + $0x9] sm:$0xff] }
 0x11c   : > { %9576 = vmatpush3.bf16.msra.mxu0 %v11096_v31  ;;  %9547 = vmatprep.mubr.msk.bf16.mxu0 %vm14183_vm4, %v998_v42  ;;  %v974_v31 = vsel %vm11327_vm13, %v11266_v16, 0.0  ;;  %vm14185_vm4 = vmmov %vm14174_vm1  ;;  %v980_v16 = vsel %vm11471_vm12, %v11404_v51, 0.0 }
 0x11d   : > { %9609 = vmatprep.subr.bf16.mxu0 %v11828_v35  ;;  %v1001_v42 = vpack.c.bf16 %v11287_v7, %v974_v31  ;;  %v1004_v7 = vpack.c.bf16 %v11431_v55, %v980_v16  ;;  %vm14190_vm12 = vmmov %vm14174_vm1  ;;  %v14207_v31 = vld [vmem:[#allocation23_spill] sm:$0xff]  ;;  %v14213_v16 = vld [vmem:[#allocation34_spill] sm:$0xff] }
 0x123   : > { %9548 = vmatmul.mubr.msk.bf16.gmra.mrb[4].mxu0 %vm14174_vm1, %v999_v47  ;;  %v14205_v47 = vld [vmem:[#allocation21_spill] sm:$0xff] }
 0x124   : > { %9551 = vmatprep.mubr.msk.bf16.mxu0 %vm14184_vm3, %v1000_v2  ;;  %vm14187_vm3 = vmmov %vm14174_vm1  ;;  %v8630_v2 = vld [vmem:[%s13764_s1 + $0x8] sm:$0x3] }
 0x12b   : > { %9552 = vmatmul.mubr.msk.bf16.gmra.mrb[8].mxu0 %vm14185_vm4, %v1001_v42  ;;  %vm14189_vm4 = vmmov %vm14174_vm1  ;;  %v14208_v42 = vld [vmem:[#allocation32_spill] sm:$0xff] }
 0x12c   : > { %9555 = vmatprep.mubr.msk.bf16.mxu0 %vm14186_vm11, %v1002_v8  ;;  %vm14188_vm11 = vnez %v14117_v13  ;;  %vm14193_vm10 = vmmov %vm14189_vm4 }
 0x12d   : > { %v984_v41 = vsel %vm14188_vm11, %v11506_v52, 0.0  ;;  %vm14194_vm11 = vmmov %vm14189_vm4  ;;  %v990_v52 = vsel %vm11711_vm6, %v11650_v17, 0.0  ;;  %v14200_v17 = vld [vmem:[#allocation11_spill] sm:$0xff] }
 0x12e   : > { %v1006_v19 = vpack.c.bf16 %v11527_v54, %v984_v41  ;;  %v418_v54 = vadd.s32 240, %v11066_v15  ;;  %v14217_v41 = vld [vmem:[#allocation51_spill] sm:$0xff] }
 0x130   : > { %v634_v58 = vand.u32 15, %v418_v54  ;;  %v14223_v54 = vld [vmem:[#allocation60_spill] sm:$0xff] }
 0x133   : > { %9556 = vmatmul.mubr.msk.bf16.gmra.mrb[12].mxu0 %vm14174_vm1, %v1003_v49  ;;  %vm14191_vm1 = vnez %v14130_v29 }
 0x134   : > { %9559 = vmatprep.mubr.msk.bf16.mxu0 %vm14187_vm3, %v1004_v7  ;;  %v986_v51 = vsel %vm14191_vm1, %v11554_v44, 0.0  ;;  %vm14192_vm3 = vnez %v14143_v62  ;;  %v1009_v44 = vpack.c.bf16 %v11671_v9, %v990_v52  ;;  %v14214_v7 = vld [vmem:[#allocation42_spill] sm:$0xff] }
 0x135   : > { %v1007_v55 = vpack.c.bf16 %v11575_v53, %v986_v51  ;;  %v988_v32 = vsel %vm14192_vm3, %v11602_v46, 0.0  ;;  %v992_v53 = vsel %vm11761_vm0, %v11698_v11, 0.0  ;;  %v14219_v51 = vld [vmem:[#allocation35_spill] sm:$0xff] }
 0x136   : > { %v1008_v30 = vpack.c.bf16 %v11623_v26, %v988_v32  ;;  %v1010_v46 = vpack.c.bf16 %v11719_v39, %v992_v53  ;;  %v1492_v26 = vld [vmem:[#allocation2 + $0x11] sm:$0xff] }
 0x137   : > { %v14220_v32 = vld [vmem:[#allocation44_spill] sm:$0xff]  ;;  %v14226_v53 = vld [vmem:[#allocation69_spill] sm:$0xff] }
 0x138   : > { %vm14227_vm3 = vnez %v14226_v53 }
 0x13b   : > { %9560 = vmatmul.mubr.msk.bf16.gmra.mrb[16].mxu0 %vm14189_vm4, %v1005_v1  ;;  %v14216_v1 = vld [vmem:[#allocation43_spill] sm:$0xff] }
 0x13c   : > { %9563 = vmatprep.mubr.msk.bf16.mxu0 %vm14190_vm12, %v1006_v19  ;;  %vm14195_vm12 = vmmov %vm14189_vm4 }
 0x143   : > { %9564 = vmatmul.mubr.msk.bf16.gmra.mrb[20].mxu0 %vm14193_vm10, %v1007_v55  ;;  %vm14196_vm10 = vmmov %vm14189_vm4  ;;  %vm14201_vm4 = vnez %v14200_v17 }
 0x144   : > { %9567 = vmatprep.mubr.msk.bf16.mxu0 %vm14194_vm11, %v1008_v30  ;;  %vm11907_vm11 = vcmp.ge.s32.totalorder %v634_v58, 1  ;;  %v1588_v9 = vsel %vm14201_vm4, %v1492_v26, 0.0  ;;  %vm14202_vm0 = vmmov %vm14196_vm10  ;;  %vm14209_vm4 = vnez %v14208_v42 }
 0x145   : > { %v14198_v4 = vsel %vm11907_vm11, 4294967295, %v14197_v4  ;;  %v994_v11 = vsel %vm11907_vm11, %v11748_v43, 0.0  ;;  %v1619_v39 = vpack.c.bf16 %v1588_v9, %v1491_v56  ;;  %v1592_v59 = vsel %vm14209_vm4, %v14207_v31, 0.0  ;;  %v14210_v43 = vld [vmem:[#allocation14_spill] sm:$0xff]  ;;  %vm14221_vm6 = vmmov %vm14202_vm0  ;;  %v14238_v31 = vld [vmem:[#allocation71_spill] sm:$0xff] }
 0x146   : > { %14199 = vst [vmem:[#allocation143_spill] sm:$0xff] %v14198_v4  ;;  %v1011_v14 = vpack.c.bf16 %v11768_v37, %v994_v11  ;;  %v2306_v37 = vand.u32 %v8630_v2, %v11057_v5  ;;  %v1621_v49 = vpack.c.bf16 %v1592_v59, %v14211_v25  ;;  %vm14218_vm4 = vnez %v14217_v41  ;;  %v14229_v56 = vld [vmem:[#allocation62_spill] sm:$0xff]  ;;  %v14242_v25 = vld [vmem:[#allocation88_spill] sm:$0xff] }
 0x147   : > { %v1596_v19 = vsel %vm14218_vm4, %v14216_v1, 0.0  ;;  %vm14230_vm4 = vmmov %vm14202_vm0  ;;  %v14232_v11 = vld [vmem:[#allocation70_spill] sm:$0xff]  ;;  %v14246_v1 = vld [vmem:[#allocation105_spill] sm:$0xff] }
 0x148   : > { %v1623_v30 = vpack.c.bf16 %v1596_v19, %v14220_v32  ;;  %v14249_v32 = vld [vmem:[#allocation98_spill] sm:$0xff] }
 0x14b   : > { %9568 = vmatmul.mubr.msk.bf16.gmra.mrb[24].mxu0 %vm14195_vm12, %v1009_v44  ;;  %vm14203_vm12 = vmmov %vm14202_vm0  ;;  %v14225_v44 = vld [vmem:[#allocation61_spill] sm:$0xff] }
 0x14c   : > { %9571 = vmatprep.mubr.msk.bf16.mxu0 %vm14196_vm10, %v1010_v46  ;;  %vm14206_vm10 = vnez %v14205_v47  ;;  %v1600_v58 = vsel %vm14227_vm3, %v14225_v44, 0.0  ;;  %v14228_v46 = vld [vmem:[#allocation53_spill] sm:$0xff]  ;;  %vm14240_vm3 = vmmov %vm14230_vm4 }
 0x14d   : > { %v1590_v48 = vsel %vm14206_vm10, %v14204_v38, 0.0  ;;  %vm14215_vm10 = vnez %v14214_v7  ;;  %v1625_v9 = vpack.c.bf16 %v1600_v58, %v14229_v56  ;;  %v14235_v38 = vld [vmem:[#allocation79_spill] sm:$0xff] }
 0x14e   : > { %v1620_v8 = vpack.c.bf16 %v1590_v48, %v14210_v43  ;;  %v1594_v3 = vsel %vm14215_vm10, %v14213_v16, 0.0  ;;  %vm14231_vm10 = vmmov %vm14202_vm0  ;;  %v14236_v48 = vld [vmem:[#allocation87_spill] sm:$0xff]  ;;  %v14239_v43 = vld [vmem:[#allocation80_spill] sm:$0xff] }
 0x14f   : > { %v1622_v55 = vpack.c.bf16 %v1594_v3, %v14219_v51  ;;  %v14245_v3 = vld [vmem:[#allocation97_spill] sm:$0xff]  ;;  %v14255_v58 = vld [vmem:[#allocation115_spill] sm:$0xff] }
 0x150   : > { %v14248_v51 = vld [vmem:[#allocation89_spill] sm:$0xff] }
 0x153   : > { %9572 = vmatmul.mubr.msk.bf16.gmra.mrb[28].mxu0 %vm14202_vm0, %v1011_v14  ;;  %v14233_v14 = vld [vmem:[#allocation78_spill] sm:$0xff] }
 0x154   : > { %9577 = vmatprep.mubr.msk.bf16.mxu0 %vm14203_vm12, %v1619_v39  ;;  %vm14212_vm12 = vmmov %vm14202_vm0 }
 0x15b   : > { %9578 = vmatmul.mubr.msk.bf16.vlgmr.msra.gmra.mrb[0].mxu0 %vm14202_vm0, %v1620_v8 }
 0x15c   : > { %9610 = vmatpush3.bf16.msra.mxu0 %v11828_v35  ;;  %9581 = vmatprep.mubr.msk.bf16.mxu0 %vm14212_vm12, %v1621_v49  ;;  %v14222_v35 = vld [vmem:[#allocation52_spill] sm:$0xff]  ;;  %vm14224_vm12 = vnez %v14223_v54 }
 0x15d   : > { %9643 = vmatprep.subr.bf16.mxu0 %v2306_v37  ;;  %v1598_v52 = vsel %vm14224_vm12, %v14222_v35, 0.0  ;;  %vm14241_vm12 = vmmov %vm14240_vm3  ;;  %v14243_v49 = vld [vmem:[#allocation96_spill] sm:$0xff]  ;;  %v14252_v35 = vld [vmem:[#allocation106_spill] sm:$0xff] }
 0x15e   : > { %v1624_v26 = vpack.c.bf16 %v1598_v52, %v14228_v46  ;;  %v14253_v52 = vld [vmem:[#allocation114_spill] sm:$0xff] }
 0x163   : > { %9582 = vmatmul.mubr.msk.bf16.gmra.mrb[4].mxu0 %vm14221_vm6, %v1622_v55  ;;  %vm14234_vm6 = vnez %v14233_v14 }
 0x164   : > { %9585 = vmatprep.mubr.msk.bf16.mxu0 %vm14202_vm0, %v1623_v30  ;;  %v1602_v39 = vsel %vm14234_vm6, %v14232_v11, 0.0  ;;  %vm14237_vm0 = vnez %v14236_v48 }
 0x165   : > { %v1604_v2 = vsel %vm14237_vm0, %v14235_v38, 0.0  ;;  %v1626_v59 = vpack.c.bf16 %v1602_v39, %v14238_v31  ;;  %vm14250_vm0 = vmmov %vm14240_vm3  ;;  %v419_v39 = vadd.s32 248, %v11066_v15  ;;  %v14261_v38 = vld [vmem:[#allocation124_spill] sm:$0xff]  ;;  %v1616_v31 = vsel %vm11788_vm8, %v11743_v60, 0.0  ;;  %v14268_v60 = vld [vmem:[#allocation10_spill] sm:$0xff] }
 0x166   : > { %v1627_v8 = vpack.c.bf16 %v1604_v2, %v14239_v43  ;;  %vm14251_vm6 = vmmov %vm14250_vm0  ;;  %v1614_v2 = vsel %vm11738_vm14, %v14261_v38, 0.0  ;;  %v14262_v43 = vld [vmem:[#allocation125_spill] sm:$0xff] }
 0x16b   : > { %9586 = vmatmul.mubr.msk.bf16.gmra.mrb[8].mxu0 %vm14230_vm4, %v1624_v26  ;;  %vm14244_vm4 = vnez %v14243_v49  ;;  %v14257_v26 = vld [vmem:[#allocation107_spill] sm:$0xff] }
 0x16c   : > { %9589 = vmatprep.mubr.msk.bf16.mxu0 %vm14231_vm10, %v1625_v9  ;;  %v1606_v16 = vsel %vm14244_vm4, %v14242_v25, 0.0  ;;  %vm14247_vm10 = vnez %v14246_v1  ;;  %v14258_v9 = vld [vmem:[#allocation116_spill] sm:$0xff]  ;;  %vm14260_vm4 = vmmov %vm14250_vm0  ;;  %v1633_v25 = vpack.c.bf16 %v1616_v31, %v11750_v36  ;;  %v8647_v36 = vld [vmem:[%s13764_s1 + $0xa] sm:$0x3] }
 0x16d   : > { %v1608_v19 = vsel %vm14247_vm10, %v14245_v3, 0.0  ;;  %v1628_v55 = vpack.c.bf16 %v1606_v16, %v14248_v51  ;;  %vm14259_vm10 = vmmov %vm14250_vm0  ;;  %v14264_v16 = vmov 0  ;;  %v2632_v51 = vand.u32 %v8647_v36, %v11057_v5  ;;  %v14298_v31 = vld [vmem:[#allocation9_spill] sm:$0xff]  ;;  %v14311_v36 = vld [vmem:[#allocation75_spill] sm:$0xff] }
 0x16e   : > { %v1629_v30 = vpack.c.bf16 %v1608_v19, %v14249_v32  ;;  %vm14269_vm8 = vmmov %vm14260_vm4  ;;  %v14272_v32 = vld [vmem:[#allocation30_spill] sm:$0xff] }
 0x16f   : > { %vm14274_vm14 = vmmov %vm14260_vm4 }
 0x173   : > { %9590 = vmatmul.mubr.msk.bf16.gmra.mrb[12].mxu0 %vm14240_vm3, %v1626_v59  ;;  %vm14254_vm3 = vnez %v14253_v52  ;;  %v641_v59 = vand.u32 15, %v419_v39  ;;  %v14296_v39 = vld [vmem:[#allocation140_spill] sm:$0xff] }
 0x174   : > { %9593 = vmatprep.mubr.msk.bf16.mxu0 %vm14241_vm12, %v1627_v8  ;;  %v1610_v44 = vsel %vm14254_vm3, %v14252_v35, 0.0  ;;  %vm14256_vm12 = vnez %v14150_v23  ;;  %v1632_v8 = vpack.c.bf16 %v1614_v2, %v14262_v43  ;;  %v14279_v35 = vld [vmem:[#allocation67_spill] sm:$0xff]  ;;  %vm14282_vm3 = vmmov %vm14260_vm4  ;;  %v1943_v38 = vsel %vm11907_vm11, %v14296_v39, 0.0  ;;  %v14333_v39 = vld [vmem:[#allocation45_spill] sm:$0xff] }
 0x175   : > { %v1612_v46 = vsel %vm14256_vm12, %v14255_v58, 0.0  ;;  %v1630_v56 = vpack.c.bf16 %v1610_v44, %v14257_v26  ;;  %vm14280_vm12 = vmmov %vm14260_vm4  ;;  %v14281_v44 = vld [vmem:[#allocation76_spill] sm:$0xff]  ;;  %v14285_v58 = vld [vmem:[#allocation94_spill] sm:$0xff]  ;;  %v1960_v2 = vpack.c.bf16 %v11816_v57, %v1943_v38 }
 0x176   : > { %v1631_v11 = vpack.c.bf16 %v1612_v46, %v14258_v9  ;;  %v14287_v46 = vld [vmem:[#allocation103_spill] sm:$0xff]  ;;  %v14289_v26 = vld [vmem:[#allocation112_spill] sm:$0xff]  ;;  %v14293_v9 = vld [vmem:[#allocation130_spill] sm:$0xff] }
 0x177   : > { %v14304_v57 = vld [vmem:[#allocation39_spill] sm:$0xff]  ;;  %v14334_v38 = vld [vmem:[#allocation54_spill] sm:$0xff] }
 0x17b   : > { %9594 = vmatmul.mubr.msk.bf16.gmra.mrb[16].mxu0 %vm14250_vm0, %v1628_v55  ;;  %v14270_v55 = vld [vmem:[#allocation19_spill] sm:$0xff] }
 0x17c   : > { %9597 = vmatprep.mubr.msk.bf16.mxu0 %vm14251_vm6, %v1629_v30  ;;  %vm14263_vm6 = vmmov %vm14250_vm0  ;;  %vm11994_vm0 = vcmp.le.s32.totalorder %v641_v59, 14  ;;  %v14277_v30 = vld [vmem:[#allocation58_spill] sm:$0xff]  ;;  %v8664_v59 = vld [vmem:[%s13764_s1 + $0xc] sm:$0x3] }
 0x17d   : > { %v14265_v16 = vsel %vm11994_vm0, 4294967295, %v14264_v16  ;;  %v1618_v3 = vsel %vm11994_vm0, %v11792_v40, 0.0  ;;  %v14273_v40 = vld [vmem:[#allocation40_spill] sm:$0xff]  ;;  %v2958_v43 = vand.u32 %v8664_v59, %v11057_v5  ;;  %v14340_v59 = vld [vmem:[#allocation81_spill] sm:$0xff] }
 0x17e   : > { %14266 = vst [vmem:[#allocation13_spill] sm:$0xff] %v14265_v16  ;;  %v1634_v19 = vpack.c.bf16 %v1618_v3, %v11794_v20  ;;  %v14275_v20 = vld [vmem:[#allocation49_spill] sm:$0xff]  ;;  %v14306_v3 = vld [vmem:[#allocation48_spill] sm:$0xff]  ;;  %v14442_v16 = vld [vmem:[#allocation22_spill] sm:$0xff] }
 0x17f   : > { %v13918_v4 = vand.u32 7, %v14442_v16 }
 0x183   : > { %9598 = vmatmul.mubr.msk.bf16.gmra.mrb[20].mxu0 %vm14259_vm10, %v1630_v56  ;;  %vm14267_vm10 = vmmov %vm14260_vm4  ;;  %v14291_v56 = vld [vmem:[#allocation121_spill] sm:$0xff] }
 0x184   : > { %9601 = vmatprep.mubr.msk.bf16.mxu0 %vm14260_vm4, %v1631_v11  ;;  %v14295_v11 = vld [vmem:[#allocation137_spill] sm:$0xff] }
 0x18b   : > { %9602 = vmatmul.mubr.msk.bf16.gmra.mrb[24].mxu0 %vm14263_vm6, %v1632_v8  ;;  %vm14271_vm6 = vmmov %vm14260_vm4  ;;  %v14300_v8 = vld [vmem:[#allocation18_spill] sm:$0xff] }
 0x18c   : > { %9605 = vmatprep.mubr.msk.bf16.mxu0 %vm14260_vm4, %v1633_v25  ;;  %v14302_v25 = vld [vmem:[#allocation29_spill] sm:$0xff] }
 0x193   : > { %9606 = vmatmul.mubr.msk.bf16.gmra.mrb[28].mxu0 %vm14267_vm10, %v1634_v19  ;;  %vm14276_vm10 = vmmov %vm14260_vm4  ;;  %v14308_v19 = vld [vmem:[#allocation57_spill] sm:$0xff] }
 0x194   : > { %9611 = vmatprep.mubr.msk.bf16.mxu0 %vm14269_vm8, %v14268_v60  ;;  %vm14278_vm8 = vmmov %vm14260_vm4  ;;  %v14309_v60 = vld [vmem:[#allocation66_spill] sm:$0xff] }
 0x19b   : > { %9612 = vmatmul.mubr.msk.bf16.vlgmr.msra.gmra.mrb[0].mxu0 %vm14271_vm6, %v14270_v55  ;;  %vm14284_vm6 = vmmov %vm14282_vm3  ;;  %v14315_v55 = vld [vmem:[#allocation93_spill] sm:$0xff] }
 0x19c   : > { %9644 = vmatpush3.bf16.msra.mxu0 %v2306_v37  ;;  %9615 = vmatprep.mubr.msk.bf16.mxu0 %vm14260_vm4, %v14272_v32  ;;  %v14283_v37 = vld [vmem:[#allocation85_spill] sm:$0xff]  ;;  %vm14286_vm4 = vmmov %vm14282_vm3  ;;  %v14317_v32 = vld [vmem:[#allocation102_spill] sm:$0xff] }
 0x19d   : > { %9677 = vmatprep.subr.bf16.mxu0 %v2632_v51 }
 0x1a3   : > { %9616 = vmatmul.mubr.msk.bf16.gmra.mrb[4].mxu0 %vm14274_vm14, %v14273_v40  ;;  %vm14288_vm14 = vmmov %vm14282_vm3  ;;  %v14319_v40 = vld [vmem:[#allocation111_spill] sm:$0xff] }
 0x1a4   : > { %9619 = vmatprep.mubr.msk.bf16.mxu0 %vm14276_vm10, %v14275_v20  ;;  %vm14290_vm10 = vmmov %vm14282_vm3  ;;  %v14321_v20 = vld [vmem:[#allocation120_spill] sm:$0xff] }
 0x1ab   : > { %9620 = vmatmul.mubr.msk.bf16.gmra.mrb[8].mxu0 %vm14278_vm8, %v14277_v30  ;;  %vm14292_vm8 = vmmov %vm14282_vm3  ;;  %v14322_v30 = vld [vmem:[#allocation129_spill] sm:$0xff] }
 0x1ac   : > { %9623 = vmatprep.mubr.msk.bf16.mxu0 %vm14280_vm12, %v14279_v35  ;;  %vm14294_vm12 = vmmov %vm14282_vm3  ;;  %v14324_v35 = vld [vmem:[#allocation136_spill] sm:$0xff] }
 0x1b3   : > { %9624 = vmatmul.mubr.msk.bf16.gmra.mrb[12].mxu0 %vm14282_vm3, %v14281_v44  ;;  %v2237_v44 = vld [vmem:[#allocation2 + $0x108] sm:$0xff] }
 0x1b4   : > { %9627 = vmatprep.mubr.msk.bf16.mxu0 %vm14284_vm6, %v14283_v37  ;;  %vm14297_vm6 = vmmov %vm14282_vm3  ;;  %v2238_v37 = vld [vmem:[#allocation2 + $0x110] sm:$0xff] }
 0x1bb   : > { %9628 = vmatmul.mubr.msk.bf16.gmra.mrb[16].mxu0 %vm14286_vm4, %v14285_v58  ;;  %vm14299_vm4 = vmmov %vm14282_vm3  ;;  %v12077_v58 = vpack.c.bf16 %v2238_v37, %v2237_v44  ;;  %v14367_v44 = vld [vmem:[#allocation77_spill] sm:$0xff]  ;;  %v14371_v37 = vld [vmem:[#allocation95_spill] sm:$0xff] }
 0x1bc   : > { %9631 = vmatprep.mubr.msk.bf16.mxu0 %vm14288_vm14, %v14287_v46  ;;  %vm14301_vm14 = vmmov %vm14282_vm3  ;;  %v14327_v46 = vld [vmem:[#allocation15_spill] sm:$0xff] }
 0x1c3   : > { %9632 = vmatmul.mubr.msk.bf16.gmra.mrb[20].mxu0 %vm14290_vm10, %v14289_v26  ;;  %vm14303_vm10 = vmmov %vm14282_vm3  ;;  %v8681_v26 = vld [vmem:[%s13764_s1 + $0xe] sm:$0x3] }
 0x1c4   : > { %9635 = vmatprep.mubr.msk.bf16.mxu0 %vm14292_vm8, %v14291_v56  ;;  %vm14305_vm8 = vmmov %vm14282_vm3  ;;  %v3252_v56 = vand.u32 %v8681_v26, %v11057_v5  ;;  %v14374_v26 = vld [vmem:[#allocation113_spill] sm:$0xff] }
 0x1cb   : > { %9636 = vmatmul.mubr.msk.bf16.gmra.mrb[24].mxu0 %vm14294_vm12, %v14293_v9  ;;  %vm14307_vm12 = vmmov %vm14282_vm3  ;;  %v14329_v9 = vld [vmem:[#allocation25_spill] sm:$0xff] }
 0x1cc   : > { %9639 = vmatprep.mubr.msk.bf16.mxu0 %vm14282_vm3, %v14295_v11  ;;  %v14331_v11 = vld [vmem:[#allocation36_spill] sm:$0xff] }
 0x1d3   : > { %9640 = vmatmul.mubr.msk.bf16.gmra.mrb[28].mxu0 %vm14297_vm6, %v1960_v2  ;;  %vm14310_vm6 = vmmov %vm14282_vm3  ;;  %v14336_v2 = vld [vmem:[#allocation63_spill] sm:$0xff] }
 0x1d4   : > { %9645 = vmatprep.mubr.msk.bf16.mxu0 %vm14299_vm4, %v14298_v31  ;;  %vm14312_vm4 = vmmov %vm14282_vm3  ;;  %v14338_v31 = vld [vmem:[#allocation73_spill] sm:$0xff] }
 0x1db   : > { %9646 = vmatmul.mubr.msk.bf16.vlgmr.msra.gmra.mrb[0].mxu0 %vm14301_vm14, %v14300_v8  ;;  %vm14314_vm14 = vmmov %vm14282_vm3  ;;  %v14344_v8 = vld [vmem:[#allocation99_spill] sm:$0xff] }
 0x1dc   : > { %9678 = vmatpush3.bf16.msra.mxu0 %v2632_v51  ;;  %9649 = vmatprep.mubr.msk.bf16.mxu0 %vm14303_vm10, %v14302_v25  ;;  %v14313_v51 = vld [vmem:[#allocation84_spill] sm:$0xff]  ;;  %vm14316_vm10 = vmmov %vm14282_vm3 }
 0x1dd   : > { %9711 = vmatprep.subr.bf16.mxu0 %v2958_v43  ;;  %v14346_v25 = vld [vmem:[#allocation108_spill] sm:$0xff] }
 0x1e3   : > { %9650 = vmatmul.mubr.msk.bf16.gmra.mrb[4].mxu0 %vm14305_vm8, %v14304_v57  ;;  %vm14318_vm8 = vmmov %vm14282_vm3  ;;  %v14347_v57 = vld [vmem:[#allocation117_spill] sm:$0xff] }
 0x1e4   : > { %9653 = vmatprep.mubr.msk.bf16.mxu0 %vm14307_vm12, %v14306_v3  ;;  %vm14320_vm12 = vmmov %vm14282_vm3  ;;  %v14349_v3 = vld [vmem:[#allocation126_spill] sm:$0xff] }
 0x1eb   : > { %9654 = vmatmul.mubr.msk.bf16.gmra.mrb[8].mxu0 %vm14282_vm3, %v14308_v19  ;;  %v14351_v19 = vld [vmem:[#allocation133_spill] sm:$0xff] }
 0x1ec   : > { %9657 = vmatprep.mubr.msk.bf16.mxu0 %vm14310_vm6, %v14309_v60  ;;  %vm14323_vm6 = vmmov %vm14282_vm3  ;;  %v14353_v60 = vld [vmem:[#allocation141_spill] sm:$0xff] }
 0x1f3   : > { %9658 = vmatmul.mubr.msk.bf16.gmra.mrb[12].mxu0 %vm14312_vm4, %v14311_v36  ;;  %vm14325_vm4 = vmmov %vm14282_vm3  ;;  %v2564_v36 = vsel %vm11994_vm0, %v11830_v24, 0.0  ;;  %v14363_v24 = vld [vmem:[#allocation59_spill] sm:$0xff] }
 0x1f4   : > { %9661 = vmatprep.mubr.msk.bf16.mxu0 %vm14314_vm14, %v14313_v51  ;;  %vm14326_vm14 = vmmov %vm14282_vm3  ;;  %v2580_v51 = vpack.c.bf16 %v2564_v36, %v11818_v28  ;;  %v14361_v28 = vld [vmem:[#allocation50_spill] sm:$0xff] }
 0x1fb   : > { %9662 = vmatmul.mubr.msk.bf16.gmra.mrb[16].mxu0 %vm14316_vm10, %v14315_v55  ;;  %vm14328_vm10 = vmmov %vm14282_vm3  ;;  %v14356_v55 = vld [vmem:[#allocation20_spill] sm:$0xff] }
 0x1fc   : > { %9665 = vmatprep.mubr.msk.bf16.mxu0 %vm14318_vm8, %v14317_v32  ;;  %vm14330_vm8 = vmmov %vm14282_vm3  ;;  %v8698_v32 = vld [vmem:[%s13764_s1 + $0x10] sm:$0x3] }
 0x203   : > { %9666 = vmatmul.mubr.msk.bf16.gmra.mrb[20].mxu0 %vm14320_vm12, %v14319_v40  ;;  %vm14332_vm12 = vmmov %vm14282_vm3  ;;  %v3578_v40 = vand.u32 %v8698_v32, %v11057_v5  ;;  %v14369_v5 = vld [vmem:[#allocation86_spill] sm:$0xff] }
 0x204   : > { %9669 = vmatprep.mubr.msk.bf16.mxu0 %vm14282_vm3, %v14321_v20  ;;  %v14358_v20 = vld [vmem:[#allocation31_spill] sm:$0xff] }
 0x20b   : > { %9670 = vmatmul.mubr.msk.bf16.gmra.mrb[24].mxu0 %vm14323_vm6, %v14322_v30  ;;  %vm14335_vm6 = vmmov %vm14282_vm3  ;;  %v14359_v30 = vld [vmem:[#allocation41_spill] sm:$0xff] }
 0x20c   : > { %9673 = vmatprep.mubr.msk.bf16.mxu0 %vm14325_vm4, %v14324_v35  ;;  %vm14337_vm4 = vmmov %vm14282_vm3  ;;  %v14365_v35 = vld [vmem:[#allocation68_spill] sm:$0xff] }
 0x213   : > { %9674 = vmatmul.mubr.msk.bf16.gmra.mrb[28].mxu0 %vm14326_vm14, %v12077_v58  ;;  %vm14339_vm14 = vmmov %vm14282_vm3 }
 0x214   : > { %9679 = vmatprep.mubr.msk.bf16.mxu0 %vm14328_vm10, %v14327_v46  ;;  %vm14341_vm10 = vmmov %vm14282_vm3  ;;  %v14372_v46 = vld [vmem:[#allocation104_spill] sm:$0xff] }
 0x21b   : > { %9680 = vmatmul.mubr.msk.bf16.vlgmr.msra.gmra.mrb[0].mxu0 %vm14330_vm8, %v14329_v9  ;;  %vm14343_vm8 = vmmov %vm14282_vm3  ;;  %v14378_v9 = vld [vmem:[#allocation131_spill] sm:$0xff] }
 0x21c   : > { %9712 = vmatpush3.bf16.msra.mxu0 %v2958_v43  ;;  %9683 = vmatprep.mubr.msk.bf16.mxu0 %vm14332_vm12, %v14331_v11  ;;  %v14342_v43 = vld [vmem:[#allocation90_spill] sm:$0xff]  ;;  %vm14345_vm12 = vmmov %vm14282_vm3 }
 0x21d   : > { %9745 = vmatprep.subr.bf16.mxu0 %v3252_v56  ;;  %v14380_v11 = vld [vmem:[#allocation138_spill] sm:$0xff] }
 0x223   : > { %9684 = vmatmul.mubr.msk.bf16.gmra.mrb[4].mxu0 %vm14282_vm3, %v14333_v39  ;;  %v2857_v39 = vld [vmem:[#allocation2 + $0x117] sm:$0xff] }
 0x224   : > { %9687 = vmatprep.mubr.msk.bf16.mxu0 %vm14335_vm6, %v14334_v38  ;;  %vm14348_vm6 = vmmov %vm14282_vm3  ;;  %v2858_v38 = vld [vmem:[#allocation2 + $0x11f] sm:$0xff] }
 0x22b   : > { %9688 = vmatmul.mubr.msk.bf16.gmra.mrb[8].mxu0 %vm14337_vm4, %v14336_v2  ;;  %vm14350_vm4 = vmmov %vm14282_vm3  ;;  %v2889_v2 = vsel %vm11907_vm11, %v2857_v39, 0.0  ;;  %v3172_v39 = vld [vmem:[#allocation2 + $0xc0] sm:$0xff] }
 0x22c   : > { %9691 = vmatprep.mubr.msk.bf16.mxu0 %vm14339_vm14, %v14338_v31  ;;  %vm14352_vm14 = vmmov %vm14282_vm3  ;;  %v3154_v31 = vld [vmem:[#allocation2 + $0x30] sm:$0xff] }
 0x233   : > { %9692 = vmatmul.mubr.msk.bf16.gmra.mrb[12].mxu0 %vm14341_vm10, %v14340_v59  ;;  %vm14354_vm10 = vmmov %vm14282_vm3  ;;  %v2906_v59 = vpack.c.bf16 %v2858_v38, %v2889_v2  ;;  %v3174_v38 = vld [vmem:[#allocation2 + $0xd0] sm:$0xff]  ;;  %v3171_v2 = vld [vmem:[#allocation2 + $0xb8] sm:$0xff] }
 0x234   : > { %9695 = vmatprep.mubr.msk.bf16.mxu0 %vm14343_vm8, %v14342_v43  ;;  %vm14355_vm8 = vmmov %vm14282_vm3  ;;  %v3153_v43 = vld [vmem:[#allocation2 + $0x28] sm:$0xff] }
 0x23b   : > { %9696 = vmatmul.mubr.msk.bf16.gmra.mrb[16].mxu0 %vm14345_vm12, %v14344_v8  ;;  %vm14357_vm12 = vmmov %vm14282_vm3  ;;  %v3185_v8 = vpack.c.bf16 %v3154_v31, %v3153_v43  ;;  %v3194_v31 = vpack.c.bf16 %v3172_v39, %v3171_v2  ;;  %v14421_v39 = vld [vmem:[#allocation142_spill] sm:$0xff] }
 0x23c   : > { %9699 = vmatprep.mubr.msk.bf16.mxu0 %vm14282_vm3, %v14346_v25  ;;  %v3156_v25 = vld [vmem:[#allocation2 + $0x40] sm:$0xff] }
 0x243   : > { %9700 = vmatmul.mubr.msk.bf16.gmra.mrb[20].mxu0 %vm14348_vm6, %v14347_v57  ;;  %vm14360_vm6 = vmmov %vm14282_vm3  ;;  %v3158_v57 = vld [vmem:[#allocation2 + $0x50] sm:$0xff] }
 0x244   : > { %9703 = vmatprep.mubr.msk.bf16.mxu0 %vm14350_vm4, %v14349_v3  ;;  %vm14362_vm4 = vmmov %vm14282_vm3  ;;  %v3155_v3 = vld [vmem:[#allocation2 + $0x38] sm:$0xff] }
 0x24b   : > { %9704 = vmatmul.mubr.msk.bf16.gmra.mrb[24].mxu0 %vm14352_vm14, %v14351_v19  ;;  %vm14364_vm14 = vmmov %vm14282_vm3  ;;  %v3186_v19 = vpack.c.bf16 %v3156_v25, %v3155_v3  ;;  %v3178_v25 = vld [vmem:[#allocation2 + $0xf0] sm:$0xff] }
 0x24c   : > { %9707 = vmatprep.mubr.msk.bf16.mxu0 %vm14354_vm10, %v14353_v60  ;;  %vm14366_vm10 = vmmov %vm14282_vm3  ;;  %v3157_v60 = vld [vmem:[#allocation2 + $0x48] sm:$0xff] }
 0x24d   : > { %v3187_v36 = vpack.c.bf16 %v3158_v57, %v3157_v60  ;;  %v3175_v57 = vld [vmem:[#allocation2 + $0xd8] sm:$0xff] }
 0x253   : > { %9708 = vmatmul.mubr.msk.bf16.gmra.mrb[28].mxu0 %vm14355_vm8, %v2580_v51  ;;  %vm14368_vm8 = vmmov %vm14282_vm3  ;;  %v3162_v51 = vld [vmem:[#allocation2 + $0x70] sm:$0xff] }
 0x254   : > { %9713 = vmatprep.mubr.msk.bf16.mxu0 %vm14357_vm12, %v14356_v55  ;;  %vm14370_vm12 = vmmov %vm14282_vm3  ;;  %v3159_v55 = vld [vmem:[#allocation2 + $0x58] sm:$0xff] }
 0x25b   : > { %9714 = vmatmul.mubr.msk.bf16.vlgmr.msra.gmra.mrb[0].mxu0 %vm14282_vm3, %v14358_v20  ;;  %v3161_v20 = vld [vmem:[#allocation2 + $0x68] sm:$0xff] }
 0x25c   : > { %9746 = vmatpush3.bf16.msra.mxu0 %v3252_v56  ;;  %9717 = vmatprep.mubr.msk.bf16.mxu0 %vm14360_vm6, %v14359_v30  ;;  %vm14373_vm6 = vmmov %vm14282_vm3  ;;  %v14376_v56 = vld [vmem:[#allocation122_spill] sm:$0xff]  ;;  %v3189_v30 = vpack.c.bf16 %v3162_v51, %v3161_v20 }
 0x25d   : > { %9779 = vmatprep.subr.bf16.mxu0 %v3578_v40 }
 0x263   : > { %9718 = vmatmul.mubr.msk.bf16.gmra.mrb[4].mxu0 %vm14362_vm4, %v14361_v28  ;;  %vm14375_vm4 = vmmov %vm14282_vm3  ;;  %v3164_v28 = vld [vmem:[#allocation2 + $0x80] sm:$0xff] }
 0x264   : > { %9721 = vmatprep.mubr.msk.bf16.mxu0 %vm14364_vm14, %v14363_v24  ;;  %vm14377_vm14 = vmmov %vm14282_vm3  ;;  %v3166_v24 = vld [vmem:[#allocation2 + $0x90] sm:$0xff] }
 0x26b   : > { %9722 = vmatmul.mubr.msk.bf16.gmra.mrb[8].mxu0 %vm14366_vm10, %v14365_v35  ;;  %vm14379_vm10 = vmmov %vm14282_vm3  ;;  %v3163_v35 = vld [vmem:[#allocation2 + $0x78] sm:$0xff] }
 0x26c   : > { %9725 = vmatprep.mubr.msk.bf16.mxu0 %vm14368_vm8, %v14367_v44  ;;  %vm14381_vm8 = vmmov %vm14282_vm3  ;;  %v3190_v44 = vpack.c.bf16 %v3164_v28, %v3163_v35  ;;  %v14399_v28 = vld [vmem:[#allocation38_spill] sm:$0xff]  ;;  %v14403_v35 = vld [vmem:[#allocation56_spill] sm:$0xff] }
 0x273   : > { %9726 = vmatmul.mubr.msk.bf16.gmra.mrb[12].mxu0 %vm14370_vm12, %v14369_v5  ;;  %vm14382_vm12 = vmmov %vm14282_vm3  ;;  %v3165_v5 = vld [vmem:[#allocation2 + $0x88] sm:$0xff] }
 0x274   : > { %9729 = vmatprep.mubr.msk.bf16.mxu0 %vm14282_vm3, %v14371_v37  ;;  %v3191_v37 = vpack.c.bf16 %v3166_v24, %v3165_v5  ;;  %v14401_v24 = vld [vmem:[#allocation47_spill] sm:$0xff] }
 0x275   : > { %v14408_v5 = vld [vmem:[#allocation83_spill] sm:$0xff] }
 0x27b   : > { %9730 = vmatmul.mubr.msk.bf16.gmra.mrb[16].mxu0 %vm14373_vm6, %v14372_v46  ;;  %vm14383_vm6 = vmmov %vm14282_vm3  ;;  %v3170_v46 = vld [vmem:[#allocation2 + $0xb0] sm:$0xff] }
 0x27c   : > { %9733 = vmatprep.mubr.msk.bf16.mxu0 %vm14375_vm4, %v14374_v26  ;;  %vm14384_vm4 = vmmov %vm14282_vm3  ;;  %v3167_v26 = vld [vmem:[#allocation2 + $0x98] sm:$0xff] }
 0x283   : > { %9734 = vmatmul.mubr.msk.bf16.gmra.mrb[20].mxu0 %vm14377_vm14, %v14376_v56  ;;  %vm14385_vm14 = vmmov %vm14282_vm3 }
 0x284   : > { %9737 = vmatprep.mubr.msk.bf16.mxu0 %vm14379_vm10, %v14378_v9  ;;  %vm14386_vm10 = vmmov %vm14282_vm3  ;;  %v3169_v9 = vld [vmem:[#allocation2 + $0xa8] sm:$0xff] }
 0x28b   : > { %9738 = vmatmul.mubr.msk.bf16.gmra.mrb[24].mxu0 %vm14381_vm8, %v14380_v11  ;;  %vm14387_vm8 = vmmov %vm14282_vm3  ;;  %v3193_v11 = vpack.c.bf16 %v3170_v46, %v3169_v9  ;;  %v14414_v46 = vld [vmem:[#allocation110_spill] sm:$0xff]  ;;  %v14419_v9 = vld [vmem:[#allocation135_spill] sm:$0xff] }
 0x28c   : > { %9741 = vmatprep.mubr.msk.bf16.mxu0 %vm14382_vm12, %v11833_v21  ;;  %v3160_v21 = vld [vmem:[#allocation2 + $0x60] sm:$0xff]  ;;  %vm14388_vm12 = vmmov %vm14282_vm3 }
 0x28d   : > { %v3188_v32 = vpack.c.bf16 %v3160_v21, %v3159_v55  ;;  %v3179_v21 = vld [vmem:[#allocation2 + $0xf8] sm:$0xff] }
 0x28e   : > { %v3183_v55 = vld [vmem:[#allocation2 + $0x118] sm:$0xff] }
 0x293   : > { %9742 = vmatmul.mubr.msk.bf16.gmra.mrb[28].mxu0 %vm14282_vm3, %v2906_v59  ;;  %v3173_v59 = vld [vmem:[#allocation2 + $0xc8] sm:$0xff] }
 0x294   : > { %9747 = vmatprep.mubr.msk.bf16.mxu0 %vm14383_vm6, %v3185_v8  ;;  %vm14389_vm6 = vmmov %vm14282_vm3  ;;  %v3195_v43 = vpack.c.bf16 %v3174_v38, %v3173_v59  ;;  %v3176_v8 = vld [vmem:[#allocation2 + $0xe0] sm:$0xff]  ;;  %v14425_v59 = vmov 0.0  }
 0x295   : > { %v3196_v3 = vpack.c.bf16 %v3176_v8, %v3175_v57  ;;  %v3477_v38 = vld [vmem:[#allocation2 + $0x119] sm:$0xff]  ;;  %v10906_v8 = vld [vmem:[%s13766_s3 + $0x28] sm:$0xff]   ;;  %v10908_v57 = vld [vmem:[%s13766_s3 + $0x30] sm:$0xff]  }
 0x29b   : > { %9748 = vmatmul.mubr.msk.bf16.vlgmr.msra.gmra.mrb[0].mxu0 %vm14384_vm4, %v3186_v19  ;;  %vm14390_vm4 = vmmov %vm14282_vm3  ;;  %v3177_v19 = vld [vmem:[#allocation2 + $0xe8] sm:$0xff] }
 0x29c   : > { %9780 = vmatpush3.bf16.msra.mxu0 %v3578_v40  ;;  %9751 = vmatprep.mubr.msk.bf16.mxu0 %vm14385_vm14, %v3187_v36  ;;  %v3168_v40 = vld [vmem:[#allocation2 + $0xa0] sm:$0xff]  ;;  %vm14391_vm14 = vmmov %vm14282_vm3  ;;  %v3197_v60 = vpack.c.bf16 %v3178_v25, %v3177_v19  ;;  %v10907_v25 = vld [vmem:[%s13766_s3 + $0x8] sm:$0xff]  }
 0x29d   : > { %v3192_v56 = vpack.c.bf16 %v3168_v40, %v3167_v26  ;;  %v3180_v36 = vld [vmem:[#allocation2 + $0x100] sm:$0xff]  ;;  %v14412_v40 = vld [vmem:[#allocation101_spill] sm:$0xff]  ;;  %v14416_v26 = vld [vmem:[#allocation119_spill] sm:$0xff] }
 0x29e   : > { %v3198_v51 = vpack.c.bf16 %v3180_v36, %v3179_v21  ;;  %v10910_v19 = vld [vmem:[%s13766_s3 + $0x38] sm:$0xff]   ;;  %v12254_v36 = vld [vmem:[%s13766_s3 + $0x40] sm:$0xff]  }
 0x29f   : > { %v12260_v21 = vld [vmem:[%s13765_s2] ss:$0 sm:$0xff] }
 0x2a3   : > { %9752 = vmatmul.mubr.msk.bf16.gmra.mrb[4].mxu0 %vm14386_vm10, %v3188_v32  ;;  %vm14392_vm10 = vmmov %vm14282_vm3  ;;  %v3184_v32 = vld [vmem:[#allocation2 + $0x120] sm:$0xff] }
 0x2a4   : > { %9755 = vmatprep.mubr.msk.bf16.mxu0 %vm14387_vm8, %v3189_v30  ;;  %vm14393_vm8 = vmmov %vm14282_vm3  ;;  %v3200_v20 = vpack.c.bf16 %v3184_v32, %v3183_v55  ;;  %v14397_v30 = vld [vmem:[#allocation28_spill] sm:$0xff] }
 0x2ab   : > { %9756 = vmatmul.mubr.msk.bf16.gmra.mrb[8].mxu0 %vm14388_vm12, %v3190_v44  ;;  %vm14394_vm12 = vmmov %vm14282_vm3  ;;  %v14405_v44 = vld [vmem:[#allocation65_spill] sm:$0xff] }
 0x2ac   : > { %9759 = vmatprep.mubr.msk.bf16.mxu0 %vm14282_vm3, %v3191_v37  ;;  %v14410_v37 = vld [vmem:[#allocation92_spill] sm:$0xff] }
 0x2b3   : > { %9760 = vmatmul.mubr.msk.bf16.gmra.mrb[12].mxu0 %vm14389_vm6, %v3192_v56  ;;  %vm14395_vm6 = vmmov %vm14282_vm3  ;;  %v14418_v56 = vld [vmem:[#allocation128_spill] sm:$0xff] }
 0x2b4   : > { %9763 = vmatprep.mubr.msk.bf16.mxu0 %vm14390_vm4, %v3193_v11  ;;  %vm14396_vm4 = vmmov %vm14282_vm3  ;;  %v3478_v11 = vld [vmem:[#allocation2 + $0x121] sm:$0xff] }
 0x2b5   : > { %v3510_v2 = vsel %vm11994_vm0, %v3478_v11, 0.0  ;;  %vm12448_vm0 = vcmp.ge.s32.totalorder %v13918_v4, 1 }
 0x2bb   : > { %9764 = vmatmul.mubr.msk.bf16.gmra.mrb[16].mxu0 %vm14391_vm14, %v3194_v31  ;;  %vm14398_vm14 = vmmov %vm14282_vm3  ;;  %v3526_v31 = vpack.c.bf16 %v3510_v2, %v3477_v38 }
 0x2bc   : > { %9767 = vmatprep.mubr.msk.bf16.mxu0 %vm14392_vm10, %v3195_v43  ;;  %vm14400_vm10 = vmmov %vm14282_vm3  ;;  %v10905_v43 = vld [vmem:[%s13766_s3] sm:$0xff]  }
 0x2bd   : > { %9829 = vmatprep.subr.bf16.mxu1 %v10905_v43 }
 0x2be   : > { %9830 = vmatpush3.bf16.msra.mxu1 %v10905_v43 }
 0x2bf   : > { %9831 = vmatprep.subr.bf16.mxu1 %v10907_v25 }
 0x2c2   : > { %9832 = vmatpush3.bf16.msra.mxu1 %v10907_v25 }
 0x2c3   : > { %9768 = vmatmul.mubr.msk.bf16.gmra.mrb[20].mxu0 %vm14393_vm8, %v3196_v3  ;;  %vm14402_vm8 = vmmov %vm14282_vm3  ;;  %v10909_v3 = vld [vmem:[%s13766_s3 + $0x10] sm:$0xff]  }
 0x2c4   : > { %9771 = vmatprep.mubr.msk.bf16.mxu0 %vm14394_vm12, %v3197_v60  ;;  %vm14404_vm12 = vmmov %vm14282_vm3  ;;  %9833 = vmatprep.subr.bf16.mxu1 %v10909_v3  ;;  %v10911_v60 = vld [vmem:[%s13766_s3 + $0x18] sm:$0xff]  }
 0x2c6   : > { %9834 = vmatpush3.bf16.msra.mxu1 %v10909_v3 }
 0x2c7   : > { %9835 = vmatprep.subr.bf16.mxu1 %v10911_v60 }
 0x2ca   : > { %9836 = vmatpush3.bf16.msra.mxu1 %v10911_v60 }
 0x2cb   : > { %9772 = vmatmul.mubr.msk.bf16.gmra.mrb[24].mxu0 %vm14282_vm3, %v3198_v51  ;;  %9845 = vmatprep.subr.bf16.mxu1 %v12254_v36 }
 0x2cc   : > { %9775 = vmatprep.mubr.msk.bf16.mxu0 %vm14395_vm6, %v12077_v58  ;;  %v14406_v58 = vld [vmem:[#allocation74_spill] sm:$0xff]  ;;  %vm14407_vm6 = vmmov %vm14282_vm3 }
 0x2d3   : > { %9776 = vmatmul.mubr.msk.bf16.gmra.mrb[28].mxu0 %vm14396_vm4, %v3200_v20  ;;  %vm14409_vm4 = vmmov %vm14282_vm3 }
 0x2d4   : > { %9781 = vmatprep.mubr.msk.bf16.mxu0 %vm14398_vm14, %v14397_v30  ;;  %vm14411_vm14 = vmmov %vm14282_vm3 }
 0x2db   : > { %9782 = vmatmul.mubr.msk.bf16.vlgmr.msra.gmra.mrb[0].mxu0 %vm14400_vm10, %v14399_v28  ;;  %vm14413_vm10 = vmmov %vm14282_vm3 }
 0x2dc   : > { %9785 = vmatprep.mubr.msk.bf16.mxu0 %vm14402_vm8, %v14401_v24  ;;  %vm14415_vm8 = vmmov %vm14282_vm3 }
 0x2e3   : > { %9786 = vmatmul.mubr.msk.bf16.gmra.mrb[4].mxu0 %vm14404_vm12, %v14403_v35  ;;  %vm14417_vm12 = vmmov %vm14282_vm3 }
 0x2e4   : > { %9789 = vmatprep.mubr.msk.bf16.mxu0 %vm14282_vm3, %v14405_v44 }
 0x2eb   : > { %9790 = vmatmul.mubr.msk.bf16.gmra.mrb[8].mxu0 %vm14407_vm6, %v14406_v58  ;;  %vm14420_vm6 = vmmov %vm14282_vm3 }
 0x2ec   : > { %9793 = vmatprep.mubr.msk.bf16.mxu0 %vm14409_vm4, %v14408_v5  ;;  %vm14422_vm4 = vmmov %vm14282_vm3 }
 0x2f3   : > { %9794 = vmatmul.mubr.msk.bf16.gmra.mrb[12].mxu0 %vm14411_vm14, %v14410_v37  ;;  %vm14423_vm14 = vmmov %vm14282_vm3 }
 0x2f4   : > { %9797 = vmatprep.mubr.msk.bf16.mxu0 %vm14413_vm10, %v14412_v40  ;;  %vm14424_vm10 = vmmov %vm14282_vm3 }
 0x2fb   : > { %9798 = vmatmul.mubr.msk.bf16.gmra.mrb[16].mxu0 %vm14415_vm8, %v14414_v46  ;;  %vm13950_vm8 = vcmask 523264  }
 0x2fc   : > { %9801 = vmatprep.mubr.msk.bf16.mxu0 %vm14417_vm12, %v14416_v26  ;;  %3916 = vst.msk [vmem:[#allocation3] sm:$0xff] %vm13950_vm8, %v14425_v59  ;;  %3917 = vst.msk [vmem:[#allocation3 + $0x8] sm:$0xff] %vm13950_vm8, %v14425_v59 }
 0x2fd   : > { %3918 = vst.msk [vmem:[#allocation3 + $0x50] sm:$0xff] %vm13950_vm8, %v14425_v59  ;;  %3919 = vst.msk [vmem:[#allocation3 + $0x58] sm:$0xff] %vm13950_vm8, %v14425_v59 }
 0x2fe   : > { %5296 = vst.msk [vmem:[#allocation4] sm:$0xff] %vm13950_vm8, %v14425_v59  ;;  %5297 = vst.msk [vmem:[#allocation4 + $0x8] sm:$0xff] %vm13950_vm8, %v14425_v59 }
 0x2ff   : > { %5298 = vst.msk [vmem:[#allocation4 + $0x10] sm:$0xff] %vm13950_vm8, %v14425_v59  ;;  %5299 = vst.msk [vmem:[#allocation4 + $0x118] sm:$0xff] %vm13950_vm8, %v14425_v59 }
 0x300   : > { %5300 = vst.msk [vmem:[#allocation4 + $0x120] sm:$0xff] %vm13950_vm8, %v14425_v59  ;;  %5301 = vst.msk [vmem:[#allocation4 + $0x128] sm:$0xff] %vm13950_vm8, %v14425_v59 }
 0x303   : > { %9802 = vmatmul.mubr.msk.bf16.gmra.mrb[20].mxu0 %vm14282_vm3, %v14418_v56 }
 0x304   : > { %9805 = vmatprep.mubr.msk.bf16.mxu0 %vm14420_vm6, %v14419_v9 }
 0x30b   : > { %9806 = vmatmul.mubr.msk.bf16.gmra.mrb[24].mxu0 %vm14422_vm4, %v14421_v39 }
 0x30c   : > { %9809 = vmatprep.mubr.msk.bf16.mxu0 %vm14423_vm14, %v11841_v27  ;;  %v10904_v27 = vld [vmem:[%s13766_s3 + $0x20] sm:$0xff]  }
 0x30d   : > { %9813 = vmatprep.subr.bf16.mxu0 %v10904_v27 }
 0x30e   : > { %9814 = vmatpush3.bf16.msra.mxu0 %v10904_v27 }
 0x30f   : > { %9815 = vmatprep.subr.bf16.mxu0 %v10906_v8 }
 0x312   : > { %9816 = vmatpush3.bf16.msra.mxu0 %v10906_v8 }
 0x313   : > { %9810 = vmatmul.mubr.msk.bf16.gmra.mrb[28].mxu0 %vm14424_vm10, %v3526_v31  ;;  %9817 = vmatprep.subr.bf16.mxu0 %v10908_v57 }
 0x316   : > { %9818 = vmatpush3.bf16.msra.mxu0 %v10908_v57 }
 0x317   : > { %9819 = vmatprep.subr.bf16.mxu0 %v10910_v19 }
 0x31a   : > { %9820 = vmatpush3.bf16.msra.mxu0 %v10910_v19 }
 0x3ae   : > { %v9783_v51 = vpop.f32.mrb[0].mxu0 }
 0x3af   : > { %v3782_v55 = vadd.f32 %v9783_v51, %v12260_v21  ;;  %v3614_v32 = vpop.f32.mrb[1].mxu0 }
 0x3b0   : > { %v3780_v20 = vadd.f32 %v12260_v21, %v3614_v32  ;;  %v9784_v30 = vpop.f32.mrb[2].mxu0 }
 0x3b1   : > { %v3814_v28 = vmax.f32 %v3782_v55, 0.0  ;;  %v3783_v24 = vadd.f32 %v9784_v30, %v12260_v21  ;;  %v3617_v35 = vpop.f32.mrb[3].mxu0 }
 0x3b2   : > { %v3812_v44 = vmax.f32 %v3780_v20, 0.0  ;;  %v3781_v58 = vadd.f32 %v12260_v21, %v3617_v35 }
 0x3b3   : > { %v3815_v5 = vmax.f32 %v3783_v24, 0.0 }
 0x3b4   : > { %v3844_v37 = vmax.f32 %v3812_v44, %v3814_v28  ;;  %v3813_v40 = vmax.f32 %v3781_v58, 0.0  ;;  %v3932_v44 = vand.u32 7, %v11066_v15 }
 0x3b6   : > { %3861 = vst.msk [vmem:[#allocation5] sm:$0xff] %vm13950_vm8, %v3844_v37  ;;  %v3845_v46 = vmax.f32 %v3813_v40, %v3815_v5  ;;  %v9787_v26 = vpop.f32.mrb[4].mxu0  ;;  %v14426_v40 = vld [vmem:[#allocation6_spill] sm:$0xff]  ;;  %vm12283_vm12 = vcmp.ge.s32.totalorder %v3932_v44, 1  ;;  %vm12362_vm14 = vcmp.le.s32.totalorder %v3932_v44, 6  ;;  %v10913_v44 = vld [vmem:[%s13766_s3 + $0x48] sm:$0xff]  }
 0x3b7   : > { %v3786_v56 = vadd.f32 %v9787_v26, %v12260_v21  ;;  %v3630_v9 = vpop.f32.mrb[5].mxu0 }
 0x3b8   : > { %3862 = vst.msk [vmem:[#allocation5 + $0x8] sm:$0xff] %vm13950_vm8, %v3845_v46  ;;  %v3784_v11 = vadd.f32 %v12260_v21, %v3630_v9  ;;  %v9788_v39 = vpop.f32.mrb[6].mxu0  ;;  %v3939_v46 = vand.u32 7, %v14426_v40 }
 0x3b9   : > { %v3818_v38 = vmax.f32 %v3786_v56, 0.0  ;;  %v3787_v2 = vadd.f32 %v9788_v39, %v12260_v21  ;;  %v3633_v31 = vpop.f32.mrb[7].mxu0 }
 0x3ba   : > { %v3816_v59 = vmax.f32 %v3784_v11, 0.0  ;;  %v3785_v27 = vadd.f32 %v12260_v21, %v3633_v31  ;;  %v4040_v11 = vld [vmem:[#allocation3 + $0x7] sm:$0xff]  ;;  %vm12291_vm3 = vcmp.ge.s32.totalorder %v3939_v46, 1  ;;  %vm12403_vm10 = vcmp.le.s32.totalorder %v3939_v46, 6 }
 0x3bb   : > { %v3819_v43 = vmax.f32 %v3787_v2, 0.0  ;;  %v4084_v2 = vld [vmem:[#allocation3 + $0x8] sm:$0xff] }
 0x3bc   : > { %v3846_v8 = vmax.f32 %v3816_v59, %v3818_v38  ;;  %v3817_v25 = vmax.f32 %v3785_v27, 0.0 }
 0x3be   : > { %3863 = vst.msk [vmem:[#allocation5 + $0x10] sm:$0xff] %vm13950_vm8, %v3846_v8  ;;  %v3847_v57 = vmax.f32 %v3817_v25, %v3819_v43  ;;  %v9791_v3 = vpop.f32.mrb[8].mxu0 }
 0x3bf   : > { %v3877_v19 = vld [vmem:[#allocation5] ss:$2 sm:$0xff]  ;;  %v3893_v60 = vld [vmem:[#allocation5 + $0x1] ss:$2 sm:$0xff]  ;;  %v3790_v51 = vadd.f32 %v9791_v3, %v12260_v21  ;;  %v3646_v55 = vpop.f32.mrb[9].mxu0 }
 0x3c0   : > { %v3908_v32 = vmax.f32 %v3877_v19, %v3893_v60  ;;  %3864 = vst.msk [vmem:[#allocation5 + $0x18] sm:$0xff] %vm13950_vm8, %v3847_v57  ;;  %v3788_v20 = vadd.f32 %v12260_v21, %v3646_v55  ;;  %v9792_v30 = vpop.f32.mrb[10].mxu0  ;;  %v4064_v19 = vsel %vm12283_vm12, %v4040_v11, 0.0 }
 0x3c1   : > { %v3822_v28 = vmax.f32 %v3790_v51, 0.0  ;;  %v3791_v24 = vadd.f32 %v9792_v30, %v12260_v21  ;;  %v3649_v35 = vpop.f32.mrb[11].mxu0 }
 0x3c2   : > { %3920 = vst.msk [vmem:[#allocation3 + $0x10] sm:$0xff] %vm13950_vm8, %v3908_v32  ;;  %v3820_v58 = vmax.f32 %v3788_v20, 0.0  ;;  %v3789_v5 = vadd.f32 %v12260_v21, %v3649_v35 }
 0x3c3   : > { %v3823_v37 = vmax.f32 %v3791_v24, 0.0 }
 0x3c4   : > { %v3848_v26 = vmax.f32 %v3820_v58, %v3822_v28  ;;  %v3821_v56 = vmax.f32 %v3789_v5, 0.0 }
 0x3c6   : > { %3865 = vst.msk [vmem:[#allocation5 + $0x20] sm:$0xff] %vm13950_vm8, %v3848_v26  ;;  %v3849_v39 = vmax.f32 %v3821_v56, %v3823_v37  ;;  %v9795_v38 = vpop.f32.mrb[12].mxu0 }
 0x3c7   : > { %v3879_v31 = vld [vmem:[#allocation5 + $0x10] ss:$2 sm:$0xff]  ;;  %v3895_v59 = vld [vmem:[#allocation5 + $0x11] ss:$2 sm:$0xff]  ;;  %v3794_v27 = vadd.f32 %v9795_v38, %v12260_v21  ;;  %v3662_v43 = vpop.f32.mrb[13].mxu0 }
 0x3c8   : > { %v3909_v25 = vmax.f32 %v3879_v31, %v3895_v59  ;;  %3866 = vst.msk [vmem:[#allocation5 + $0x28] sm:$0xff] %vm13950_vm8, %v3849_v39  ;;  %v3792_v57 = vadd.f32 %v12260_v21, %v3662_v43  ;;  %v9796_v3 = vpop.f32.mrb[14].mxu0 }
 0x3c9   : > { %v3826_v60 = vmax.f32 %v3794_v27, 0.0  ;;  %v3795_v51 = vadd.f32 %v9796_v3, %v12260_v21  ;;  %v3665_v55 = vpop.f32.mrb[15].mxu0  ;;  %v12300_v32 = vld [vmem:[#allocation3 + $0x10] sm:$0xff] }
 0x3ca   : > { %v4041_v20 = vld [vmem:[#allocation3 + $0xf] sm:$0xff]  ;;  %3921 = vst.msk [vmem:[#allocation3 + $0x18] sm:$0xff] %vm13950_vm8, %v3909_v25  ;;  %v3824_v30 = vmax.f32 %v3792_v57, 0.0  ;;  %v3793_v28 = vadd.f32 %v12260_v21, %v3665_v55  ;;  %v4092_v24 = vpack.c.bf16 %v12300_v32, %v4084_v2 }
 0x3cb   : > { %v4065_v35 = vsel %vm12291_vm3, %v4041_v20, 0.0  ;;  %v3827_v58 = vmax.f32 %v3795_v51, 0.0  ;;  %v4469_v51 = vsel %vm12283_vm12, %v4041_v20, 0.0  ;;  %v4307_v14 = vld [vmem:[#allocation3 + $0x9] sm:$0xff] }
 0x3cc   : > { %v4072_v5 = vpack.c.bf16 %v4065_v35, %v4064_v19  ;;  %v3850_v37 = vmax.f32 %v3824_v30, %v3826_v60  ;;  %v3825_v26 = vmax.f32 %v3793_v28, 0.0  ;;  %9821 = vmatprep.mubr.msk.bf16.mxu0 %vm13950_vm8, %v4092_v24  ;;  %v14431_v35 = vld [vmem:[#allocation8_spill] sm:$0xff] }
 0x3cd   : > { %v14443_v52 = vand.u32 7, %v14431_v35 }
 0x3ce   : > { %9837 = vmatprep.mubr.msk.bf16.mxu1 %vm13950_vm8, %v4072_v5  ;;  %3867 = vst.msk [vmem:[#allocation5 + $0x30] sm:$0xff] %vm13950_vm8, %v3850_v37  ;;  %v3851_v56 = vmax.f32 %v3825_v26, %v3827_v58  ;;  %v9799_v11 = vpop.f32.mrb[16].mxu0  ;;  %v13905_v58 = vand.u32 7, %v14431_v35 }
 0x3cf   : > { %v3881_v39 = vld [vmem:[#allocation5 + $0x20] ss:$2 sm:$0xff]  ;;  %v3897_v38 = vld [vmem:[#allocation5 + $0x21] ss:$2 sm:$0xff]  ;;  %v3798_v31 = vadd.f32 %v9799_v11, %v12260_v21  ;;  %v3678_v2 = vpop.f32.mrb[17].mxu0 }
 0x3d0   : > { %v3910_v59 = vmax.f32 %v3881_v39, %v3897_v38  ;;  %3868 = vst.msk [vmem:[#allocation5 + $0x38] sm:$0xff] %vm13950_vm8, %v3851_v56  ;;  %v3796_v27 = vadd.f32 %v12260_v21, %v3678_v2  ;;  %v9800_v43 = vpop.f32.mrb[18].mxu0  ;;  %v14432_v56 = vld [vmem:[#allocation12_spill] sm:$0xff]  ;;  %vm12334_vm6 = vcmp.ge.s32.totalorder %v13905_v58, 1 }
 0x3d1   : > { %v4462_v25 = vld [vmem:[#allocation3 + $0x17] sm:$0xff]  ;;  %v3830_v57 = vmax.f32 %v3798_v31, 0.0  ;;  %v3799_v3 = vadd.f32 %v9800_v43, %v12260_v21  ;;  %v3681_v19 = vpop.f32.mrb[19].mxu0  ;;  %v13904_v11 = vand.u32 7, %v14432_v56 }
 0x3d2   : > { %v12314_v60 = vld [vmem:[#allocation3 + $0x18] sm:$0xff]  ;;  %3922 = vst.msk [vmem:[#allocation3 + $0x20] sm:$0xff] %vm13950_vm8, %v3910_v59  ;;  %v4470_v55 = vsel %vm12291_vm3, %v4462_v25, 0.0  ;;  %v3828_v30 = vmax.f32 %v3796_v27, 0.0  ;;  %v3797_v28 = vadd.f32 %v12260_v21, %v3681_v19  ;;  %v4066_v8 = vsel %vm12334_vm6, %v4462_v25, 0.0 }
 0x3d3   : > { %v3831_v24 = vmax.f32 %v3799_v3, 0.0  ;;  %v12323_v5 = vpack.c.bf16 %v4470_v55, %v4469_v51  ;;  %vm12340_vm4 = vcmp.ge.s32.totalorder %v13904_v11, 1  ;;  %v10921_v51 = vld [vmem:[%s13766_s3 + $0x88] sm:$0xff]  }
 0x3d4   : > { %v3852_v37 = vmax.f32 %v3828_v30, %v3830_v57  ;;  %v3829_v26 = vmax.f32 %v3797_v28, 0.0 }
 0x3d6   : > { %3869 = vst.msk [vmem:[#allocation5 + $0x40] sm:$0xff] %vm13950_vm8, %v3852_v37  ;;  %v3853_v20 = vmax.f32 %v3829_v26, %v3831_v24  ;;  %v9803_v38 = vpop.f32.mrb[20].mxu0 }
 0x3d7   : > { %v3883_v31 = vld [vmem:[#allocation5 + $0x30] ss:$2 sm:$0xff]  ;;  %v3899_v2 = vld [vmem:[#allocation5 + $0x31] ss:$2 sm:$0xff]  ;;  %v3802_v59 = vadd.f32 %v9803_v38, %v12260_v21  ;;  %v3694_v27 = vpop.f32.mrb[21].mxu0 }
 0x3d8   : > { %v3911_v43 = vmax.f32 %v3883_v31, %v3899_v2  ;;  %3870 = vst.msk [vmem:[#allocation5 + $0x48] sm:$0xff] %vm13950_vm8, %v3853_v20  ;;  %v3800_v57 = vadd.f32 %v12260_v21, %v3694_v27  ;;  %v9804_v3 = vpop.f32.mrb[22].mxu0 }
 0x3d9   : > { %v12344_v55 = vld [vmem:[#allocation3 + $0x1f] sm:$0xff]  ;;  %v3834_v30 = vmax.f32 %v3802_v59, 0.0  ;;  %v3803_v28 = vadd.f32 %v9804_v3, %v12260_v21  ;;  %v3697_v24 = vpop.f32.mrb[23].mxu0 }
 0x3da   : > { %v12347_v37 = vld [vmem:[#allocation3 + $0x20] sm:$0xff]  ;;  %3923 = vst.msk [vmem:[#allocation3 + $0x28] sm:$0xff] %vm13950_vm8, %v3911_v43  ;;  %v4876_v26 = vsel %vm12291_vm3, %v12344_v55, 0.0  ;;  %v3832_v20 = vmax.f32 %v3800_v57, 0.0  ;;  %v3801_v38 = vadd.f32 %v12260_v21, %v3697_v24  ;;  %v4067_v43 = vsel %vm12340_vm4, %v12344_v55, 0.0 }
 0x3db   : > { %v12356_v31 = vpack.c.bf16 %v12347_v37, %v12314_v60  ;;  %v12358_v2 = vld [vmem:[#allocation3 + $0x19] sm:$0xff]  ;;  %v3835_v27 = vmax.f32 %v3803_v28, 0.0  ;;  %v4875_v57 = vsel %vm12283_vm12, %v4462_v25, 0.0  ;;  %v4073_v15 = vpack.c.bf16 %v4067_v43, %v4066_v8 }
 0x3dc   : > { %v3854_v3 = vmax.f32 %v3832_v20, %v3834_v30  ;;  %v3833_v24 = vmax.f32 %v3801_v38, 0.0  ;;  %v12378_v28 = vpack.c.bf16 %v4876_v26, %v4875_v57  ;;  %v5143_v39 = vsel %vm12362_vm14, %v12358_v2, 0.0 }
 0x3dd   : > { %9822 = vmatmul.mubr.msk.bf16.vlgmr.msra.gmra.mrb[32].mxu0 %vm13950_vm8, %v12356_v31  ;;  %9838 = vmatmul.mubr.msk.bf16.vlgmr.msra.gmra.mrb[0].mxu1 %vm13950_vm8, %v4073_v15  ;;  %vm12422_vm12 = vcmp.le.s32.totalorder %v14443_v52, 6 }
 0x3de   : > { %3871 = vst.msk [vmem:[#allocation5 + $0x50] sm:$0xff] %vm13950_vm8, %v3854_v3  ;;  %v3855_v9 = vmax.f32 %v3833_v24, %v3835_v27  ;;  %v9807_v25 = vpop.f32.mrb[24].mxu0  ;;  %9846 = vmatpush3.bf16.msra.mxu1 %v12254_v36  ;;  %v10914_v27 = vld [vmem:[%s13766_s3 + $0x50] sm:$0xff]  }
 0x3df   : > { %v3885_v30 = vld [vmem:[#allocation5 + $0x40] ss:$2 sm:$0xff]  ;;  %v3901_v20 = vld [vmem:[#allocation5 + $0x41] ss:$2 sm:$0xff]  ;;  %v3806_v38 = vadd.f32 %v9807_v25, %v12260_v21  ;;  %v3710_v8 = vpop.f32.mrb[25].mxu0  ;;  %9847 = vmatprep.subr.bf16.mxu1 %v10913_v44 }
 0x3e0   : > { %v3912_v43 = vmax.f32 %v3885_v30, %v3901_v20  ;;  %3872 = vst.msk [vmem:[#allocation5 + $0x58] sm:$0xff] %vm13950_vm8, %v3855_v9  ;;  %v3804_v26 = vadd.f32 %v12260_v21, %v3710_v8  ;;  %v9808_v57 = vpop.f32.mrb[26].mxu0 }
 0x3e1   : > { %v12392_v3 = vld [vmem:[#allocation3 + $0x21] sm:$0xff]  ;;  %v3838_v15 = vmax.f32 %v3806_v38, 0.0  ;;  %v3807_v25 = vadd.f32 %v9808_v57, %v12260_v21  ;;  %v3713_v11 = vpop.f32.mrb[27].mxu0 }
 0x3e2   : > { %v12394_v24 = vld [vmem:[#allocation3 + $0x27] sm:$0xff]  ;;  %3924 = vst.msk [vmem:[#allocation3 + $0x30] sm:$0xff] %vm13950_vm8, %v3912_v43  ;;  %v3836_v30 = vmax.f32 %v3804_v26, 0.0  ;;  %v3805_v8 = vadd.f32 %v12260_v21, %v3713_v11  ;;  %9848 = vmatpush3.bf16.msra.mxu1 %v10913_v44  ;;  %v5144_v40 = vsel %vm12403_vm10, %v12392_v3, 0.0  ;;  %v4739_v9 = vsel %vm12422_vm12, %v12392_v3, 0.0 }
 0x3e3   : > { %v4877_v36 = vsel %vm12334_vm6, %v12394_v24, 0.0  ;;  %v3839_v20 = vmax.f32 %v3807_v25, 0.0  ;;  %v14441_v38 = vld [vmem:[#allocation17_spill] sm:$0xff]  ;;  %9849 = vmatprep.subr.bf16.mxu1 %v10914_v27  ;;  %v12416_v26 = vpack.c.bf16 %v5144_v40, %v5143_v39 }
 0x3e4   : > { %v10915_v43 = vld [vmem:[%s13766_s3 + $0x58] sm:$0xff]   ;;  %v3856_v46 = vmax.f32 %v3836_v30, %v3838_v15  ;;  %v3837_v58 = vmax.f32 %v3805_v8, 0.0  ;;  %v14446_v8 = vand.u32 7, %v14441_v38  ;;  %v14460_v7 = vand.u32 7, %v14441_v38 }
 0x3e6   : > { %v9811_v25 = vpop.f32.mrb[28].mxu0  ;;  %3873 = vst.msk [vmem:[#allocation5 + $0x60] sm:$0xff] %vm13950_vm8, %v3856_v46  ;;  %v3857_v57 = vmax.f32 %v3837_v58, %v3839_v20  ;;  %9850 = vmatpush3.bf16.msra.mxu1 %v10914_v27  ;;  %vm12429_vm3 = vcmp.ge.s32.totalorder %v14446_v8, 1  ;;  %v12436_v58 = vld [vmem:[%s13766_s3 + $0x60] sm:$0xff]   ;;  %vm12535_vm15 = vcmp.le.s32.totalorder %v14460_v7, 6 }
 0x3e7   : > { %v3887_v11 = vld [vmem:[#allocation5 + $0x50] ss:$2 sm:$0xff]  ;;  %v3903_v44 = vld [vmem:[#allocation5 + $0x51] ss:$2 sm:$0xff]  ;;  %v3810_v33 = vadd.f32 %v9811_v25, %v12260_v21  ;;  %v3726_v18 = vpop.f32.mrb[29].mxu0  ;;  %9851 = vmatprep.subr.bf16.mxu1 %v10915_v43  ;;  %v4068_v49 = vsel %vm12429_vm3, %v12394_v24, 0.0  ;;  %v14470_v25 = vpack.c.bf16 %v12314_v60, %v12300_v32 }
 0x3e8   : > { %v3913_v23 = vmax.f32 %v3887_v11, %v3903_v44  ;;  %v3808_v39 = vadd.f32 %v12260_v21, %v3726_v18  ;;  %v9812_v30 = vpop.f32.mrb[30].mxu0  ;;  %3874 = vst.msk [vmem:[#allocation5 + $0x68] sm:$0xff] %vm13950_vm8, %v3857_v57  ;;  %v12459_v44 = vld [vmem:[#allocation3 + $0x28] sm:$0xff]  ;;  %v10926_v32 = vld [vmem:[%s13766_s3 + $0xb0] sm:$0xff]  }
 0x3e9   : > { %v12438_v35 = vld [vmem:[#allocation3 + $0x29] sm:$0xff]  ;;  %v3842_v18 = vmax.f32 %v3810_v33, 0.0  ;;  %v3811_v27 = vadd.f32 %v9812_v30, %v12260_v21  ;;  %v3729_v20 = vpop.f32.mrb[31].mxu0 }
 0x3ea   : > { %v12440_v52 = vld [vmem:[#allocation3 + $0x2f] sm:$0xff]  ;;  %3925 = vst.msk [vmem:[#allocation3 + $0x38] sm:$0xff] %vm13950_vm8, %v3913_v23  ;;  %v5145_v33 = vsel %vm12422_vm12, %v12438_v35, 0.0  ;;  %v3840_v57 = vmax.f32 %v3808_v39, 0.0  ;;  %v3809_v4 = vadd.f32 %v12260_v21, %v3729_v20  ;;  %9852 = vmatpush3.bf16.msra.mxu1 %v10915_v43  ;;  %v14451_v20 = vand.u32 7, %v14432_v56 }
 0x3eb   : > { %v12444_v46 = vld [vmem:[#allocation3 + $0x30] sm:$0xff]  ;;  %v4878_v11 = vsel %vm12340_vm4, %v12440_v52, 0.0  ;;  %v3843_v8 = vmax.f32 %v3811_v27, 0.0  ;;  %v4069_v39 = vsel %vm12448_vm0, %v12440_v52, 0.0  ;;  %9861 = vmatprep.subr.bf16.mxu1 %v12436_v58  ;;  %v14455_v56 = vld [vmem:[#allocation33_spill] sm:$0xff] }
 0x3ec   : > { %v12461_v30 = vpack.c.bf16 %v4878_v11, %v4877_v36  ;;  %v12466_v1 = vpack.c.bf16 %v12444_v46, %v12459_v44  ;;  %v3858_v23 = vmax.f32 %v3840_v57, %v3842_v18  ;;  %v3841_v36 = vmax.f32 %v3809_v4, 0.0  ;;  %v10929_v11 = vld [vmem:[%s13766_s3 + $0xc8] sm:$0xff]  }
 0x3ed   : > { %v4074_v21 = vpack.c.bf16 %v4069_v39, %v4068_v49  ;;  %vm12481_vm11 = vcmp.le.s32.totalorder %v14451_v20, 6  ;;  %v3981_v39 = vand.u32 7, %v14455_v56  ;;  %v10924_v20 = vld [vmem:[%s13766_s3 + $0xa0] sm:$0xff]  }
 0x3ee   : > { %9825 = vmatprep.mubr.msk.bf16.mxu0 %vm13950_vm8, %v12466_v1  ;;  %3875 = vst.msk [vmem:[#allocation5 + $0x70] sm:$0xff] %vm13950_vm8, %v3858_v23  ;;  %v3859_v27 = vmax.f32 %v3841_v36, %v3843_v8  ;;  %v14454_v8 = vld [vmem:[#allocation27_spill] sm:$0xff] }
 0x3ef   : > { %9841 = vmatprep.mubr.msk.bf16.mxu1 %vm13950_vm8, %v4074_v21  ;;  %v3889_v43 = vld [vmem:[#allocation5 + $0x60] ss:$2 sm:$0xff]  ;;  %v3905_v18 = vld [vmem:[#allocation5 + $0x61] ss:$2 sm:$0xff]  ;;  %v3974_v23 = vand.u32 7, %v14454_v8  ;;  %vm12507_vm2 = vcmp.ge.s32.totalorder %v3981_v39, 1 }
 0x3f0   : > { %v3914_v4 = vmax.f32 %v3889_v43, %v3905_v18  ;;  %3876 = vst.msk [vmem:[#allocation5 + $0x78] sm:$0xff] %vm13950_vm8, %v3859_v27  ;;  %v12501_v43 = vld [vmem:[#allocation3 + $0x11] sm:$0xff]  ;;  %vm12584_vm9 = vcmp.le.s32.totalorder %v3981_v39, 6  ;;  %v4471_v39 = vsel %vm12334_vm6, %v12344_v55, 0.0 }
 0x3f1   : > { %v12485_v57 = vld [vmem:[#allocation3 + $0x31] sm:$0xff]  ;;  %vm12503_vm1 = vcmp.ge.s32.totalorder %v3974_v23, 1  ;;  %vm12597_vm7 = vcmp.le.s32.totalorder %v3974_v23, 6 }
 0x3f2   : > { %v12488_v48 = vld [vmem:[#allocation3 + $0x37] sm:$0xff]  ;;  %v5146_v49 = vsel %vm12481_vm11, %v12485_v57, 0.0  ;;  %3926 = vst.msk [vmem:[#allocation3 + $0x40] sm:$0xff] %vm13950_vm8, %v3914_v4  ;;  %v4608_v4 = vpack.c.bf16 %v12459_v44, %v12347_v37  ;;  %v4738_v37 = vsel %vm12403_vm10, %v12358_v2, 0.0  ;;  %v4737_v44 = vsel %vm12362_vm14, %v12501_v43, 0.0 }
 0x3f3   : > { %v4879_v36 = vsel %vm12429_vm3, %v12488_v48, 0.0  ;;  %v12499_v21 = vpack.c.bf16 %v5146_v49, %v5145_v33  ;;  %v12511_v56 = vld [vmem:[#allocation3 + $0x38] sm:$0xff]  ;;  %v4332_v49 = vsel %vm12403_vm10, %v12501_v43, 0.0  ;;  %v4474_v23 = vsel %vm12448_vm0, %v12488_v48, 0.0 }
 0x3f7   : > { %v3891_v27 = vld [vmem:[#allocation5 + $0x70] ss:$2 sm:$0xff]  ;;  %v3907_v18 = vld [vmem:[#allocation5 + $0x71] ss:$2 sm:$0xff] }
 0x3f8   : > { %v3915_v8 = vmax.f32 %v3891_v27, %v3907_v18  ;;  %v4070_v27 = vsel %vm12503_vm1, %v12488_v48, 0.0  ;;  %v10922_v48 = vld [vmem:[%s13766_s3 + $0x90] sm:$0xff]  }
 0x3f9   : > { %v12513_v53 = vld [vmem:[#allocation3 + $0x40] sm:$0xff] }
 0x3fa   : > { %v12515_v33 = vld [vmem:[#allocation3 + $0x3f] sm:$0xff]  ;;  %3927 = vst.msk [vmem:[#allocation3 + $0x48] sm:$0xff] %vm13950_vm8, %v3915_v8  ;;  %v12525_v41 = vpack.c.bf16 %v12513_v53, %v12511_v56  ;;  %v4331_v8 = vsel %vm12362_vm14, %v4307_v14, 0.0  ;;  %v14463_v14 = vand.u32 7, %v14442_v16 }
 0x3fb   : > { %v12520_v54 = vld [vmem:[#allocation3 + $0x39] sm:$0xff]  ;;  %v4071_v18 = vsel %vm12507_vm2, %v12515_v33, 0.0  ;;  %v4880_v17 = vsel %vm12448_vm0, %v12515_v33, 0.0  ;;  %v4339_v38 = vpack.c.bf16 %v4332_v49, %v4331_v8  ;;  %v4475_v55 = vsel %vm12503_vm1, %v12515_v33, 0.0 }
 0x3fc   : > { %v4075_v47 = vpack.c.bf16 %v4071_v18, %v4070_v27  ;;  %v5147_v63 = vsel %vm12535_vm15, %v12520_v54, 0.0  ;;  %9826 = vmatmul.mubr.msk.bf16.gmra.mrb[36].mxu0 %vm13950_vm8, %v12525_v41  ;;  %v12549_v7 = vpack.c.bf16 %v4880_v17, %v4879_v36  ;;  %vm12555_vm13 = vcmp.le.s32.totalorder %v14463_v14, 6  ;;  %v10917_v14 = vld [vmem:[%s13766_s3 + $0x68] sm:$0xff]  }
 0x3fd   : > { %v4334_v18 = vsel %vm12481_vm11, %v12392_v3, 0.0  ;;  %v4336_v49 = vsel %vm12555_vm13, %v12485_v57, 0.0  ;;  %v10925_v33 = vld [vmem:[%s13766_s3 + $0xa8] sm:$0xff]   ;;  %v4742_v59 = vsel %vm12555_vm13, %v12520_v54, 0.0  ;;  %vm14492_vm0 = vnez %v14091_v22 }
 0x3fe   : > { %9842 = vmatmul.mubr.msk.bf16.gmra.mrb[4].mxu1 %vm13950_vm8, %v4075_v47  ;;  %v4333_v47 = vsel %vm12422_vm12, %v12358_v2, 0.0  ;;  %v10928_v2 = vld [vmem:[%s13766_s3 + $0xc0] sm:$0xff]  }
 0x3ff   : > { %9853 = vmatprep.mubr.msk.bf16.mxu1 %vm13950_vm8, %v4339_v38  ;;  %v4340_v8 = vpack.c.bf16 %v4334_v18, %v4333_v47  ;;  %v4335_v38 = vsel %vm12535_vm15, %v12438_v35, 0.0  ;;  %v10942_v18 = vld [vmem:[%s13768_s5 + $0x28] sm:$0xff]  }
 0x400   : > { %v4341_v62 = vpack.c.bf16 %v4336_v49, %v4335_v38  ;;  %v10918_v49 = vld [vmem:[%s13766_s3 + $0x70] sm:$0xff]   ;;  %v4745_v38 = vpack.c.bf16 %v4738_v37, %v4737_v44  ;;  %v8852_v44 = vld [vmem:[%s13767_s4] ss:$0 sm:$0xff] }
 0x401   : > { %v12565_v17 = vld [vmem:[#allocation3 + $0x41] sm:$0xff]  ;;  %v4874_v16 = vld [vmem:[#allocation3 + $0x4f] sm:$0xff] }
 0x402   : > { %v4468_v36 = vld [vmem:[#allocation3 + $0x47] sm:$0xff]  ;;  %v4882_v29 = vsel %vm12507_vm2, %v4874_v16, 0.0  ;;  %v5148_v13 = vsel %vm12555_vm13, %v12565_v17, 0.0  ;;  %v4743_v42 = vsel %vm12597_vm7, %v12565_v17, 0.0  ;;  %v10943_v16 = vld [vmem:[%s13768_s5 + $0x8] sm:$0xff]   ;;  %vm14480_vm13 = vnez %v14026_v34 }
 0x403   : > { %v4881_v50 = vsel %vm12503_vm1, %v4468_v36, 0.0  ;;  %v12590_v12 = vpack.c.bf16 %v5148_v13, %v5147_v63  ;;  %v4337_v13 = vsel %vm12597_vm7, %v12520_v54, 0.0  ;;  %v10920_v63 = vld [vmem:[%s13766_s3 + $0x80] sm:$0xff]   ;;  %v4476_v19 = vsel %vm12507_vm2, %v4468_v36, 0.0  ;;  %v12664_v60 = vld [vmem:[#allocation3 + $0x48] sm:$0xff]  ;;  %v10930_v54 = vld [vmem:[%s13766_s3 + $0xd0] sm:$0xff]  }
 0x404   : > { %v12588_v47 = vpack.c.bf16 %v4882_v29, %v4881_v50  ;;  %v4338_v29 = vsel %vm12584_vm9, %v12565_v17, 0.0  ;;  %v10919_v50 = vld [vmem:[%s13766_s3 + $0x78] sm:$0xff]   ;;  %v4480_v40 = vpack.c.bf16 %v4476_v19, %v4475_v55  ;;  %v4609_v36 = vpack.c.bf16 %v12511_v56, %v12444_v46  ;;  %v10932_v17 = vld [vmem:[%s13766_s3 + $0xe0] sm:$0xff]  }
 0x405   : > { %v4610_v46 = vpack.c.bf16 %v12664_v60, %v12513_v53  ;;  %v10927_v56 = vld [vmem:[%s13766_s3 + $0xb8] sm:$0xff]   ;;  %v4740_v53 = vsel %vm12481_vm11, %v12438_v35, 0.0  ;;  %v5455_v19 = vld [vmem:[#allocation4 + $0x10] sm:$0xff]  ;;  %vm14485_vm2 = vnez %v14052_v6  ;;  %vm14488_vm1 = vnez %v14065_v10  ;;  %v14514_v6 = vld [vmem:[#allocation11_spill] sm:$0xff] }
 0x406   : > { %9854 = vmatmul.mubr.msk.bf16.vlgmr.msra.gmra.mrb[0].mxu1 %vm13950_vm8, %v4340_v8  ;;  %v4746_v43 = vpack.c.bf16 %v4740_v53, %v4739_v9  ;;  %v4736_v27 = vld [vmem:[#allocation3 + $0x49] sm:$0xff]  ;;  %vm14489_vm11 = vnez %v14077_v61 }
 0x407   : > { %9862 = vmatpush3.bf16.msra.mxu1 %v12436_v58  ;;  %9857 = vmatprep.mubr.msk.bf16.mxu1 %vm13950_vm8, %v4341_v62  ;;  %v4342_v62 = vpack.c.bf16 %v4338_v29, %v4337_v13  ;;  %v4472_v58 = vsel %vm12340_vm4, %v12394_v24, 0.0  ;;  %v4744_v3 = vsel %vm12584_vm9, %v4736_v27, 0.0  ;;  %v10935_v29 = vld [vmem:[%s13766_s3 + $0xf8] sm:$0xff]  }
 0x408   : > { %9863 = vmatprep.subr.bf16.mxu1 %v10917_v14  ;;  %v4478_v8 = vpack.c.bf16 %v4472_v58, %v4471_v39  ;;  %v4748_v15 = vpack.c.bf16 %v4744_v3, %v4743_v42  ;;  %v5366_v55 = vld [vmem:[#allocation4 + $0x7] sm:$0xff] }
 0x40b   : > { %9864 = vmatpush3.bf16.msra.mxu1 %v10917_v14  ;;  %v4741_v14 = vsel %vm12535_vm15, %v12485_v57, 0.0  ;;  %v10931_v57 = vld [vmem:[%s13766_s3 + $0xd8] sm:$0xff]   ;;  %vm14482_vm15 = vnez %v14039_v45 }
 0x40c   : > { %9865 = vmatprep.subr.bf16.mxu1 %v10918_v49  ;;  %v4747_v35 = vpack.c.bf16 %v4742_v59, %v4741_v14 }
 0x40e   : > { %9858 = vmatmul.mubr.msk.bf16.gmra.mrb[4].mxu1 %vm13950_vm8, %v4342_v62  ;;  %v10939_v62 = vld [vmem:[%s13766_s3 + $0x118] sm:$0xff]  }
 0x40f   : > { %9866 = vmatpush3.bf16.msra.mxu1 %v10918_v49  ;;  %9869 = vmatprep.mubr.msk.bf16.mxu1 %vm13950_vm8, %v12323_v5  ;;  %v4473_v5 = vsel %vm12429_vm3, %v12440_v52, 0.0  ;;  %v10923_v52 = vld [vmem:[%s13766_s3 + $0x98] sm:$0xff]   ;;  %v10933_v49 = vld [vmem:[%s13766_s3 + $0xe8] sm:$0xff]  }
 0x410   : > { %9867 = vmatprep.subr.bf16.mxu1 %v10919_v50  ;;  %v4479_v24 = vpack.c.bf16 %v4474_v23, %v4473_v5  ;;  %v10945_v5 = vld [vmem:[%s13768_s5 + $0x10] sm:$0xff]  }
 0x413   : > { %9868 = vmatpush3.bf16.msra.mxu1 %v10919_v50 }
 0x414   : > { %9877 = vmatprep.subr.bf16.mxu1 %v10920_v63 }
 0x416   : > { %9870 = vmatmul.mubr.msk.bf16.vlgmr.msra.gmra.mrb[0].mxu1 %vm13950_vm8, %v4478_v8  ;;  %v10944_v8 = vld [vmem:[%s13768_s5 + $0x30] sm:$0xff]  }
 0x417   : > { %9878 = vmatpush3.bf16.msra.mxu1 %v10920_v63  ;;  %9873 = vmatprep.mubr.msk.bf16.mxu1 %vm13950_vm8, %v4479_v24  ;;  %v10947_v24 = vld [vmem:[%s13768_s5 + $0x18] sm:$0xff]  }
 0x418   : > { %9879 = vmatprep.subr.bf16.mxu1 %v10921_v51 }
 0x41b   : > { %9880 = vmatpush3.bf16.msra.mxu1 %v10921_v51  ;;  %v10946_v51 = vld [vmem:[%s13768_s5 + $0x38] sm:$0xff]  }
 0x41c   : > { %9881 = vmatprep.subr.bf16.mxu1 %v10922_v48 }
 0x41e   : > { %9874 = vmatmul.mubr.msk.bf16.gmra.mrb[4].mxu1 %vm13950_vm8, %v4480_v40 }
 0x41f   : > { %9882 = vmatpush3.bf16.msra.mxu1 %v10922_v48  ;;  %9885 = vmatprep.mubr.msk.bf16.mxu1 %vm13950_vm8, %v14470_v25  ;;  %v5454_v48 = vld [vmem:[#allocation4 + $0x8] sm:$0xff]  ;;  %v14471_v25 = vld [vmem:[#allocation7_spill] sm:$0xff] }
 0x420   : > { %9883 = vmatprep.subr.bf16.mxu1 %v10923_v52  ;;  %v5486_v40 = vpack.c.bf16 %v5455_v19, %v5454_v48 }
 0x422   : > { %9965 = vmatprep.mubr.msk.bf16.mxu0 %vm13950_vm8, %v5486_v40 }
 0x423   : > { %9884 = vmatpush3.bf16.msra.mxu1 %v10923_v52  ;;  %v5367_v52 = vld [vmem:[#allocation4 + $0xf] sm:$0xff] }
 0x424   : > { %9893 = vmatprep.subr.bf16.mxu1 %v10924_v20 }
 0x426   : > { %9886 = vmatmul.mubr.msk.bf16.vlgmr.msra.gmra.mrb[0].mxu1 %vm13950_vm8, %v4608_v4  ;;  %v12791_v4 = vld [vmem:[%s13768_s5 + $0x40] sm:$0xff]  }
 0x427   : > { %9894 = vmatpush3.bf16.msra.mxu1 %v10924_v20  ;;  %9889 = vmatprep.mubr.msk.bf16.mxu1 %vm13950_vm8, %v4609_v36 }
 0x428   : > { %9895 = vmatprep.subr.bf16.mxu1 %v10925_v33 }
 0x42b   : > { %9896 = vmatpush3.bf16.msra.mxu1 %v10925_v33 }
 0x42c   : > { %9897 = vmatprep.subr.bf16.mxu1 %v10926_v32 }
 0x42e   : > { %9890 = vmatmul.mubr.msk.bf16.gmra.mrb[4].mxu1 %vm13950_vm8, %v4610_v46 }
 0x42f   : > { %9898 = vmatpush3.bf16.msra.mxu1 %v10926_v32  ;;  %9901 = vmatprep.mubr.msk.bf16.mxu1 %vm13950_vm8, %v4745_v38 }
 0x430   : > { %9899 = vmatprep.subr.bf16.mxu1 %v10927_v56 }
 0x433   : > { %9900 = vmatpush3.bf16.msra.mxu1 %v10927_v56 }
 0x434   : > { %9909 = vmatprep.subr.bf16.mxu1 %v10928_v2 }
 0x436   : > { %9902 = vmatmul.mubr.msk.bf16.vlgmr.msra.gmra.mrb[0].mxu1 %vm13950_vm8, %v4746_v43 }
 0x437   : > { %9910 = vmatpush3.bf16.msra.mxu1 %v10928_v2  ;;  %9905 = vmatprep.mubr.msk.bf16.mxu1 %vm13950_vm8, %v4747_v35 }
 0x438   : > { %9911 = vmatprep.subr.bf16.mxu1 %v10929_v11 }
 0x43b   : > { %9912 = vmatpush3.bf16.msra.mxu1 %v10929_v11 }
 0x43c   : > { %9913 = vmatprep.subr.bf16.mxu1 %v10930_v54 }
 0x43e   : > { %9906 = vmatmul.mubr.msk.bf16.gmra.mrb[4].mxu1 %vm13950_vm8, %v4748_v15 }
 0x43f   : > { %9914 = vmatpush3.bf16.msra.mxu1 %v10930_v54  ;;  %9917 = vmatprep.mubr.msk.bf16.mxu1 %vm13950_vm8, %v12378_v28  ;;  %v10934_v28 = vld [vmem:[%s13766_s3 + $0xf0] sm:$0xff]  }
 0x440   : > { %9915 = vmatprep.subr.bf16.mxu1 %v10931_v57 }
 0x443   : > { %9916 = vmatpush3.bf16.msra.mxu1 %v10931_v57 }
 0x444   : > { %9925 = vmatprep.subr.bf16.mxu1 %v10932_v17 }
 0x446   : > { %9918 = vmatmul.mubr.msk.bf16.vlgmr.msra.gmra.mrb[0].mxu1 %vm13950_vm8, %v12461_v30  ;;  %v10936_v30 = vld [vmem:[%s13766_s3 + $0x100] sm:$0xff]  }
 0x447   : > { %9926 = vmatpush3.bf16.msra.mxu1 %v10932_v17  ;;  %9921 = vmatprep.mubr.msk.bf16.mxu1 %vm13950_vm8, %v12549_v7  ;;  %v10937_v7 = vld [vmem:[%s13766_s3 + $0x108] sm:$0xff]  }
 0x448   : > { %9927 = vmatprep.subr.bf16.mxu1 %v10933_v49 }
 0x44b   : > { %9928 = vmatpush3.bf16.msra.mxu1 %v10933_v49 }
 0x44c   : > { %9929 = vmatprep.subr.bf16.mxu1 %v10934_v28 }
 0x44e   : > { %9922 = vmatmul.mubr.msk.bf16.gmra.mrb[4].mxu1 %vm13950_vm8, %v12588_v47  ;;  %v5012_v47 = vld [vmem:[#allocation3 + $0x50] sm:$0xff] }
 0x44f   : > { %9930 = vmatpush3.bf16.msra.mxu1 %v10934_v28  ;;  %9933 = vmatprep.mubr.msk.bf16.mxu1 %vm13950_vm8, %v12356_v31  ;;  %v10938_v31 = vld [vmem:[%s13766_s3 + $0x110] sm:$0xff]   ;;  %v5016_v13 = vpack.c.bf16 %v5012_v47, %v12664_v60 }
 0x450   : > { %9931 = vmatprep.subr.bf16.mxu1 %v10935_v29 }
 0x453   : > { %9932 = vmatpush3.bf16.msra.mxu1 %v10935_v29 }
 0x454   : > { %9941 = vmatprep.subr.bf16.mxu1 %v10936_v30 }
 0x456   : > { %9934 = vmatmul.mubr.msk.bf16.vlgmr.msra.gmra.mrb[0].mxu1 %vm13950_vm8, %v12466_v1  ;;  %v5149_v1 = vsel %vm12597_vm7, %v4736_v27, 0.0  ;;  %vm14472_vm7 = vnez %v14471_v25 }
 0x457   : > { %9942 = vmatpush3.bf16.msra.mxu1 %v10936_v30  ;;  %9937 = vmatprep.mubr.msk.bf16.mxu1 %vm13950_vm8, %v12525_v41  ;;  %v5142_v41 = vld [vmem:[#allocation3 + $0x51] sm:$0xff]  ;;  %v5398_v20 = vsel %vm14472_vm7, %v5366_v55, 0.0 }
 0x458   : > { %9943 = vmatprep.subr.bf16.mxu1 %v10937_v7  ;;  %v5150_v50 = vsel %vm12584_vm9, %v5142_v41, 0.0  ;;  %v5430_v33 = vpack.c.bf16 %v5367_v52, %v5398_v20  ;;  %vm14476_vm9 = vnez %v14011_v0  ;;  %v10949_v52 = vld [vmem:[%s13768_s5 + $0x48] sm:$0xff]  }
 0x459   : > { %v5154_v63 = vpack.c.bf16 %v5150_v50, %v5149_v1 }
 0x45b   : > { %9944 = vmatpush3.bf16.msra.mxu1 %v10937_v7 }
 0x45c   : > { %9945 = vmatprep.subr.bf16.mxu1 %v10938_v31 }
 0x45e   : > { %9938 = vmatmul.mubr.msk.bf16.gmra.mrb[4].mxu1 %vm13950_vm8, %v5016_v13 }
 0x45f   : > { %9946 = vmatpush3.bf16.msra.mxu1 %v10938_v31  ;;  %9949 = vmatprep.mubr.msk.bf16.mxu1 %vm13950_vm8, %v12416_v26 }
 0x460   : > { %9947 = vmatprep.subr.bf16.mxu1 %v10939_v62 }
 0x463   : > { %9948 = vmatpush3.bf16.msra.mxu1 %v10939_v62 }
 0x466   : > { %9950 = vmatmul.mubr.msk.bf16.vlgmr.msra.gmra.mrb[0].mxu1 %vm13950_vm8, %v12499_v21  ;;  %v10940_v21 = vld [vmem:[%s13768_s5 + $0x20] sm:$0xff]  }
 0x467   : > { %9953 = vmatprep.mubr.msk.bf16.mxu1 %vm13950_vm8, %v12590_v12  ;;  %v10941_v12 = vld [vmem:[%s13768_s5] sm:$0xff]   ;;  %9957 = vmatprep.subr.bf16.mxu0 %v10940_v21 }
 0x468   : > { %9997 = vmatprep.subr.bf16.mxu1 %v10941_v12  ;;  %9958 = vmatpush3.bf16.msra.mxu0 %v10940_v21 }
 0x469   : > { %9998 = vmatpush3.bf16.msra.mxu1 %v10941_v12  ;;  %9959 = vmatprep.subr.bf16.mxu0 %v10942_v18 }
 0x46a   : > { %9999 = vmatprep.subr.bf16.mxu1 %v10943_v16 }
 0x46c   : > { %9960 = vmatpush3.bf16.msra.mxu0 %v10942_v18 }
 0x46d   : > { %10000 = vmatpush3.bf16.msra.mxu1 %v10943_v16  ;;  %9961 = vmatprep.subr.bf16.mxu0 %v10944_v8 }
 0x46e   : > { %9954 = vmatmul.mubr.msk.bf16.gmra.mrb[4].mxu1 %vm13950_vm8, %v5154_v63  ;;  %10001 = vmatprep.subr.bf16.mxu1 %v10945_v5 }
 0x46f   : > { %10005 = vmatprep.mubr.msk.bf16.mxu1 %vm13950_vm8, %v5430_v33 }
 0x470   : > { %9962 = vmatpush3.bf16.msra.mxu0 %v10944_v8 }
 0x471   : > { %10002 = vmatpush3.bf16.msra.mxu1 %v10945_v5  ;;  %9963 = vmatprep.subr.bf16.mxu0 %v10946_v51  ;;  %v14517_v5 = vld [vmem:[#allocation21_spill] sm:$0xff] }
 0x472   : > { %10003 = vmatprep.subr.bf16.mxu1 %v10947_v24 }
 0x474   : > { %9964 = vmatpush3.bf16.msra.mxu0 %v10946_v51 }
 0x475   : > { %10004 = vmatpush3.bf16.msra.mxu1 %v10947_v24 }
 0x476   : > { %10037 = vmatprep.subr.bf16.mxu1 %v12791_v4 }
 0x4b0   : > { %v9823_v58 = vpop.f32.mrb[32].mxu0 }
 0x4b1   : > { %v4175_v26 = vpop.f32.mrb[33].mxu0 }
 0x4b2   : > { %v9824_v23 = vpop.f32.mrb[34].mxu0 }
 0x4b3   : > { %v4178_v39 = vpop.f32.mrb[35].mxu0 }
 0x4cf   : > { %v9827_v36 = vpop.f32.mrb[36].mxu0 }
 0x4d0   : > { %v4191_v32 = vpop.f32.mrb[37].mxu0 }
 0x4d1   : > { %v9828_v60 = vpop.f32.mrb[38].mxu0 }
 0x4d2   : > { %v4194_v37 = vpop.f32.mrb[39].mxu0 }
 0x539   : > { %v9951_v46 = vpop.f32.mrb[0].mxu1 }
 0x53a   : > { %v10317_v56 = vadd.f32 %v9951_v46, %v9823_v58  ;;  %v5234_v38 = vpop.f32.mrb[1].mxu1 }
 0x53b   : > { %v10318_v2 = vadd.f32 %v5234_v38, %v4175_v26  ;;  %v9952_v53 = vpop.f32.mrb[2].mxu1  ;;  %v10950_v38 = vld [vmem:[%s13768_s5 + $0x50] sm:$0xff]  }
 0x53c   : > { %v5282_v59 = vadd.f32 %v10317_v56, %v8852_v44  ;;  %v10319_v9 = vadd.f32 %v9952_v53, %v9824_v23  ;;  %v5237_v43 = vpop.f32.mrb[3].mxu1 }
 0x53d   : > { %v5280_v14 = vadd.f32 %v10318_v2, %v8852_v44  ;;  %v10320_v11 = vadd.f32 %v5237_v43, %v4178_v39 }
 0x53e   : > { %v5290_v35 = vmax.f32 %v5282_v59, 0.0  ;;  %v5283_v27 = vadd.f32 %v10319_v9, %v8852_v44 }
 0x53f   : > { %v5288_v54 = vmax.f32 %v5280_v14, 0.0  ;;  %v5281_v42 = vadd.f32 %v10320_v11, %v8852_v44 }
 0x540   : > { %5311 = vst [vmem:[#allocation4 + $0x58] ss:$2 sm:$0xff] %v5290_v35  ;;  %5313 = vst [vmem:[#allocation4 + $0x68] ss:$2 sm:$0xff] %v5290_v35  ;;  %v5291_v3 = vmax.f32 %v5283_v27, 0.0 }
 0x541   : > { %5343 = vst [vmem:[#allocation4 + $0x59] ss:$2 sm:$0xff] %v5290_v35  ;;  %5345 = vst [vmem:[#allocation4 + $0x69] ss:$2 sm:$0xff] %v5290_v35  ;;  %v5289_v15 = vmax.f32 %v5281_v42, 0.0  ;;  %v9955_v57 = vpop.f32.mrb[4].mxu1 }
 0x542   : > { %5303 = vst [vmem:[#allocation4 + $0x18] ss:$2 sm:$0xff] %v5288_v54  ;;  %5305 = vst [vmem:[#allocation4 + $0x28] ss:$2 sm:$0xff] %v5288_v54  ;;  %v10321_v17 = vadd.f32 %v9955_v57, %v9827_v36  ;;  %v5250_v49 = vpop.f32.mrb[5].mxu1 }
 0x543   : > { %5335 = vst [vmem:[#allocation4 + $0x19] ss:$2 sm:$0xff] %v5288_v54  ;;  %5337 = vst [vmem:[#allocation4 + $0x29] ss:$2 sm:$0xff] %v5288_v54  ;;  %v10322_v28 = vadd.f32 %v5250_v49, %v4191_v32  ;;  %v9956_v29 = vpop.f32.mrb[6].mxu1 }
 0x544   : > { %5315 = vst [vmem:[#allocation4 + $0x78] ss:$2 sm:$0xff] %v5291_v3  ;;  %5317 = vst [vmem:[#allocation4 + $0x88] ss:$2 sm:$0xff] %v5291_v3  ;;  %v5286_v30 = vadd.f32 %v10321_v17, %v8852_v44  ;;  %v10323_v7 = vadd.f32 %v9956_v29, %v9828_v60  ;;  %v5253_v31 = vpop.f32.mrb[7].mxu1 }
 0x545   : > { %5347 = vst [vmem:[#allocation4 + $0x79] ss:$2 sm:$0xff] %v5291_v3  ;;  %5349 = vst [vmem:[#allocation4 + $0x89] ss:$2 sm:$0xff] %v5291_v3  ;;  %v5284_v47 = vadd.f32 %v10322_v28, %v8852_v44  ;;  %v10324_v13 = vadd.f32 %v5253_v31, %v4194_v37 }
 0x546   : > { %5307 = vst [vmem:[#allocation4 + $0x38] ss:$2 sm:$0xff] %v5289_v15  ;;  %5309 = vst [vmem:[#allocation4 + $0x48] ss:$2 sm:$0xff] %v5289_v15  ;;  %v5294_v62 = vmax.f32 %v5286_v30, 0.0  ;;  %v5287_v41 = vadd.f32 %v10323_v7, %v8852_v44 }
 0x547   : > { %5339 = vst [vmem:[#allocation4 + $0x39] ss:$2 sm:$0xff] %v5289_v15  ;;  %5341 = vst [vmem:[#allocation4 + $0x49] ss:$2 sm:$0xff] %v5289_v15  ;;  %v5292_v1 = vmax.f32 %v5284_v47, 0.0  ;;  %v5285_v50 = vadd.f32 %v10324_v13, %v8852_v44  ;;  %v10951_v47 = vld [vmem:[%s13768_s5 + $0x58] sm:$0xff]  }
 0x548   : > { %5327 = vst [vmem:[#allocation4 + $0xd8] ss:$2 sm:$0xff] %v5294_v62  ;;  %5329 = vst [vmem:[#allocation4 + $0xe8] ss:$2 sm:$0xff] %v5294_v62  ;;  %v5295_v63 = vmax.f32 %v5287_v41, 0.0  ;;  %v12832_v9 = vld [vmem:[#allocation4 + $0x67] sm:$0xff] }
 0x549   : > { %5359 = vst [vmem:[#allocation4 + $0xd9] ss:$2 sm:$0xff] %v5294_v62  ;;  %5361 = vst [vmem:[#allocation4 + $0xe9] ss:$2 sm:$0xff] %v5294_v62  ;;  %v5293_v39 = vmax.f32 %v5285_v50, 0.0  ;;  %v12834_v11 = vld [vmem:[#allocation4 + $0x6f] sm:$0xff] }
 0x54a   : > { %v5456_v58 = vld [vmem:[#allocation4 + $0x18] sm:$0xff]  ;;  %v5457_v26 = vld [vmem:[#allocation4 + $0x20] sm:$0xff]  ;;  %v5458_v23 = vld [vmem:[#allocation4 + $0x28] sm:$0xff]  ;;  %5319 = vst [vmem:[#allocation4 + $0x98] ss:$2 sm:$0xff] %v5292_v1  ;;  %v6373_v7 = vsel %vm14485_vm2, %v12832_v9, 0.0 }
 0x54b   : > { %5321 = vst [vmem:[#allocation4 + $0xa8] ss:$2 sm:$0xff] %v5292_v1  ;;  %5351 = vst [vmem:[#allocation4 + $0x99] ss:$2 sm:$0xff] %v5292_v1  ;;  %v12799_v21 = vpack.c.bf16 %v5457_v26, %v5456_v58  ;;  %v5459_v12 = vld [vmem:[#allocation4 + $0x30] sm:$0xff]  ;;  %v5369_v16 = vld [vmem:[#allocation4 + $0x1f] sm:$0xff]  ;;  %v12873_v13 = vpack.c.bf16 %v12834_v11, %v6373_v7 }
 0x54c   : > { %5353 = vst [vmem:[#allocation4 + $0xa9] ss:$2 sm:$0xff] %v5292_v1  ;;  %v5368_v18 = vld [vmem:[#allocation4 + $0x17] sm:$0xff]  ;;  %5331 = vst [vmem:[#allocation4 + $0xf8] ss:$2 sm:$0xff] %v5295_v63  ;;  %v12801_v8 = vpack.c.bf16 %v5459_v12, %v5458_v23  ;;  %v5370_v24 = vld [vmem:[#allocation4 + $0x27] sm:$0xff] }
 0x54d   : > { %14473 = vst [vmem:[#allocation23_spill] sm:$0xff] %v12799_v21  ;;  %5333 = vst [vmem:[#allocation4 + $0x108] ss:$2 sm:$0xff] %v5295_v63  ;;  %v5400_v51 = vsel %vm11125_vm5, %v5368_v18, 0.0  ;;  %v5371_v48 = vld [vmem:[#allocation4 + $0x2f] sm:$0xff]  ;;  %v6363_v19 = vsel %vm14472_vm7, %v5368_v18, 0.0  ;;  %9966 = vmatmul.mubr.msk.bf16.vlgmr.msra.gmra.mrb[40].mxu0 %vm13950_vm8, %v12799_v21 }
 0x54e   : > { %5363 = vst [vmem:[#allocation4 + $0xf9] ss:$2 sm:$0xff] %v5295_v63  ;;  %5365 = vst [vmem:[#allocation4 + $0x109] ss:$2 sm:$0xff] %v5295_v63  ;;  %v5431_v55 = vpack.c.bf16 %v5369_v16, %v5400_v51  ;;  %v5402_v40 = vsel %vm14476_vm9, %v5370_v24, 0.0  ;;  %v12814_v20 = vpack.c.bf16 %v5369_v16, %v6363_v19  ;;  %v6365_v33 = vsel %vm11125_vm5, %v5370_v24, 0.0  ;;  %9969 = vmatprep.mubr.msk.bf16.mxu0 %vm13950_vm8, %v12801_v8 }
 0x54f   : > { %14474 = vst [vmem:[#allocation14_spill] sm:$0xff] %v12801_v8  ;;  %5323 = vst [vmem:[#allocation4 + $0xb8] ss:$2 sm:$0xff] %v5293_v39  ;;  %v5432_v36 = vpack.c.bf16 %v5371_v48, %v5402_v40  ;;  %v5372_v32 = vld [vmem:[#allocation4 + $0x37] sm:$0xff]  ;;  %v5373_v60 = vld [vmem:[#allocation4 + $0x3f] sm:$0xff]  ;;  %v12820_v46 = vpack.c.bf16 %v5371_v48, %v6365_v33 }
 0x550   : > { %5325 = vst [vmem:[#allocation4 + $0xc8] ss:$2 sm:$0xff] %v5293_v39  ;;  %5355 = vst [vmem:[#allocation4 + $0xb9] ss:$2 sm:$0xff] %v5293_v39  ;;  %v5374_v37 = vld [vmem:[#allocation4 + $0x47] sm:$0xff]  ;;  %10006 = vmatmul.mubr.msk.bf16.vlgmr.msra.gmra.mrb[8].mxu1 %vm13950_vm8, %v5431_v55  ;;  %v5375_v44 = vld [vmem:[#allocation4 + $0x4f] sm:$0xff] }
 0x551   : > { %5357 = vst [vmem:[#allocation4 + $0xc9] ss:$2 sm:$0xff] %v5293_v39  ;;  %14477 = vst [vmem:[#allocation24_spill] sm:$0xff] %v12814_v20  ;;  %v12823_v56 = vld [vmem:[#allocation4 + $0x57] sm:$0xff]  ;;  %v6367_v2 = vsel %vm14476_vm9, %v5372_v32, 0.0  ;;  %10038 = vmatpush3.bf16.msra.mxu1 %v12791_v4  ;;  %10009 = vmatprep.mubr.msk.bf16.mxu1 %vm13950_vm8, %v5432_v36  ;;  %v5461_v59 = vld [vmem:[#allocation4 + $0x40] sm:$0xff] }
 0x552   : > { %14478 = vst [vmem:[#allocation34_spill] sm:$0xff] %v12820_v46  ;;  %v5460_v53 = vld [vmem:[#allocation4 + $0x38] sm:$0xff]  ;;  %v5462_v43 = vld [vmem:[#allocation4 + $0x48] sm:$0xff]  ;;  %v5463_v14 = vld [vmem:[#allocation4 + $0x50] sm:$0xff]  ;;  %10039 = vmatprep.subr.bf16.mxu1 %v10949_v52  ;;  %v12836_v35 = vpack.c.bf16 %v5373_v60, %v6367_v2  ;;  %v6369_v27 = vsel %vm14480_vm13, %v5374_v37, 0.0  ;;  %v5404_v54 = vsel %vm14480_vm13, %v5372_v32, 0.0 }
 0x553   : > { %v12842_v4 = vld [vmem:[#allocation4 + $0x5f] sm:$0xff]  ;;  %v12844_v42 = vld [vmem:[#allocation4 + $0x77] sm:$0xff]  ;;  %v12846_v3 = vpack.c.bf16 %v5375_v44, %v6369_v27  ;;  %v6371_v15 = vsel %vm14482_vm15, %v12823_v56, 0.0  ;;  %v12851_v57 = vpack.c.bf16 %v5461_v59, %v5460_v53  ;;  %v5406_v17 = vsel %vm14482_vm15, %v5374_v37, 0.0  ;;  %v12857_v28 = vld [vmem:[#allocation4 + $0x87] sm:$0xff]  ;;  %14487 = vst [vmem:[#allocation53_spill] sm:$0xff] %v12873_v13 }
 0x554   : > { %14479 = vst [vmem:[#allocation43_spill] sm:$0xff] %v12836_v35  ;;  %v12855_v49 = vld [vmem:[#allocation4 + $0x7f] sm:$0xff]  ;;  %v12859_v29 = vld [vmem:[#allocation4 + $0x8f] sm:$0xff]  ;;  %v12862_v30 = vpack.c.bf16 %v12842_v4, %v6371_v15  ;;  %v12867_v31 = vpack.c.bf16 %v5463_v14, %v5462_v43  ;;  %v6375_v62 = vsel %vm14488_vm1, %v12844_v42, 0.0  ;;  %v5433_v41 = vpack.c.bf16 %v5373_v60, %v5404_v54  ;;  %v12880_v1 = vld [vmem:[#allocation4 + $0x97] sm:$0xff] }
 0x555   : > { %14481 = vst [vmem:[#allocation35_spill] sm:$0xff] %v12846_v3  ;;  %14483 = vst [vmem:[#allocation44_spill] sm:$0xff] %v12851_v57  ;;  %10040 = vmatpush3.bf16.msra.mxu1 %v10949_v52  ;;  %9970 = vmatmul.mubr.msk.bf16.gmra.mrb[44].mxu0 %vm13950_vm8, %v12851_v57  ;;  %v12882_v50 = vld [vmem:[#allocation4 + $0x9f] sm:$0xff]  ;;  %v12884_v63 = vld [vmem:[#allocation4 + $0xa7] sm:$0xff]  ;;  %v6377_v58 = vsel %vm14489_vm11, %v12857_v28, 0.0  ;;  %v5434_v26 = vpack.c.bf16 %v5375_v44, %v5406_v17  ;;  %v12894_v39 = vpack.c.bf16 %v12855_v49, %v6375_v62 }
 0x556   : > { %14484 = vst [vmem:[#allocation52_spill] sm:$0xff] %v12862_v30  ;;  %14486 = vst [vmem:[#allocation61_spill] sm:$0xff] %v12867_v31  ;;  %10041 = vmatprep.subr.bf16.mxu1 %v10950_v38  ;;  %9973 = vmatprep.mubr.msk.bf16.mxu0 %vm13950_vm8, %v12867_v31  ;;  %v12891_v23 = vld [vmem:[#allocation4 + $0xaf] sm:$0xff]  ;;  %v12897_v12 = vpack.c.bf16 %v12859_v29, %v6377_v58  ;;  %v5464_v18 = vld [vmem:[#allocation4 + $0x58] sm:$0xff]  ;;  %v6379_v24 = vsel %vm14492_vm0, %v12880_v1, 0.0  ;;  %v5408_v2 = vsel %vm14485_vm2, %v12823_v56, 0.0 }
 0x557   : > { %14490 = vst [vmem:[#allocation62_spill] sm:$0xff] %v12894_v39  ;;  %v5465_v16 = vld [vmem:[#allocation4 + $0x60] sm:$0xff]  ;;  %v12900_v51 = vld [vmem:[#allocation4 + $0xb7] sm:$0xff]  ;;  %v12913_v40 = vpack.c.bf16 %v12882_v50, %v6379_v24  ;;  %v5466_v36 = vld [vmem:[#allocation4 + $0x68] sm:$0xff]  ;;  %v5410_v54 = vsel %vm14488_vm1, %v12832_v9, 0.0  ;;  %vm14515_vm1 = vnez %v14514_v6  ;;  %vm14524_vm2 = vcmask 523264  }
 0x558   : > { %14491 = vst [vmem:[#allocation70_spill] sm:$0xff] %v12897_v12  ;;  %10010 = vmatmul.mubr.msk.bf16.gmra.mrb[12].mxu1 %vm13950_vm8, %v5433_v41  ;;  %v12906_v48 = vld [vmem:[#allocation4 + $0xbf] sm:$0xff]  ;;  %v12908_v19 = vld [vmem:[#allocation4 + $0xc7] sm:$0xff]  ;;  %v12910_v55 = vld [vmem:[#allocation4 + $0xcf] sm:$0xff]  ;;  %v12940_v27 = vpack.c.bf16 %v5465_v16, %v5464_v18 }
 0x559   : > { %10013 = vmatprep.mubr.msk.bf16.mxu1 %vm13950_vm8, %v5434_v26  ;;  %10042 = vmatpush3.bf16.msra.mxu1 %v10950_v38  ;;  %14493 = vst [vmem:[#allocation79_spill] sm:$0xff] %v12913_v40  ;;  %v14494_v52 = vld [vmem:[#allocation91_spill] sm:$0xff]  ;;  %v5467_v32 = vld [vmem:[#allocation4 + $0x70] sm:$0xff]  ;;  %v14497_v44 = vld [vmem:[#allocation100_spill] sm:$0xff] }
 0x55a   : > { %vm14495_vm6 = vnez %v14494_v52  ;;  %10043 = vmatprep.subr.bf16.mxu1 %v10951_v47  ;;  %v12921_v60 = vld [vmem:[%s13768_s5 + $0x60] sm:$0xff]   ;;  %vm14498_vm4 = vnez %v14497_v44  ;;  %v14500_v43 = vld [vmem:[#allocation109_spill] sm:$0xff]  ;;  %14502 = vst [vmem:[#allocation88_spill] sm:$0xff] %v12940_v27  ;;  %v12945_v15 = vld [vmem:[#allocation4 + $0xdf] sm:$0xff]  ;;  %v12957_v58 = vpack.c.bf16 %v5467_v32, %v5466_v36  ;;  %v5436_v32 = vpack.c.bf16 %v12834_v11, %v5410_v54 }
 0x55b   : > { %v6381_v33 = vsel %vm14495_vm6, %v12884_v63, 0.0  ;;  %v6383_v38 = vsel %vm14498_vm4, %v12900_v51, 0.0  ;;  %v12932_v53 = vld [vmem:[#allocation4 + $0xd7] sm:$0xff]  ;;  %vm14501_vm14 = vnez %v14500_v43  ;;  %v12947_v17 = vld [vmem:[#allocation4 + $0xe7] sm:$0xff]  ;;  %v12949_v56 = vld [vmem:[#allocation4 + $0xef] sm:$0xff] }
 0x55c   : > { %v12924_v37 = vpack.c.bf16 %v12891_v23, %v6381_v33  ;;  %v12935_v59 = vpack.c.bf16 %v12906_v48, %v6383_v38  ;;  %v6385_v14 = vsel %vm14501_vm14, %v12908_v19, 0.0  ;;  %v14504_v62 = vld [vmem:[#allocation118_spill] sm:$0xff]  ;;  %14506 = vst [vmem:[#allocation89_spill] sm:$0xff] %v12957_v58  ;;  %v12961_v18 = vld [vmem:[#allocation4 + $0xff] sm:$0xff]  ;;  %v5435_v33 = vpack.c.bf16 %v12842_v4, %v5408_v2  ;;  %v5470_v54 = vld [vmem:[#allocation4 + $0x88] sm:$0xff] }
 0x55d   : > { %v12952_v7 = vpack.c.bf16 %v12910_v55, %v6385_v14  ;;  %vm14505_vm10 = vnez %v14504_v62  ;;  %10044 = vmatpush3.bf16.msra.mxu1 %v10951_v47  ;;  %v12959_v26 = vld [vmem:[#allocation4 + $0xf7] sm:$0xff]  ;;  %9974 = vmatmul.mubr.msk.bf16.gmra.mrb[48].mxu0 %vm13950_vm8, %v12940_v27  ;;  %v12973_v36 = vld [vmem:[#allocation4 + $0x21] sm:$0xff]  ;;  %v5414_v27 = vsel %vm14492_vm0, %v12857_v28, 0.0  ;;  %v13023_v31 = vld [vmem:[#allocation4 + $0x49] sm:$0xff] }
 0x55e   : > { %14496 = vst [vmem:[#allocation71_spill] sm:$0xff] %v12924_v37  ;;  %14499 = vst [vmem:[#allocation80_spill] sm:$0xff] %v12935_v59  ;;  %v6387_v41 = vsel %vm14505_vm10, %v12932_v53, 0.0  ;;  %v14508_v16 = vld [vmem:[#allocation127_spill] sm:$0xff]  ;;  %10077 = vmatprep.subr.bf16.mxu1 %v12921_v60  ;;  %9977 = vmatprep.mubr.msk.bf16.mxu0 %vm13950_vm8, %v12957_v58  ;;  %v14511_v14 = vld [vmem:[#allocation134_spill] sm:$0xff]  ;;  %v7040_v11 = vsel %vm14515_vm1, %v12973_v36, 0.0 }
 0x55f   : > { %14503 = vst [vmem:[#allocation97_spill] sm:$0xff] %v12952_v7  ;;  %v12964_v9 = vpack.c.bf16 %v12945_v15, %v6387_v41  ;;  %vm14509_vm12 = vnez %v14508_v16  ;;  %v12981_v38 = vld [vmem:[#allocation4 + $0x19] sm:$0xff]  ;;  %vm14512_vm3 = vnez %v14511_v14  ;;  %v12987_v4 = vld [vmem:[#allocation4 + $0x31] sm:$0xff]  ;;  %v12996_v34 = vld [vmem:[#allocation4 + $0x41] sm:$0xff] }
 0x560   : > { %v6389_v24 = vsel %vm14509_vm12, %v12947_v17, 0.0  ;;  %v6391_v41 = vsel %vm14512_vm3, %v12959_v26, 0.0  ;;  %10014 = vmatmul.mubr.msk.bf16.gmra.mrb[16].mxu1 %vm13950_vm8, %v5435_v33  ;;  %v5469_v10 = vld [vmem:[#allocation4 + $0x80] sm:$0xff]  ;;  %v5471_v45 = vld [vmem:[#allocation4 + $0x90] sm:$0xff]  ;;  %v12999_v0 = vpack.c.bf16 %v7040_v11, %v12981_v38  ;;  %v5412_v33 = vsel %vm14489_vm11, %v12844_v42, 0.0  ;;  %v5472_v61 = vld [vmem:[#allocation4 + $0x98] sm:$0xff] }
 0x561   : > { %14507 = vst [vmem:[#allocation98_spill] sm:$0xff] %v12964_v9  ;;  %v12976_v47 = vpack.c.bf16 %v12949_v56, %v6389_v24  ;;  %v12990_v2 = vpack.c.bf16 %v12961_v18, %v6391_v41  ;;  %10017 = vmatprep.mubr.msk.bf16.mxu1 %vm13950_vm8, %v5436_v32  ;;  %v5468_v24 = vld [vmem:[#allocation4 + $0x78] sm:$0xff]  ;;  %v13004_v41 = vld [vmem:[#allocation4 + $0x29] sm:$0xff]  ;;  %vm14518_vm8 = vnez %v14517_v5  ;;  %v13021_v42 = vpack.c.bf16 %v5471_v45, %v5470_v54  ;;  %v14522_v57 = vld [vmem:[#allocation32_spill] sm:$0xff] }
 0x562   : > { %14516 = vst [vmem:[#allocation107_spill] sm:$0xff] %v12999_v0  ;;  %v13006_v32 = vld [vmem:[#allocation4 + $0x39] sm:$0xff]  ;;  %v7042_v25 = vsel %vm14518_vm8, %v12987_v4, 0.0  ;;  %v13011_v58 = vpack.c.bf16 %v5469_v10, %v5468_v24  ;;  %v13016_v11 = vld [vmem:[#allocation4 + $0x51] sm:$0xff]  ;;  %vm14523_vm11 = vnez %v14522_v57  ;;  %v5437_v10 = vpack.c.bf16 %v12855_v49, %v5412_v33  ;;  %v5474_v24 = vld [vmem:[#allocation4 + $0xa8] sm:$0xff] }
 0x563   : > { %14510 = vst [vmem:[#allocation106_spill] sm:$0xff] %v12976_v47  ;;  %14513 = vst [vmem:[#allocation115_spill] sm:$0xff] %v12990_v2  ;;  %v13019_v0 = vpack.c.bf16 %v7042_v25, %v13004_v41  ;;  %v7044_v8 = vsel %vm14523_vm11, %v12996_v34, 0.0  ;;  %v5473_v28 = vld [vmem:[#allocation4 + $0xa0] sm:$0xff]  ;;  %v5438_v45 = vpack.c.bf16 %v12859_v29, %v5414_v27  ;;  %v5475_v54 = vld [vmem:[#allocation4 + $0xb0] sm:$0xff] }
 0x564   : > { %14519 = vst [vmem:[#allocation116_spill] sm:$0xff] %v13011_v58  ;;  %14521 = vst [vmem:[#allocation125_spill] sm:$0xff] %v13021_v42  ;;  %v13031_v22 = vld [vmem:[#allocation4 + $0x61] sm:$0xff]  ;;  %v13034_v25 = vpack.c.bf16 %v7044_v8, %v13006_v32  ;;  %v13041_v21 = vld [vmem:[#allocation4 + $0x71] sm:$0xff]  ;;  %v5416_v8 = vsel %vm14495_vm6, %v12880_v1, 0.0  ;;  %v13062_v2 = vpack.c.bf16 %v5473_v28, %v5472_v61  ;;  %v13075_v59 = vpack.c.bf16 %v5475_v54, %v5474_v24 }
 0x565   : > { %14520 = vst [vmem:[#allocation124_spill] sm:$0xff] %v13019_v0  ;;  %9978 = vmatmul.mubr.msk.bf16.gmra.mrb[52].mxu0 %vm14524_vm2, %v13011_v58  ;;  %vm14526_vm0 = vmmov %vm14524_vm2  ;;  %v13039_v0 = vld [vmem:[#allocation4 + $0x59] sm:$0xff]  ;;  %v14527_v58 = vld [vmem:[#allocation42_spill] sm:$0xff]  ;;  %v5439_v24 = vpack.c.bf16 %v12882_v50, %v5416_v8 }
 0x566   : > { %14525 = vst [vmem:[#allocation10_spill] sm:$0xff] %v13034_v25  ;;  %9981 = vmatprep.mubr.msk.bf16.mxu0 %vm14526_vm0, %v13021_v42  ;;  %vm14528_vm2 = vnez %v14527_v58  ;;  %vm14529_vm15 = vmmov %vm14526_vm0  ;;  %v13050_v33 = vld [vmem:[#allocation4 + $0x69] sm:$0xff]  ;;  %v13052_v25 = vld [vmem:[#allocation4 + $0x79] sm:$0xff] }
 0x567   : > { %v7046_v49 = vsel %vm14528_vm2, %v13016_v11, 0.0  ;;  %v13054_v29 = vld [vmem:[#allocation4 + $0x81] sm:$0xff]  ;;  %v13056_v27 = vld [vmem:[#allocation4 + $0x91] sm:$0xff]  ;;  %14533 = vst [vmem:[#allocation49_spill] sm:$0xff] %v13062_v2  ;;  %v13066_v47 = vld [vmem:[#allocation4 + $0x99] sm:$0xff] }
 0x568   : > { %10018 = vmatmul.mubr.msk.bf16.gmra.mrb[20].mxu1 %vm14529_vm15, %v5437_v10  ;;  %14530 = vst [vmem:[#allocation19_spill] sm:$0xff] %v13054_v29  ;;  %14531 = vst [vmem:[#allocation30_spill] sm:$0xff] %v13056_v27  ;;  %v13059_v42 = vpack.c.bf16 %v7046_v49, %v13023_v31  ;;  %v13064_v10 = vld [vmem:[#allocation4 + $0x89] sm:$0xff]  ;;  %v13068_v1 = vld [vmem:[#allocation4 + $0xa1] sm:$0xff] }
 0x569   : > { %10021 = vmatprep.mubr.msk.bf16.mxu1 %vm14526_vm0, %v5438_v45  ;;  %v13070_v52 = vld [vmem:[#allocation4 + $0xb1] sm:$0xff]  ;;  %14537 = vst [vmem:[#allocation67_spill] sm:$0xff] %v13075_v59  ;;  %v5418_v45 = vsel %vm14498_vm4, %v12884_v63, 0.0  ;;  %v13080_v61 = vld [vmem:[#allocation4 + $0xb9] sm:$0xff]  ;;  %v13082_v28 = vld [vmem:[#allocation4 + $0xc1] sm:$0xff] }
 0x56a   : > { %14532 = vst [vmem:[#allocation40_spill] sm:$0xff] %v13059_v42  ;;  %14534 = vst [vmem:[#allocation58_spill] sm:$0xff] %v13070_v52  ;;  %v14535_v9 = vld [vmem:[#allocation51_spill] sm:$0xff]  ;;  %v14540_v37 = vld [vmem:[#allocation60_spill] sm:$0xff] }
 0x56b   : > { %vm14536_vm15 = vnez %v14535_v9  ;;  %v13084_v49 = vld [vmem:[#allocation4 + $0xd1] sm:$0xff]  ;;  %vm14541_vm0 = vnez %v14540_v37  ;;  %v13093_v54 = vld [vmem:[#allocation4 + $0xc9] sm:$0xff]  ;;  %v13095_v12 = vld [vmem:[#allocation4 + $0xe1] sm:$0xff] }
 0x56c   : > { %v7048_v7 = vsel %vm14536_vm15, %v13031_v22, 0.0  ;;  %14538 = vst [vmem:[#allocation76_spill] sm:$0xff] %v13084_v49  ;;  %v7050_v40 = vsel %vm14541_vm0, %v13041_v21, 0.0  ;;  %v13097_v63 = vld [vmem:[#allocation4 + $0xf1] sm:$0xff]  ;;  %v14544_v39 = vld [vmem:[#allocation69_spill] sm:$0xff]  ;;  %v13110_v50 = vld [vmem:[#allocation4 + $0xd9] sm:$0xff] }
 0x56d   : > { %v13087_v42 = vpack.c.bf16 %v7048_v7, %v13039_v0  ;;  %14542 = vst [vmem:[#allocation94_spill] sm:$0xff] %v13097_v63  ;;  %v13100_v44 = vpack.c.bf16 %v7050_v40, %v13050_v33  ;;  %vm14545_vm4 = vnez %v14544_v39  ;;  %v13108_v30 = vld [vmem:[#allocation4 + $0xa9] sm:$0xff]  ;;  %v13112_v8 = vld [vmem:[#allocation4 + $0x101] sm:$0xff] }
 0x56e   : > { %v7052_v7 = vsel %vm14545_vm4, %v13054_v29, 0.0  ;;  %v14552_v46 = vld [vmem:[#allocation96_spill] sm:$0xff] }
 0x56f   : > { %14539 = vst [vmem:[#allocation85_spill] sm:$0xff] %v13087_v42  ;;  %14543 = vst [vmem:[#allocation103_spill] sm:$0xff] %v13100_v44  ;;  %v14546_v42 = vld [vmem:[#allocation78_spill] sm:$0xff]  ;;  %v13115_v3 = vpack.c.bf16 %v7052_v7, %v13052_v25  ;;  %v14550_v44 = vld [vmem:[#allocation87_spill] sm:$0xff]  ;;  %vm14553_vm9 = vnez %v14552_v46 }
 0x570   : > { %vm14547_vm6 = vnez %v14546_v42  ;;  %vm14551_vm13 = vnez %v14550_v44  ;;  %v7058_v20 = vsel %vm14553_vm9, %v13070_v52, 0.0  ;;  %v14556_v7 = vld [vmem:[#allocation105_spill] sm:$0xff]  ;;  %v5485_v14 = vld [vmem:[#allocation4 + $0x100] sm:$0xff] }
 0x571   : > { %v7054_v13 = vsel %vm14547_vm6, %v13056_v27, 0.0  ;;  %14548 = vst [vmem:[#allocation112_spill] sm:$0xff] %v13115_v3  ;;  %v7056_v35 = vsel %vm14551_vm13, %v13068_v1, 0.0  ;;  %v13126_v27 = vld [vmem:[#allocation4 + $0xf9] sm:$0xff]  ;;  %v13132_v29 = vpack.c.bf16 %v7058_v20, %v13108_v30  ;;  %vm14557_vm5 = vnez %v14556_v7  ;;  %v13142_v52 = vld [vmem:[#allocation4 + $0xe9] sm:$0xff]  ;;  %v8044_v6 = vld [vmem:[#allocation4 + $0x61] sm:$0xff] }
 0x572   : > { %v13118_v40 = vpack.c.bf16 %v7054_v13, %v13064_v10  ;;  %v13129_v42 = vpack.c.bf16 %v7056_v35, %v13066_v47  ;;  %v7060_v13 = vsel %vm14557_vm5, %v13082_v28, 0.0  ;;  %vm14560_vm13 = vcmask 523264   ;;  %v14563_v20 = vld [vmem:[#allocation123_spill] sm:$0xff]  ;;  %v8048_v57 = vld [vmem:[#allocation4 + $0x81] sm:$0xff] }
 0x573   : > { %14555 = vst [vmem:[#allocation137_spill] sm:$0xff] %v13132_v29  ;;  %9982 = vmatmul.mubr.msk.bf16.gmra.mrb[56].mxu0 %vm14560_vm13, %v13062_v2  ;;  %v13145_v46 = vpack.c.bf16 %v7060_v13, %v13080_v61  ;;  %vm14564_vm9 = vnez %v14563_v20  ;;  %v5440_v2 = vpack.c.bf16 %v12891_v23, %v5418_v45  ;;  %v5478_v23 = vld [vmem:[#allocation4 + $0xc8] sm:$0xff]  ;;  %v5479_v45 = vld [vmem:[#allocation4 + $0xd0] sm:$0xff] }
 0x574   : > { %14549 = vst [vmem:[#allocation121_spill] sm:$0xff] %v13118_v40  ;;  %14554 = vst [vmem:[#allocation130_spill] sm:$0xff] %v13129_v42  ;;  %v14558_v40 = vld [vmem:[#allocation114_spill] sm:$0xff]  ;;  %v7064_v29 = vsel %vm14564_vm9, %v13095_v12, 0.0  ;;  %v14565_v42 = vld [vmem:[#allocation132_spill] sm:$0xff] }
 0x575   : > { %vm14559_vm7 = vnez %v14558_v40  ;;  %14561 = vst [vmem:[#allocation140_spill] sm:$0xff] %v13145_v46  ;;  %vm14566_vm5 = vnez %v14565_v42 }
 0x576   : > { %v7062_v3 = vsel %vm14559_vm7, %v13084_v49, 0.0  ;;  %v7066_v40 = vsel %vm14566_vm5, %v13097_v63, 0.0  ;;  %vm14567_vm7 = vmmov %vm14560_vm13  ;;  %v13160_v49 = vpack.c.bf16 %v7064_v29, %v13110_v50  ;;  %v5477_v63 = vld [vmem:[#allocation4 + $0xc0] sm:$0xff]  ;;  %v5420_v29 = vsel %vm14501_vm14, %v12900_v51, 0.0 }
 0x577   : > { %v13148_v35 = vpack.c.bf16 %v7062_v3, %v13093_v54  ;;  %9985 = vmatprep.mubr.msk.bf16.mxu0 %vm14567_vm7, %v13075_v59  ;;  %v13163_v13 = vpack.c.bf16 %v7066_v40, %v13142_v52  ;;  %v14569_v3 = vld [vmem:[#allocation139_spill] sm:$0xff]  ;;  %vm14571_vm9 = vmmov %vm14567_vm7  ;;  %v5441_v51 = vpack.c.bf16 %v12906_v48, %v5420_v29 }
 0x578   : > { %vm14570_vm13 = vnez %v14569_v3  ;;  %10022 = vmatmul.mubr.msk.bf16.gmra.mrb[24].mxu1 %vm14571_vm9, %v5439_v24  ;;  %vm14573_vm5 = vmmov %vm14567_vm7  ;;  %v5476_v59 = vld [vmem:[#allocation4 + $0xb8] sm:$0xff]  ;;  %v13181_v24 = vld [vmem:[#allocation4 + $0x107] sm:$0xff] }
 0x579   : > { %14562 = vst [vmem:[#allocation9_spill] sm:$0xff] %v13148_v35  ;;  %14568 = vst [vmem:[#allocation18_spill] sm:$0xff] %v13163_v13  ;;  %v7068_v35 = vsel %vm14570_vm13, %v13112_v8, 0.0  ;;  %10025 = vmatprep.mubr.msk.bf16.mxu1 %vm14573_vm5, %v5440_v2  ;;  %v13176_v40 = vpack.c.bf16 %v5477_v63, %v5476_v59  ;;  %v5422_v13 = vsel %vm14505_vm10, %v12908_v19, 0.0  ;;  %v7415_v2 = vsel %vm14501_vm14, %v12932_v53, 0.0  ;;  %v14621_v3 = vld [vmem:[#allocation43_spill] sm:$0xff] }
 0x57a   : > { %v13170_v46 = vpack.c.bf16 %v7068_v35, %v13126_v27  ;;  %v13183_v35 = vpack.c.bf16 %v5479_v45, %v5478_v23  ;;  %v13194_v59 = vpack.c.bf16 %v12945_v15, %v7415_v2  ;;  %v7417_v19 = vsel %vm14505_vm10, %v12947_v17, 0.0  ;;  %vm14574_vm7 = vmmov %vm14573_vm5  ;;  %v13215_v45 = vld [vmem:[#allocation4 + $0x111] sm:$0xff]  ;;  %v13221_v2 = vld [vmem:[#allocation4 + $0x109] sm:$0xff] }
 0x57b   : > { %9986 = vmatmul.mubr.msk.bf16.gmra.mrb[60].mxu0 %vm14573_vm5, %v13176_v40  ;;  %v7419_v63 = vsel %vm14509_vm12, %v12959_v26, 0.0  ;;  %v5442_v43 = vpack.c.bf16 %v12910_v55, %v5422_v13  ;;  %v13206_v23 = vpack.c.bf16 %v12949_v56, %v7417_v19  ;;  %v7421_v62 = vsel %vm14512_vm3, %v13181_v24, 0.0  ;;  %vm14577_vm9 = vmmov %vm14573_vm5  ;;  %v5480_v55 = vld [vmem:[#allocation4 + $0xd8] sm:$0xff]  ;;  %v5481_v13 = vld [vmem:[#allocation4 + $0xe0] sm:$0xff] }
 0x57c   : > { %14572 = vst [vmem:[#allocation29_spill] sm:$0xff] %v13170_v46  ;;  %v13185_v46 = vld [vmem:[#allocation4 + $0x10f] sm:$0xff]  ;;  %9989 = vmatprep.mubr.msk.bf16.mxu0 %vm14574_vm7, %v13183_v35  ;;  %v13209_v48 = vpack.c.bf16 %v12961_v18, %v7419_v63  ;;  %vm14579_vm14 = vmmov %vm14573_vm5 }
 0x57d   : > { %14575 = vst [vmem:[#allocation39_spill] sm:$0xff] %v13206_v23  ;;  %v13218_v29 = vpack.c.bf16 %v13185_v46, %v7421_v62  ;;  %v5482_v19 = vld [vmem:[#allocation4 + $0xe8] sm:$0xff]  ;;  %v5483_v63 = vld [vmem:[#allocation4 + $0xf0] sm:$0xff]  ;;  %v13229_v23 = vpack.c.bf16 %v5481_v13, %v5480_v55  ;;  %vm14580_vm10 = vmmov %vm14573_vm5 }
 0x57e   : > { %14576 = vst [vmem:[#allocation48_spill] sm:$0xff] %v13209_v48  ;;  %v5424_v48 = vsel %vm14509_vm12, %v12932_v53, 0.0  ;;  %vm14581_vm12 = vmmov %vm14573_vm5  ;;  %v5978_v55 = vld [vmem:[#allocation4 + $0x11] sm:$0xff] }
 0x57f   : > { %14578 = vst [vmem:[#allocation57_spill] sm:$0xff] %v13218_v29  ;;  %v13237_v29 = vpack.c.bf16 %v5483_v63, %v5482_v19  ;;  %v5443_v53 = vpack.c.bf16 %v12945_v15, %v5424_v48  ;;  %vm14582_vm7 = vmmov %vm14573_vm5  ;;  %v14583_v13 = vld [vmem:[#allocation143_spill] sm:$0xff]  ;;  %v6010_v15 = vsel %vm14515_vm1, %v5978_v55, 0.0 }
 0x580   : > { %10026 = vmatmul.mubr.msk.bf16.gmra.mrb[28].mxu1 %vm14577_vm9, %v5441_v51  ;;  %v8098_v51 = vsel %vm14570_vm13, %v13215_v45, 0.0  ;;  %vm14585_vm9 = vmmov %vm14573_vm5  ;;  %v14593_v55 = vld [vmem:[#allocation19_spill] sm:$0xff] }
 0x581   : > { %10029 = vmatprep.mubr.msk.bf16.mxu1 %vm14579_vm14, %v5442_v43  ;;  %v5426_v43 = vsel %vm14512_vm3, %v12947_v17, 0.0  ;;  %v13235_v62 = vpack.c.bf16 %v8098_v51, %v13221_v2  ;;  %v5484_v17 = vld [vmem:[#allocation4 + $0xf8] sm:$0xff]  ;;  %vm14584_vm3 = vnez %v14583_v13  ;;  %v5977_v51 = vld [vmem:[#allocation4 + $0x9] sm:$0xff]  ;;  %vm14586_vm14 = vmmov %vm14573_vm5 }
 0x582   : > { %v5444_v16 = vpack.c.bf16 %v12949_v56, %v5426_v43  ;;  %v5428_v19 = vsel %vm14584_vm3, %v12959_v26, 0.0  ;;  %v13250_v63 = vpack.c.bf16 %v5485_v14, %v5484_v17  ;;  %v6041_v48 = vpack.c.bf16 %v6010_v15, %v5977_v51  ;;  %v14595_v15 = vld [vmem:[#allocation30_spill] sm:$0xff]  ;;  %v10974_v13 = vld [vmem:[%s13768_s5 + $0x110] sm:$0xff]  }
 0x583   : > { %9990 = vmatmul.mubr.msk.bf16.gmra.mrb[64].mxu0 %vm14580_vm10, %v13229_v23  ;;  %v5445_v56 = vpack.c.bf16 %v12961_v18, %v5428_v19  ;;  %vm14587_vm10 = vmmov %vm14573_vm5  ;;  %v6012_v26 = vsel %vm14518_vm8, %v12973_v36, 0.0  ;;  %v6014_v43 = vsel %vm14523_vm11, %v12987_v4, 0.0  ;;  %v10954_v36 = vld [vmem:[%s13768_s5 + $0x70] sm:$0xff]   ;;  %v6018_v4 = vsel %vm14536_vm15, %v13016_v11, 0.0  ;;  %v14594_v19 = vld [vmem:[#allocation78_spill] sm:$0xff] }
 0x584   : > { %9993 = vmatprep.mubr.msk.bf16.mxu0 %vm14581_vm12, %v13237_v29  ;;  %v6043_v18 = vpack.c.bf16 %v6014_v43, %v13004_v41  ;;  %vm14588_vm12 = vmmov %vm14573_vm5  ;;  %v6045_v17 = vpack.c.bf16 %v6018_v4, %v13023_v31  ;;  %v6022_v11 = vsel %vm14545_vm4, %v13041_v21, 0.0  ;;  %v6024_v51 = vsel %vm14547_vm6, %v14593_v55, 0.0  ;;  %v14633_v55 = vld [vmem:[#allocation71_spill] sm:$0xff] }
 0x585   : > { %v6047_v14 = vpack.c.bf16 %v6022_v11, %v13050_v33  ;;  %v6048_v21 = vpack.c.bf16 %v6024_v51, %v13052_v25  ;;  %v14604_v25 = vld [vmem:[#allocation114_spill] sm:$0xff]  ;;  %v14635_v51 = vld [vmem:[#allocation80_spill] sm:$0xff] }
 0x586   : > { %v14628_v11 = vld [vmem:[#allocation62_spill] sm:$0xff] }
 0x588   : > { %10030 = vmatmul.mubr.msk.bf16.gmra.mrb[32].mxu1 %vm14573_vm5, %v5443_v53  ;;  %v6042_v53 = vpack.c.bf16 %v6012_v26, %v12981_v38  ;;  %v6016_v38 = vsel %vm14528_vm2, %v12996_v34, 0.0  ;;  %v10956_v34 = vld [vmem:[%s13768_s5 + $0x80] sm:$0xff]  }
 0x589   : > { %10033 = vmatprep.mubr.msk.bf16.mxu1 %vm14582_vm7, %v5444_v16  ;;  %v10953_v16 = vld [vmem:[%s13768_s5 + $0x68] sm:$0xff]   ;;  %v6044_v41 = vpack.c.bf16 %v6016_v38, %v13006_v32  ;;  %vm14589_vm7 = vmmov %vm14573_vm5  ;;  %v6020_v32 = vsel %vm14541_vm0, %v13031_v22, 0.0 }
 0x58a   : > { %v6046_v31 = vpack.c.bf16 %v6020_v32, %v13039_v0  ;;  %v14598_v0 = vld [vmem:[#allocation96_spill] sm:$0xff]  ;;  %v14626_v32 = vld [vmem:[#allocation53_spill] sm:$0xff] }
 0x58b   : > { %9994 = vmatmul.mubr.msk.bf16.gmra.mrb[68].mxu0 %vm14585_vm9, %v13250_v63  ;;  %vm14590_vm9 = vmmov %vm14573_vm5 }
 0x590   : > { %10034 = vmatmul.mubr.msk.bf16.gmra.mrb[36].mxu1 %vm14586_vm14, %v5445_v56  ;;  %vm14591_vm14 = vmmov %vm14573_vm5 }
 0x591   : > { %10045 = vmatprep.mubr.msk.bf16.mxu1 %vm14587_vm10, %v6041_v48  ;;  %vm14592_vm10 = vmmov %vm14573_vm5  ;;  %v14600_v48 = vld [vmem:[#allocation58_spill] sm:$0xff] }
 0x598   : > { %10046 = vmatmul.mubr.msk.bf16.vlgmr.msra.gmra.mrb[8].mxu1 %vm14588_vm12, %v6042_v53  ;;  %vm14596_vm12 = vnez %v14550_v44 }
 0x599   : > { %10078 = vmatpush3.bf16.msra.mxu1 %v12921_v60  ;;  %10049 = vmatprep.mubr.msk.bf16.mxu1 %vm14573_vm5, %v6043_v18  ;;  %v10955_v60 = vld [vmem:[%s13768_s5 + $0x78] sm:$0xff]   ;;  %v6026_v22 = vsel %vm14596_vm12, %v14595_v15, 0.0  ;;  %vm14603_vm12 = vmmov %vm14573_vm5 }
 0x59a   : > { %10079 = vmatprep.subr.bf16.mxu1 %v10953_v16  ;;  %v6049_v56 = vpack.c.bf16 %v6026_v22, %v13064_v10  ;;  %v14637_v15 = vld [vmem:[#allocation97_spill] sm:$0xff]  ;;  %v14639_v22 = vld [vmem:[#allocation98_spill] sm:$0xff] }
 0x59d   : > { %10080 = vmatpush3.bf16.msra.mxu1 %v10953_v16  ;;  %v14606_v16 = vld [vmem:[#allocation76_spill] sm:$0xff] }
 0x59e   : > { %10081 = vmatprep.subr.bf16.mxu1 %v10954_v36 }
 0x5a0   : > { %10050 = vmatmul.mubr.msk.bf16.gmra.mrb[12].mxu1 %vm14589_vm7, %v6044_v41  ;;  %vm14597_vm7 = vmmov %vm14573_vm5 }
 0x5a1   : > { %10053 = vmatprep.mubr.msk.bf16.mxu1 %vm14590_vm9, %v6045_v17  ;;  %10082 = vmatpush3.bf16.msra.mxu1 %v10954_v36  ;;  %vm14599_vm9 = vnez %v14598_v0  ;;  %v14624_v17 = vld [vmem:[#allocation52_spill] sm:$0xff] }
 0x5a2   : > { %10083 = vmatprep.subr.bf16.mxu1 %v10955_v60  ;;  %v6028_v33 = vsel %vm14599_vm9, %v13068_v1, 0.0 }
 0x5a3   : > { %v6050_v43 = vpack.c.bf16 %v6028_v33, %v13066_v47  ;;  %v14611_v47 = vld [vmem:[#allocation94_spill] sm:$0xff]  ;;  %v6393_v33 = vsel %vm14584_vm3, %v13181_v24, 0.0  ;;  %v10963_v24 = vld [vmem:[%s13768_s5 + $0xb8] sm:$0xff]  }
 0x5a5   : > { %10084 = vmatpush3.bf16.msra.mxu1 %v10955_v60  ;;  %v14622_v60 = vld [vmem:[#allocation35_spill] sm:$0xff] }
 0x5a6   : > { %10117 = vmatprep.subr.bf16.mxu1 %v10956_v34 }
 0x5a8   : > { %10054 = vmatmul.mubr.msk.bf16.gmra.mrb[16].mxu1 %vm14591_vm14, %v6046_v31  ;;  %vm14601_vm14 = vnez %v14556_v7  ;;  %v14630_v31 = vld [vmem:[#allocation70_spill] sm:$0xff] }
 0x5a9   : > { %10057 = vmatprep.mubr.msk.bf16.mxu1 %vm14592_vm10, %v6047_v14  ;;  %v6030_v26 = vsel %vm14601_vm14, %v14600_v48, 0.0  ;;  %vm14602_vm10 = vmmov %vm14573_vm5  ;;  %v14631_v14 = vld [vmem:[#allocation79_spill] sm:$0xff]  ;;  %v6410_v48 = vpack.c.bf16 %v13185_v46, %v6393_v33  ;;  %v10962_v46 = vld [vmem:[%s13768_s5 + $0xb0] sm:$0xff]  }
 0x5aa   : > { %v6051_v53 = vpack.c.bf16 %v6030_v26, %v13108_v30  ;;  %vm14608_vm14 = vmmov %vm14602_vm10  ;;  %v14646_v26 = vld [vmem:[#allocation23_spill] sm:$0xff] }
 0x5ab   : > { %vm14609_vm9 = vmmov %vm14602_vm10 }
 0x5b0   : > { %10058 = vmatmul.mubr.msk.bf16.gmra.mrb[20].mxu1 %vm14573_vm5, %v6048_v21  ;;  %vm14605_vm5 = vnez %v14604_v25  ;;  %v14641_v21 = vld [vmem:[#allocation106_spill] sm:$0xff] }
 0x5b1   : > { %10061 = vmatprep.mubr.msk.bf16.mxu1 %vm14597_vm7, %v6049_v56  ;;  %v6032_v10 = vsel %vm14605_vm5, %v13082_v28, 0.0  ;;  %vm14607_vm7 = vnez %v14563_v20  ;;  %v6038_v28 = vsel %vm14570_vm13, %v14611_v47, 0.0  ;;  %v14643_v56 = vld [vmem:[#allocation115_spill] sm:$0xff] }
 0x5b2   : > { %v6034_v1 = vsel %vm14607_vm7, %v14606_v16, 0.0  ;;  %v6052_v18 = vpack.c.bf16 %v6032_v10, %v13080_v61  ;;  %v6055_v4 = vpack.c.bf16 %v6038_v28, %v13142_v52  ;;  %vm14613_vm7 = vmmov %vm14609_vm9  ;;  %v14614_v61 = vld [vmem:[#allocation13_spill] sm:$0xff]  ;;  %v14619_v52 = vld [vmem:[#allocation34_spill] sm:$0xff] }
 0x5b3   : > { %v6053_v36 = vpack.c.bf16 %v6034_v1, %v13093_v54  ;;  %vm14620_vm13 = vmmov %vm14613_vm7  ;;  %v14649_v10 = vld [vmem:[#allocation44_spill] sm:$0xff]  ;;  %v14651_v16 = vld [vmem:[#allocation61_spill] sm:$0xff] }
 0x5b4   : > { %vm14636_vm5 = vmmov %vm14613_vm7  ;;  %v14653_v1 = vld [vmem:[#allocation88_spill] sm:$0xff] }
 0x5b5   : > { %vm14638_vm6 = vmmov %vm14636_vm5 }
 0x5b8   : > { %10062 = vmatmul.mubr.msk.bf16.gmra.mrb[24].mxu1 %vm14602_vm10, %v6050_v43  ;;  %vm14610_vm10 = vnez %v14565_v42  ;;  %v10961_v43 = vld [vmem:[%s13768_s5 + $0xa8] sm:$0xff]  }
 0x5b9   : > { %10065 = vmatprep.mubr.msk.bf16.mxu1 %vm14603_vm12, %v6051_v53  ;;  %v6036_v30 = vsel %vm14610_vm10, %v13095_v12, 0.0  ;;  %vm14612_vm12 = vmmov %vm14609_vm9  ;;  %v14617_v12 = vld [vmem:[#allocation24_spill] sm:$0xff]  ;;  %v14647_v53 = vld [vmem:[#allocation14_spill] sm:$0xff] }
 0x5ba   : > { %v6054_v38 = vpack.c.bf16 %v6036_v30, %v13110_v50  ;;  %vm14618_vm10 = vmmov %vm14613_vm7  ;;  %v10957_v50 = vld [vmem:[%s13768_s5 + $0x88] sm:$0xff]   ;;  %v14657_v30 = vld [vmem:[#allocation116_spill] sm:$0xff] }
 0x5c0   : > { %10066 = vmatmul.mubr.msk.bf16.gmra.mrb[28].mxu1 %vm14608_vm14, %v6052_v18  ;;  %vm14615_vm14 = vnez %v14614_v61  ;;  %v10964_v18 = vld [vmem:[%s13768_s5 + $0xc0] sm:$0xff]  }
 0x5c1   : > { %10069 = vmatprep.mubr.msk.bf16.mxu1 %vm14609_vm9, %v6053_v36  ;;  %v6040_v54 = vsel %vm14615_vm14, %v13112_v8, 0.0  ;;  %vm14616_vm9 = vmmov %vm14613_vm7  ;;  %v10959_v8 = vld [vmem:[%s13768_s5 + $0x98] sm:$0xff]  }
 0x5c2   : > { %v6056_v41 = vpack.c.bf16 %v6040_v54, %v13126_v27  ;;  %v10958_v27 = vld [vmem:[%s13768_s5 + $0x90] sm:$0xff]   ;;  %v14655_v36 = vld [vmem:[#allocation89_spill] sm:$0xff] }
 0x5c3   : > { %v14659_v54 = vld [vmem:[#allocation125_spill] sm:$0xff] }
 0x5c8   : > { %10070 = vmatmul.mubr.msk.bf16.gmra.mrb[32].mxu1 %vm14612_vm12, %v6054_v38  ;;  %vm14625_vm12 = vmmov %vm14613_vm7 }
 0x5c9   : > { %10073 = vmatprep.mubr.msk.bf16.mxu1 %vm14613_vm7, %v6055_v4 }
 0x5d0   : > { %10074 = vmatmul.mubr.msk.bf16.gmra.mrb[36].mxu1 %vm14616_vm9, %v6056_v41  ;;  %vm14627_vm9 = vmmov %vm14613_vm7  ;;  %v14660_v41 = vld [vmem:[#allocation49_spill] sm:$0xff] }
 0x5d1   : > { %10085 = vmatprep.mubr.msk.bf16.mxu1 %vm14618_vm10, %v14617_v12  ;;  %vm14623_vm10 = vmmov %vm14613_vm7 }
 0x5d8   : > { %10086 = vmatmul.mubr.msk.bf16.vlgmr.msra.gmra.mrb[8].mxu1 %vm14620_vm13, %v14619_v52  ;;  %vm14629_vm13 = vmmov %vm14613_vm7 }
 0x5d9   : > { %10118 = vmatpush3.bf16.msra.mxu1 %v10956_v34  ;;  %10089 = vmatprep.mubr.msk.bf16.mxu1 %vm14613_vm7, %v14621_v3  ;;  %v10960_v34 = vld [vmem:[%s13768_s5 + $0xa0] sm:$0xff]  }
 0x5da   : > { %10119 = vmatprep.subr.bf16.mxu1 %v10957_v50 }
 0x5dd   : > { %10120 = vmatpush3.bf16.msra.mxu1 %v10957_v50 }
 0x5de   : > { %10121 = vmatprep.subr.bf16.mxu1 %v10958_v27 }
 0x5e0   : > { %10090 = vmatmul.mubr.msk.bf16.gmra.mrb[12].mxu1 %vm14623_vm10, %v14622_v60  ;;  %vm14632_vm10 = vmmov %vm14613_vm7 }
 0x5e1   : > { %10093 = vmatprep.mubr.msk.bf16.mxu1 %vm14625_vm12, %v14624_v17  ;;  %10122 = vmatpush3.bf16.msra.mxu1 %v10958_v27  ;;  %vm14634_vm12 = vmmov %vm14613_vm7  ;;  %v14662_v27 = vld [vmem:[#allocation67_spill] sm:$0xff] }
 0x5e2   : > { %10123 = vmatprep.subr.bf16.mxu1 %v10959_v8 }
 0x5e5   : > { %10124 = vmatpush3.bf16.msra.mxu1 %v10959_v8 }
 0x5e6   : > { %10157 = vmatprep.subr.bf16.mxu1 %v10960_v34 }
 0x5e8   : > { %10094 = vmatmul.mubr.msk.bf16.gmra.mrb[16].mxu1 %vm14627_vm9, %v14626_v32  ;;  %vm14640_vm9 = vmmov %vm14636_vm5 }
 0x5e9   : > { %10097 = vmatprep.mubr.msk.bf16.mxu1 %vm14629_vm13, %v14628_v11  ;;  %vm14642_vm13 = vmmov %vm14636_vm5 }
 0x5f0   : > { %10098 = vmatmul.mubr.msk.bf16.gmra.mrb[20].mxu1 %vm14613_vm7, %v14630_v31  ;;  %vm14644_vm7 = vmmov %vm14636_vm5 }
 0x5f1   : > { %10101 = vmatprep.mubr.msk.bf16.mxu1 %vm14632_vm10, %v14631_v14  ;;  %vm14645_vm10 = vmmov %vm14636_vm5 }
 0x5f8   : > { %10102 = vmatmul.mubr.msk.bf16.gmra.mrb[24].mxu1 %vm14634_vm12, %v14633_v55  ;;  %vm14650_vm12 = vmmov %vm14636_vm5 }
 0x5f9   : > { %10105 = vmatprep.mubr.msk.bf16.mxu1 %vm14636_vm5, %v14635_v51  ;;  %v6716_v51 = vld [vmem:[#allocation4 + $0x110] sm:$0xff] }
 0x600   : > { %10106 = vmatmul.mubr.msk.bf16.gmra.mrb[28].mxu1 %vm14638_vm6, %v14637_v15  ;;  %vm14648_vm6 = vmmov %vm14636_vm5 }
 0x601   : > { %10109 = vmatprep.mubr.msk.bf16.mxu1 %vm14640_vm9, %v14639_v22  ;;  %vm14652_vm9 = vmmov %vm14636_vm5 }
 0x608   : > { %10110 = vmatmul.mubr.msk.bf16.gmra.mrb[32].mxu1 %vm14642_vm13, %v14641_v21  ;;  %vm14654_vm13 = vmmov %vm14636_vm5  ;;  %v14669_v21 = vld [vmem:[#allocation107_spill] sm:$0xff] }
 0x609   : > { %10113 = vmatprep.mubr.msk.bf16.mxu1 %vm14644_vm7, %v14643_v56  ;;  %vm14656_vm7 = vmmov %vm14636_vm5 }
 0x610   : > { %10114 = vmatmul.mubr.msk.bf16.gmra.mrb[36].mxu1 %vm14645_vm10, %v6410_v48  ;;  %vm14658_vm10 = vmmov %vm14636_vm5  ;;  %v10965_v48 = vld [vmem:[%s13768_s5 + $0xc8] sm:$0xff]  }
 0x611   : > { %10125 = vmatprep.mubr.msk.bf16.mxu1 %vm14636_vm5, %v14646_v26  ;;  %v14671_v26 = vld [vmem:[#allocation124_spill] sm:$0xff] }
 0x618   : > { %10126 = vmatmul.mubr.msk.bf16.vlgmr.msra.gmra.mrb[8].mxu1 %vm14648_vm6, %v14647_v53  ;;  %vm14661_vm6 = vmmov %vm14636_vm5 }
 0x619   : > { %10158 = vmatpush3.bf16.msra.mxu1 %v10960_v34  ;;  %10129 = vmatprep.mubr.msk.bf16.mxu1 %vm14650_vm12, %v14649_v10  ;;  %vm14663_vm12 = vmmov %vm14636_vm5 }
 0x61a   : > { %10159 = vmatprep.subr.bf16.mxu1 %v10961_v43 }
 0x61d   : > { %10160 = vmatpush3.bf16.msra.mxu1 %v10961_v43  ;;  %v14673_v43 = vld [vmem:[#allocation10_spill] sm:$0xff] }
 0x61e   : > { %10161 = vmatprep.subr.bf16.mxu1 %v10962_v46 }
 0x620   : > { %10130 = vmatmul.mubr.msk.bf16.gmra.mrb[12].mxu1 %vm14652_vm9, %v14651_v16  ;;  %v13420_v47 = vpop.f32.mrb[40].mxu0  ;;  %vm14664_vm9 = vmmov %vm14636_vm5 }
 0x621   : > { %10133 = vmatprep.mubr.msk.bf16.mxu1 %vm14654_vm13, %v14653_v1  ;;  %10162 = vmatpush3.bf16.msra.mxu1 %v10962_v46  ;;  %v13422_v28 = vpop.f32.mrb[41].mxu0  ;;  %vm14665_vm13 = vmmov %vm14636_vm5  ;;  %v10966_v46 = vld [vmem:[%s13768_s5 + $0xd0] sm:$0xff]   ;;  %v10967_v1 = vld [vmem:[%s13768_s5 + $0xd8] sm:$0xff]  }
 0x622   : > { %10163 = vmatprep.subr.bf16.mxu1 %v10963_v24  ;;  %v13424_v38 = vpop.f32.mrb[42].mxu0 }
 0x623   : > { %v13426_v4 = vpop.f32.mrb[43].mxu0 }
 0x625   : > { %10164 = vmatpush3.bf16.msra.mxu1 %v10963_v24 }
 0x626   : > { %10197 = vmatprep.subr.bf16.mxu1 %v10964_v18 }
 0x628   : > { %10134 = vmatmul.mubr.msk.bf16.gmra.mrb[16].mxu1 %vm14656_vm7, %v14655_v36  ;;  %v13432_v12 = vpop.f32.mrb[44].mxu0  ;;  %vm14666_vm7 = vmmov %vm14636_vm5  ;;  %v14679_v36 = vld [vmem:[#allocation85_spill] sm:$0xff] }
 0x629   : > { %10137 = vmatprep.mubr.msk.bf16.mxu1 %vm14658_vm10, %v14657_v30  ;;  %v13434_v50 = vpop.f32.mrb[45].mxu0  ;;  %vm14667_vm10 = vmmov %vm14636_vm5 }
 0x62a   : > { %v13436_v52 = vpop.f32.mrb[46].mxu0 }
 0x62b   : > { %v13438_v3 = vpop.f32.mrb[47].mxu0 }
 0x630   : > { %10138 = vmatmul.mubr.msk.bf16.gmra.mrb[20].mxu1 %vm14636_vm5, %v14659_v54  ;;  %v13444_v8 = vpop.f32.mrb[48].mxu0 }
 0x631   : > { %10141 = vmatprep.mubr.msk.bf16.mxu1 %vm14661_vm6, %v14660_v41  ;;  %v13446_v60 = vpop.f32.mrb[49].mxu0  ;;  %vm14668_vm6 = vmmov %vm14636_vm5  ;;  %v10968_v41 = vld [vmem:[%s13768_s5 + $0xe0] sm:$0xff]  }
 0x632   : > { %v13448_v17 = vpop.f32.mrb[50].mxu0 }
 0x633   : > { %v13450_v34 = vpop.f32.mrb[51].mxu0 }
 0x638   : > { %10142 = vmatmul.mubr.msk.bf16.gmra.mrb[24].mxu1 %vm14663_vm12, %v14662_v27  ;;  %v13456_v32 = vpop.f32.mrb[52].mxu0  ;;  %vm14670_vm12 = vmmov %vm14636_vm5 }
 0x639   : > { %10145 = vmatprep.mubr.msk.bf16.mxu1 %vm14664_vm9, %v13176_v40  ;;  %v13458_v11 = vpop.f32.mrb[53].mxu0  ;;  %vm14672_vm9 = vmmov %vm14636_vm5 }
 0x63a   : > { %v13460_v31 = vpop.f32.mrb[54].mxu0 }
 0x63b   : > { %v13462_v40 = vpop.f32.mrb[55].mxu0 }
 0x640   : > { %10146 = vmatmul.mubr.msk.bf16.gmra.mrb[28].mxu1 %vm14665_vm13, %v13183_v35  ;;  %vm14674_vm13 = vmmov %vm14636_vm5 }
 0x641   : > { %10149 = vmatprep.mubr.msk.bf16.mxu1 %vm14666_vm7, %v13229_v23  ;;  %v6715_v23 = vld [vmem:[#allocation4 + $0x108] sm:$0xff]  ;;  %vm14678_vm7 = vmmov %vm14636_vm5 }
 0x642   : > { %v13476_v22 = vpack.c.bf16 %v6716_v51, %v6715_v23  ;;  %v14685_v51 = vld [vmem:[#allocation103_spill] sm:$0xff] }
 0x646   : > { %v13468_v14 = vpop.f32.mrb[56].mxu0 }
 0x647   : > { %v13470_v35 = vpop.f32.mrb[57].mxu0 }
 0x648   : > { %10150 = vmatmul.mubr.msk.bf16.gmra.mrb[32].mxu1 %vm14667_vm10, %v13237_v29  ;;  %v13472_v55 = vpop.f32.mrb[58].mxu0  ;;  %vm14680_vm10 = vmmov %vm14636_vm5 }
 0x649   : > { %10153 = vmatprep.mubr.msk.bf16.mxu1 %vm14636_vm5, %v13250_v63  ;;  %v13474_v15 = vpop.f32.mrb[59].mxu0 }
 0x64e   : > { %v13482_v29 = vpop.f32.mrb[60].mxu0 }
 0x64f   : > { %v13484_v63 = vpop.f32.mrb[61].mxu0 }
 0x650   : > { %10154 = vmatmul.mubr.msk.bf16.gmra.mrb[36].mxu1 %vm14668_vm6, %v13476_v22  ;;  %v13486_v56 = vpop.f32.mrb[62].mxu0  ;;  %vm14687_vm6 = vmmov %vm14636_vm5 }
 0x651   : > { %10165 = vmatprep.mubr.msk.bf16.mxu1 %vm14670_vm12, %v14669_v21  ;;  %v13488_v33 = vpop.f32.mrb[63].mxu0  ;;  %v14686_v21 = vld [vmem:[#allocation112_spill] sm:$0xff]  ;;  %vm14689_vm12 = vmmov %vm14636_vm5 }
 0x656   : > { %v13497_v53 = vpop.f32.mrb[64].mxu0 }
 0x657   : > { %v13499_v10 = vpop.f32.mrb[65].mxu0 }
 0x658   : > { %10166 = vmatmul.mubr.msk.bf16.vlgmr.msra.gmra.mrb[8].mxu1 %vm14672_vm9, %v14671_v26  ;;  %v13504_v24 = vpop.f32.mrb[66].mxu0  ;;  %v14690_v26 = vld [vmem:[#allocation130_spill] sm:$0xff]  ;;  %vm14691_vm9 = vmmov %vm14636_vm5 }
 0x659   : > { %10198 = vmatpush3.bf16.msra.mxu1 %v10964_v18  ;;  %10169 = vmatprep.mubr.msk.bf16.mxu1 %vm14674_vm13, %v14673_v43  ;;  %14675 = vst [vmem:[#allocation66_spill] sm:$0xff] %v13504_v24  ;;  %v13506_v16 = vpop.f32.mrb[67].mxu0  ;;  %v14677_v18 = vld [vmem:[#allocation40_spill] sm:$0xff]  ;;  %v14692_v43 = vld [vmem:[#allocation137_spill] sm:$0xff]  ;;  %vm14693_vm13 = vmmov %vm14636_vm5 }
 0x65a   : > { %10199 = vmatprep.subr.bf16.mxu1 %v10965_v48  ;;  %14676 = vst [vmem:[#allocation75_spill] sm:$0xff] %v13506_v16 }
 0x65d   : > { %10200 = vmatpush3.bf16.msra.mxu1 %v10965_v48  ;;  %v14688_v48 = vld [vmem:[#allocation121_spill] sm:$0xff] }
 0x65e   : > { %10201 = vmatprep.subr.bf16.mxu1 %v10966_v46  ;;  %v13515_v30 = vpop.f32.mrb[68].mxu0 }
 0x65f   : > { %14681 = vst [vmem:[#allocation84_spill] sm:$0xff] %v13515_v30  ;;  %v13517_v54 = vpop.f32.mrb[69].mxu0  ;;  %v14708_v30 = vld [vmem:[#allocation26_spill] sm:$0xff] }
 0x660   : > { %10170 = vmatmul.mubr.msk.bf16.gmra.mrb[12].mxu1 %vm14678_vm7, %v14677_v18  ;;  %14682 = vst [vmem:[#allocation93_spill] sm:$0xff] %v13517_v54  ;;  %v13522_v27 = vpop.f32.mrb[70].mxu0  ;;  %vm14695_vm7 = vmmov %vm14636_vm5  ;;  %v14698_v18 = vld [vmem:[#allocation18_spill] sm:$0xff] }
 0x661   : > { %10173 = vmatprep.mubr.msk.bf16.mxu1 %vm14680_vm10, %v14679_v36  ;;  %10202 = vmatpush3.bf16.msra.mxu1 %v10966_v46  ;;  %14683 = vst [vmem:[#allocation102_spill] sm:$0xff] %v13522_v27  ;;  %v13524_v23 = vpop.f32.mrb[71].mxu0  ;;  %v14694_v46 = vld [vmem:[#allocation140_spill] sm:$0xff]  ;;  %vm14697_vm10 = vmmov %vm14636_vm5  ;;  %v14700_v36 = vld [vmem:[#allocation29_spill] sm:$0xff] }
 0x662   : > { %10203 = vmatprep.subr.bf16.mxu1 %v10967_v1  ;;  %14684 = vst [vmem:[#allocation111_spill] sm:$0xff] %v13524_v23  ;;  %v7364_v23 = vld [vmem:[#allocation4 + $0x3f] sm:$0xff]  ;;  %v7366_v54 = vld [vmem:[#allocation4 + $0x4f] sm:$0xff] }
 0x665   : > { %10204 = vmatpush3.bf16.msra.mxu1 %v10967_v1  ;;  %v14696_v1 = vld [vmem:[#allocation9_spill] sm:$0xff] }
 0x666   : > { %10237 = vmatprep.subr.bf16.mxu1 %v10968_v41 }
 0x668   : > { %10174 = vmatmul.mubr.msk.bf16.gmra.mrb[16].mxu1 %vm14636_vm5, %v14685_v51  ;;  %v7361_v51 = vld [vmem:[#allocation4 + $0x27] sm:$0xff] }
 0x669   : > { %10177 = vmatprep.mubr.msk.bf16.mxu1 %vm14687_vm6, %v14686_v21  ;;  %vm14699_vm6 = vmmov %vm14636_vm5  ;;  %v7070_v21 = vsel %vm14615_vm14, %v13215_v45, 0.0 }
 0x670   : > { %10178 = vmatmul.mubr.msk.bf16.gmra.mrb[20].mxu1 %vm14689_vm12, %v14688_v48  ;;  %vm14701_vm12 = vmmov %vm14636_vm5  ;;  %v7362_v48 = vld [vmem:[#allocation4 + $0x2f] sm:$0xff] }
 0x671   : > { %10181 = vmatprep.mubr.msk.bf16.mxu1 %vm14691_vm9, %v14690_v26  ;;  %v14702_v26 = vld [vmem:[#allocation7_spill] sm:$0xff] }
 0x672   : > { %vm14703_vm9 = vnez %v14702_v26  ;;  %v10970_v26 = vld [vmem:[%s13768_s5 + $0xf0] sm:$0xff]  }
 0x678   : > { %10182 = vmatmul.mubr.msk.bf16.gmra.mrb[24].mxu1 %vm14693_vm13, %v14692_v43  ;;  %v7393_v43 = vsel %vm14703_vm9, %v7361_v51, 0.0  ;;  %vm14704_vm13 = vmmov %vm14636_vm5 }
 0x679   : > { %10185 = vmatprep.mubr.msk.bf16.mxu1 %vm14695_vm7, %v14694_v46  ;;  %v7086_v46 = vpack.c.bf16 %v7070_v21, %v13221_v2  ;;  %vm14705_vm7 = vmmov %vm14636_vm5  ;;  %v10969_v2 = vld [vmem:[%s13768_s5 + $0xe8] sm:$0xff]  }
 0x67a   : > { %v7367_v21 = vld [vmem:[#allocation4 + $0x57] sm:$0xff] }
 0x680   : > { %10186 = vmatmul.mubr.msk.bf16.gmra.mrb[28].mxu1 %vm14697_vm10, %v14696_v1  ;;  %v7425_v1 = vpack.c.bf16 %v7362_v48, %v7393_v43  ;;  %v7369_v48 = vld [vmem:[#allocation4 + $0x67] sm:$0xff]  ;;  %v14713_v43 = vld [vmem:[#allocation46_spill] sm:$0xff] }
 0x681   : > { %10189 = vmatprep.mubr.msk.bf16.mxu1 %vm14636_vm5, %v13160_v49  ;;  %v7363_v49 = vld [vmem:[#allocation4 + $0x37] sm:$0xff]  ;;  %vm14709_vm5 = vnez %v14708_v30  ;;  %v14711_v30 = vld [vmem:[#allocation37_spill] sm:$0xff] }
 0x682   : > { %vm14712_vm9 = vnez %v14711_v30 }
 0x688   : > { %10190 = vmatmul.mubr.msk.bf16.gmra.mrb[32].mxu1 %vm14699_vm6, %v14698_v18  ;;  %v7365_v18 = vld [vmem:[#allocation4 + $0x47] sm:$0xff] }
 0x689   : > { %10193 = vmatprep.mubr.msk.bf16.mxu1 %vm14701_vm12, %v14700_v36  ;;  %v14706_v36 = vld [vmem:[#allocation16_spill] sm:$0xff]  ;;  %v7397_v45 = vsel %vm14709_vm5, %v7365_v18, 0.0  ;;  %vm14710_vm12 = vmmov %vm14699_vm6 }
 0x68a   : > { %vm14707_vm10 = vnez %v14706_v36  ;;  %v7427_v51 = vpack.c.bf16 %v7366_v54, %v7397_v45  ;;  %v7368_v54 = vld [vmem:[#allocation4 + $0x5f] sm:$0xff]  ;;  %v7373_v18 = vld [vmem:[#allocation4 + $0x87] sm:$0xff]  ;;  %v10972_v36 = vld [vmem:[%s13768_s5 + $0x100] sm:$0xff]  }
 0x68b   : > { %v7395_v27 = vsel %vm14707_vm10, %v7363_v49, 0.0  ;;  %v7371_v49 = vld [vmem:[#allocation4 + $0x77] sm:$0xff]  ;;  %vm14716_vm10 = vmmov %vm14699_vm6  ;;  %v7372_v45 = vld [vmem:[#allocation4 + $0x7f] sm:$0xff] }
 0x68c   : > { %v7426_v16 = vpack.c.bf16 %v7364_v23, %v7395_v27  ;;  %v7399_v27 = vsel %vm14712_vm9, %v7367_v21, 0.0  ;;  %v7370_v23 = vld [vmem:[#allocation4 + $0x6f] sm:$0xff] }
 0x68d   : > { %v7374_v21 = vld [vmem:[#allocation4 + $0x8f] sm:$0xff] }
 0x690   : > { %10194 = vmatmul.mubr.msk.bf16.gmra.mrb[36].mxu1 %vm14704_vm13, %v7086_v46  ;;  %vm14714_vm13 = vnez %v14713_v43  ;;  %v7377_v43 = vld [vmem:[#allocation4 + $0xa7] sm:$0xff] }
 0x691   : > { %10205 = vmatprep.mubr.msk.bf16.mxu1 %vm14705_vm7, %v7425_v1  ;;  %v7401_v46 = vsel %vm14714_vm13, %v7369_v48, 0.0  ;;  %vm14715_vm7 = vmmov %vm14699_vm6  ;;  %v14719_v48 = vld [vmem:[#allocation64_spill] sm:$0xff] }
 0x692   : > { %v7429_v1 = vpack.c.bf16 %v7370_v23, %v7401_v46  ;;  %vm14722_vm9 = vmmov %vm14715_vm7  ;;  %v7376_v46 = vld [vmem:[#allocation4 + $0x9f] sm:$0xff] }
 0x698   : > { %10206 = vmatmul.mubr.msk.bf16.vlgmr.msra.gmra.mrb[8].mxu1 %vm14699_vm6, %v7426_v16  ;;  %v7428_v16 = vpack.c.bf16 %v7368_v54, %v7399_v27  ;;  %vm14720_vm6 = vnez %v14719_v48  ;;  %v14723_v54 = vld [vmem:[#allocation72_spill] sm:$0xff] }
 0x699   : > { %10238 = vmatpush3.bf16.msra.mxu1 %v10968_v41  ;;  %10209 = vmatprep.mubr.msk.bf16.mxu1 %vm14710_vm12, %v7427_v51  ;;  %v10971_v41 = vld [vmem:[%s13768_s5 + $0xf8] sm:$0xff]   ;;  %v7405_v30 = vsel %vm14720_vm6, %v7373_v18, 0.0  ;;  %vm14721_vm12 = vmmov %vm14715_vm7  ;;  %vm14724_vm13 = vnez %v14723_v54 }
 0x69a   : > { %10239 = vmatprep.subr.bf16.mxu1 %v10969_v2  ;;  %v7431_v23 = vpack.c.bf16 %v7374_v21, %v7405_v30  ;;  %v14729_v21 = vld [vmem:[#allocation91_spill] sm:$0xff] }
 0x69b   : > { %vm14730_vm6 = vnez %v14729_v21  ;;  %v7720_v21 = vld [vmem:[#allocation4 + $0x50] sm:$0xff] }
 0x69d   : > { %10240 = vmatpush3.bf16.msra.mxu1 %v10969_v2  ;;  %v14717_v2 = vld [vmem:[#allocation55_spill] sm:$0xff] }
 0x69e   : > { %10241 = vmatprep.subr.bf16.mxu1 %v10970_v26  ;;  %vm14718_vm5 = vnez %v14717_v2 }
 0x69f   : > { %v7403_v51 = vsel %vm14718_vm5, %v7371_v49, 0.0  ;;  %v14725_v49 = vld [vmem:[#allocation82_spill] sm:$0xff]  ;;  %vm14728_vm5 = vmmov %vm14722_vm9 }
 0x6a0   : > { %10210 = vmatmul.mubr.msk.bf16.gmra.mrb[12].mxu1 %vm14715_vm7, %v7428_v16  ;;  %v7430_v27 = vpack.c.bf16 %v7372_v45, %v7403_v51  ;;  %vm14726_vm7 = vnez %v14725_v49  ;;  %v7381_v45 = vld [vmem:[#allocation4 + $0xc7] sm:$0xff]  ;;  %v7380_v51 = vld [vmem:[#allocation4 + $0xbf] sm:$0xff] }
 0x6a1   : > { %10213 = vmatprep.mubr.msk.bf16.mxu1 %vm14716_vm10, %v7429_v1  ;;  %10242 = vmatpush3.bf16.msra.mxu1 %v10970_v26  ;;  %v7375_v26 = vld [vmem:[#allocation4 + $0x97] sm:$0xff]  ;;  %v7378_v1 = vld [vmem:[#allocation4 + $0xaf] sm:$0xff]  ;;  %v7409_v2 = vsel %vm14726_vm7, %v7377_v43, 0.0  ;;  %vm14727_vm10 = vmmov %vm14722_vm9 }
 0x6a2   : > { %10243 = vmatprep.subr.bf16.mxu1 %v10971_v41  ;;  %v7407_v16 = vsel %vm14724_vm13, %v7375_v26, 0.0  ;;  %v7433_v18 = vpack.c.bf16 %v7378_v1, %v7409_v2  ;;  %vm14734_vm13 = vmmov %vm14728_vm5  ;;  %v14736_v43 = vld [vmem:[#allocation39_spill] sm:$0xff]  ;;  %v14739_v1 = vld [vmem:[#allocation57_spill] sm:$0xff] }
 0x6a3   : > { %v7432_v48 = vpack.c.bf16 %v7376_v46, %v7407_v16  ;;  %vm14735_vm7 = vmmov %vm14728_vm5  ;;  %v14738_v46 = vld [vmem:[#allocation48_spill] sm:$0xff]  ;;  %v7391_v16 = vld [vmem:[#allocation4 + $0x117] sm:$0xff] }
 0x6a4   : > { %v7392_v49 = vld [vmem:[#allocation4 + $0x11f] sm:$0xff]  ;;  %v7423_v2 = vsel %vm14584_vm3, %v7391_v16, 0.0  ;;  %vm14744_vm3 = vmmov %vm14728_vm5 }
 0x6a5   : > { %10244 = vmatpush3.bf16.msra.mxu1 %v10971_v41  ;;  %v7379_v41 = vld [vmem:[#allocation4 + $0xb7] sm:$0xff] }
 0x6a6   : > { %10277 = vmatprep.subr.bf16.mxu1 %v10972_v36  ;;  %v7411_v30 = vsel %vm14730_vm6, %v7379_v41, 0.0  ;;  %vm14740_vm6 = vmmov %vm14728_vm5 }
 0x6a7   : > { %v7434_v54 = vpack.c.bf16 %v7380_v51, %v7411_v30  ;;  %v7719_v51 = vld [vmem:[#allocation4 + $0x48] sm:$0xff] }
 0x6a8   : > { %10214 = vmatmul.mubr.msk.bf16.gmra.mrb[16].mxu1 %vm14721_vm12, %v7430_v27  ;;  %v7382_v27 = vld [vmem:[#allocation4 + $0xcf] sm:$0xff] }
 0x6a9   : > { %10217 = vmatprep.mubr.msk.bf16.mxu1 %vm14722_vm9, %v7431_v23  ;;  %v14731_v23 = vld [vmem:[#allocation100_spill] sm:$0xff]  ;;  %vm14733_vm9 = vmmov %vm14728_vm5 }
 0x6aa   : > { %vm14732_vm12 = vnez %v14731_v23  ;;  %v7749_v23 = vpack.c.bf16 %v7720_v21, %v7719_v51  ;;  %v7731_v51 = vld [vmem:[#allocation4 + $0xa8] sm:$0xff]  ;;  %v7732_v21 = vld [vmem:[#allocation4 + $0xb0] sm:$0xff] }
 0x6ab   : > { %v7413_v26 = vsel %vm14732_vm12, %v7381_v45, 0.0  ;;  %vm14741_vm12 = vmmov %vm14728_vm5  ;;  %v7718_v45 = vld [vmem:[#allocation4 + $0x40] sm:$0xff] }
 0x6ac   : > { %v7435_v24 = vpack.c.bf16 %v7382_v27, %v7413_v26  ;;  %v10973_v27 = vld [vmem:[%s13768_s5 + $0x108] sm:$0xff]  }
 0x6ad   : > { %v7721_v26 = vld [vmem:[#allocation4 + $0x58] sm:$0xff] }
 0x6b0   : > { %10218 = vmatmul.mubr.msk.bf16.gmra.mrb[20].mxu1 %vm14727_vm10, %v7432_v48  ;;  %vm14737_vm10 = vmmov %vm14728_vm5  ;;  %v7715_v48 = vld [vmem:[#allocation4 + $0x28] sm:$0xff] }
 0x6b1   : > { %10221 = vmatprep.mubr.msk.bf16.mxu1 %vm14728_vm5, %v7433_v18  ;;  %v7716_v18 = vld [vmem:[#allocation4 + $0x30] sm:$0xff] }
 0x6b2   : > { %v7747_v41 = vpack.c.bf16 %v7716_v18, %v7715_v48  ;;  %v7727_v48 = vld [vmem:[#allocation4 + $0x88] sm:$0xff]  ;;  %v7728_v18 = vld [vmem:[#allocation4 + $0x90] sm:$0xff] }
 0x6b8   : > { %10222 = vmatmul.mubr.msk.bf16.gmra.mrb[24].mxu1 %vm14733_vm9, %v7434_v54  ;;  %vm14742_vm9 = vmmov %vm14728_vm5  ;;  %v7722_v54 = vld [vmem:[#allocation4 + $0x60] sm:$0xff] }
 0x6b9   : > { %10225 = vmatprep.mubr.msk.bf16.mxu1 %vm14734_vm13, %v7435_v24  ;;  %v7440_v24 = vpack.c.bf16 %v7392_v49, %v7423_v2  ;;  %vm14743_vm13 = vmmov %vm14728_vm5  ;;  %v7750_v16 = vpack.c.bf16 %v7722_v54, %v7721_v26  ;;  %v7726_v2 = vld [vmem:[#allocation4 + $0x80] sm:$0xff]  ;;  %v7735_v26 = vld [vmem:[#allocation4 + $0xc8] sm:$0xff] }
 0x6ba   : > { %v7736_v54 = vld [vmem:[#allocation4 + $0xd0] sm:$0xff] }
 0x6c0   : > { %10226 = vmatmul.mubr.msk.bf16.gmra.mrb[28].mxu1 %vm14735_vm7, %v13194_v59  ;;  %v7717_v59 = vld [vmem:[#allocation4 + $0x38] sm:$0xff]  ;;  %vm14745_vm7 = vmmov %vm14744_vm3 }
 0x6c1   : > { %10229 = vmatprep.mubr.msk.bf16.mxu1 %vm14737_vm10, %v14736_v43  ;;  %v7748_v30 = vpack.c.bf16 %v7718_v45, %v7717_v59  ;;  %v7723_v43 = vld [vmem:[#allocation4 + $0x68] sm:$0xff]  ;;  %vm14746_vm10 = vmmov %vm14744_vm3  ;;  %v7729_v59 = vld [vmem:[#allocation4 + $0x98] sm:$0xff] }
 0x6c2   : > { %v7730_v45 = vld [vmem:[#allocation4 + $0xa0] sm:$0xff] }
 0x6c8   : > { %10230 = vmatmul.mubr.msk.bf16.gmra.mrb[32].mxu1 %vm14728_vm5, %v14738_v46  ;;  %v7724_v46 = vld [vmem:[#allocation4 + $0x70] sm:$0xff]  ;;  %vm14747_vm5 = vmmov %vm14744_vm3 }
 0x6c9   : > { %10233 = vmatprep.mubr.msk.bf16.mxu1 %vm14740_vm6, %v14739_v1  ;;  %v10975_v1 = vld [vmem:[%s13768_s5 + $0x118] sm:$0xff]   ;;  %v7751_v49 = vpack.c.bf16 %v7724_v46, %v7723_v43  ;;  %vm14748_vm6 = vmmov %vm14744_vm3  ;;  %v7757_v46 = vpack.c.bf16 %v7736_v54, %v7735_v26  ;;  %v8042_v26 = vld [vmem:[#allocation4 + $0x51] sm:$0xff] }
 0x6ca   : > { %v8039_v54 = vld [vmem:[#allocation4 + $0x39] sm:$0xff] }
 0x6d0   : > { %10234 = vmatmul.mubr.msk.bf16.gmra.mrb[36].mxu1 %vm14741_vm12, %v7440_v24  ;;  %vm14749_vm12 = vmmov %vm14744_vm3 }
 0x6d1   : > { %10245 = vmatprep.mubr.msk.bf16.mxu1 %vm14742_vm9, %v7747_v41  ;;  %v7753_v41 = vpack.c.bf16 %v7728_v18, %v7727_v48  ;;  %vm14750_vm9 = vmmov %vm14744_vm3  ;;  %v7741_v18 = vld [vmem:[#allocation4 + $0xf8] sm:$0xff] }
 0x6d8   : > { %10246 = vmatmul.mubr.msk.bf16.vlgmr.msra.gmra.mrb[8].mxu1 %vm14743_vm13, %v7748_v30  ;;  %v7754_v30 = vpack.c.bf16 %v7730_v45, %v7729_v59  ;;  %vm14751_vm13 = vmmov %vm14744_vm3  ;;  %v7745_v59 = vld [vmem:[#allocation4 + $0x118] sm:$0xff]  ;;  %v7746_v45 = vld [vmem:[#allocation4 + $0x120] sm:$0xff] }
 0x6d9   : > { %10278 = vmatpush3.bf16.msra.mxu1 %v10972_v36  ;;  %10249 = vmatprep.mubr.msk.bf16.mxu1 %vm14744_vm3, %v7749_v23  ;;  %v7725_v36 = vld [vmem:[#allocation4 + $0x78] sm:$0xff] }
 0x6da   : > { %10279 = vmatprep.subr.bf16.mxu1 %v10973_v27  ;;  %v7752_v24 = vpack.c.bf16 %v7726_v2, %v7725_v36  ;;  %v7733_v23 = vld [vmem:[#allocation4 + $0xb8] sm:$0xff]  ;;  %v7740_v36 = vld [vmem:[#allocation4 + $0xf0] sm:$0xff] }
 0x6dd   : > { %10280 = vmatpush3.bf16.msra.mxu1 %v10973_v27  ;;  %v7755_v27 = vpack.c.bf16 %v7732_v21, %v7731_v51  ;;  %v8038_v51 = vld [vmem:[#allocation4 + $0x31] sm:$0xff]  ;;  %v7762_v21 = vpack.c.bf16 %v7746_v45, %v7745_v59  ;;  %v8047_v59 = vld [vmem:[#allocation4 + $0x79] sm:$0xff]  ;;  %v8080_v45 = vsel %vm14541_vm0, %v8048_v57, 0.0 }
 0x6de   : > { %10281 = vmatprep.subr.bf16.mxu1 %v10974_v13  ;;  %v8063_v57 = vld [vmem:[#allocation4 + $0xf9] sm:$0xff] }
 0x6e0   : > { %10250 = vmatmul.mubr.msk.bf16.gmra.mrb[12].mxu1 %vm14745_vm7, %v7750_v16  ;;  %v7737_v16 = vld [vmem:[#allocation4 + $0xd8] sm:$0xff]  ;;  %vm14752_vm7 = vmmov %vm14744_vm3 }
 0x6e1   : > { %10253 = vmatprep.mubr.msk.bf16.mxu1 %vm14746_vm10, %v7751_v49  ;;  %10282 = vmatpush3.bf16.msra.mxu1 %v10974_v13  ;;  %v7734_v13 = vld [vmem:[#allocation4 + $0xc0] sm:$0xff]  ;;  %v7739_v49 = vld [vmem:[#allocation4 + $0xe8] sm:$0xff]  ;;  %vm14753_vm10 = vmmov %vm14744_vm3 }
 0x6e2   : > { %10283 = vmatprep.subr.bf16.mxu1 %v10975_v1  ;;  %v7756_v43 = vpack.c.bf16 %v7734_v13, %v7733_v23  ;;  %v7759_v48 = vpack.c.bf16 %v7740_v36, %v7739_v49  ;;  %v8040_v13 = vld [vmem:[#allocation4 + $0x41] sm:$0xff]  ;;  %v8046_v49 = vld [vmem:[#allocation4 + $0x71] sm:$0xff]  ;;  %v8043_v36 = vld [vmem:[#allocation4 + $0x59] sm:$0xff] }
 0x6e3   : > { %v8078_v5 = vsel %vm14536_vm15, %v8046_v49, 0.0  ;;  %v8060_v49 = vld [vmem:[#allocation4 + $0xe1] sm:$0xff] }
 0x6e5   : > { %10284 = vmatpush3.bf16.msra.mxu1 %v10975_v1  ;;  %v7738_v1 = vld [vmem:[#allocation4 + $0xe0] sm:$0xff] }
 0x6e6   : > { %v7758_v2 = vpack.c.bf16 %v7738_v1, %v7737_v16 }
 0x6e8   : > { %10254 = vmatmul.mubr.msk.bf16.gmra.mrb[16].mxu1 %vm14747_vm5, %v7752_v24  ;;  %v7742_v24 = vld [vmem:[#allocation4 + $0x100] sm:$0xff]  ;;  %vm14754_vm5 = vmmov %vm14744_vm3 }
 0x6e9   : > { %10257 = vmatprep.mubr.msk.bf16.mxu1 %vm14748_vm6, %v7753_v41  ;;  %v7760_v41 = vpack.c.bf16 %v7742_v24, %v7741_v18  ;;  %vm14755_vm6 = vmmov %vm14744_vm3  ;;  %v8045_v18 = vld [vmem:[#allocation4 + $0x69] sm:$0xff] }
 0x6ea   : > { %v8105_v24 = vpack.c.bf16 %v8078_v5, %v8045_v18  ;;  %v8061_v18 = vld [vmem:[#allocation4 + $0xe9] sm:$0xff] }
 0x6f0   : > { %10258 = vmatmul.mubr.msk.bf16.gmra.mrb[20].mxu1 %vm14749_vm12, %v7754_v30  ;;  %v8070_v30 = vsel %vm14515_vm1, %v8038_v51, 0.0  ;;  %vm14756_vm12 = vmmov %vm14744_vm3  ;;  %v8106_v51 = vpack.c.bf16 %v8080_v45, %v8047_v59  ;;  %v8068_v45 = vld [vmem:[#allocation4 + $0x121] sm:$0xff] }
 0x6f1   : > { %10261 = vmatprep.mubr.msk.bf16.mxu1 %vm14750_vm9, %v7755_v27  ;;  %v8037_v27 = vld [vmem:[#allocation4 + $0x29] sm:$0xff]  ;;  %vm14757_vm9 = vmmov %vm14744_vm3 }
 0x6f2   : > { %v8101_v23 = vpack.c.bf16 %v8070_v30, %v8037_v27  ;;  %vm14759_vm1 = vmmov %vm14744_vm3  ;;  %v8052_v30 = vld [vmem:[#allocation4 + $0xa1] sm:$0xff]  ;;  %v8054_v27 = vld [vmem:[#allocation4 + $0xb1] sm:$0xff] }
 0x6f3   : > { %vm14763_vm15 = vmmov %vm14759_vm1 }
 0x6f4   : > { %vm14767_vm0 = vmmov %vm14759_vm1 }
 0x6f8   : > { %10262 = vmatmul.mubr.msk.bf16.gmra.mrb[24].mxu1 %vm14751_vm13, %v7756_v43  ;;  %v8072_v43 = vsel %vm14518_vm8, %v8040_v13, 0.0  ;;  %vm14758_vm13 = vmmov %vm14744_vm3 }
 0x6f9   : > { %10265 = vmatprep.mubr.msk.bf16.mxu1 %vm14744_vm3, %v7757_v46  ;;  %v8074_v46 = vsel %vm14523_vm11, %v8042_v26, 0.0  ;;  %v8102_v16 = vpack.c.bf16 %v8072_v43, %v8039_v54  ;;  %vm14760_vm8 = vmmov %vm14759_vm1  ;;  %vm14764_vm3 = vnez %v14594_v19  ;;  %v8053_v54 = vld [vmem:[#allocation4 + $0xa9] sm:$0xff]  ;;  %v8056_v43 = vld [vmem:[#allocation4 + $0xc1] sm:$0xff] }
 0x6fa   : > { %vm14761_vm11 = vmmov %vm14759_vm1  ;;  %v8084_v13 = vsel %vm14764_vm3, %v8052_v30, 0.0 }
 0x6fb   : > { %vm14779_vm3 = vmmov %vm14767_vm0 }
 0x700   : > { %10266 = vmatmul.mubr.msk.bf16.gmra.mrb[28].mxu1 %vm14752_vm7, %v7758_v2  ;;  %v8076_v2 = vsel %vm14528_vm2, %v8044_v6, 0.0  ;;  %vm14762_vm2 = vmmov %vm14759_vm1  ;;  %vm14765_vm7 = vnez %v14550_v44 }
 0x701   : > { %10269 = vmatprep.mubr.msk.bf16.mxu1 %vm14753_vm10, %v7759_v48  ;;  %v8104_v48 = vpack.c.bf16 %v8076_v2, %v8043_v36  ;;  %v8086_v37 = vsel %vm14765_vm7, %v8054_v27, 0.0  ;;  %vm14768_vm10 = vnez %v14598_v0  ;;  %v8062_v36 = vld [vmem:[#allocation4 + $0xf1] sm:$0xff]  ;;  %v8059_v2 = vld [vmem:[#allocation4 + $0xd9] sm:$0xff] }
 0x702   : > { %v8109_v39 = vpack.c.bf16 %v8086_v37, %v8053_v54 }
 0x708   : > { %10270 = vmatmul.mubr.msk.bf16.gmra.mrb[32].mxu1 %vm14754_vm5, %v7760_v41  ;;  %v8050_v41 = vld [vmem:[#allocation4 + $0x91] sm:$0xff]  ;;  %vm14769_vm5 = vnez %v14556_v7  ;;  %v8064_v7 = vld [vmem:[#allocation4 + $0x101] sm:$0xff] }
 0x709   : > { %10273 = vmatprep.mubr.msk.bf16.mxu1 %vm14755_vm6, %v13476_v22  ;;  %v8041_v22 = vld [vmem:[#allocation4 + $0x49] sm:$0xff]  ;;  %v8082_v58 = vsel %vm14545_vm4, %v8050_v41, 0.0  ;;  %vm14766_vm4 = vmmov %vm14759_vm1 }
 0x70a   : > { %v8103_v1 = vpack.c.bf16 %v8074_v46, %v8041_v22  ;;  %v8058_v22 = vld [vmem:[#allocation4 + $0xd1] sm:$0xff]  ;;  %v8055_v46 = vld [vmem:[#allocation4 + $0xb9] sm:$0xff]  ;;  %vm14770_vm6 = vmmov %vm14767_vm0 }
 0x70b   : > { %v8090_v19 = vsel %vm14769_vm5, %v8058_v22, 0.0 }
 0x710   : > { %10274 = vmatmul.mubr.msk.bf16.gmra.mrb[36].mxu1 %vm14756_vm12, %v7762_v21  ;;  %v8049_v21 = vld [vmem:[#allocation4 + $0x89] sm:$0xff]  ;;  %vm14771_vm12 = vmmov %vm14767_vm0 }
 0x711   : > { %10285 = vmatprep.mubr.msk.bf16.mxu1 %vm14757_vm9, %v8101_v23  ;;  %v8107_v9 = vpack.c.bf16 %v8082_v58, %v8049_v21  ;;  %v8051_v23 = vld [vmem:[#allocation4 + $0x99] sm:$0xff]  ;;  %vm14772_vm9 = vnez %v14604_v25  ;;  %v8100_v25 = vsel %vm14615_vm14, %v8068_v45, 0.0 }
 0x712   : > { %v8108_v26 = vpack.c.bf16 %v8084_v13, %v8051_v23  ;;  %v8092_v5 = vsel %vm14772_vm9, %v8060_v49, 0.0 }
 0x718   : > { %10286 = vmatmul.mubr.msk.bf16.vlgmr.msra.gmra.mrb[8].mxu1 %vm14758_vm13, %v8102_v16  ;;  %v8088_v16 = vsel %vm14768_vm10, %v8056_v43, 0.0  ;;  %vm14773_vm13 = vnez %v14563_v20  ;;  %v8067_v20 = vld [vmem:[#allocation4 + $0x119] sm:$0xff] }
 0x719   : > { %10289 = vmatprep.mubr.msk.bf16.mxu1 %vm14759_vm1, %v8103_v1  ;;  %v8057_v1 = vld [vmem:[#allocation4 + $0xc9] sm:$0xff]  ;;  %v8110_v6 = vpack.c.bf16 %v8088_v16, %v8055_v46  ;;  %v8094_v0 = vsel %vm14773_vm13, %v8062_v36, 0.0  ;;  %vm14774_vm1 = vmmov %vm14767_vm0  ;;  %v8116_v58 = vpack.c.bf16 %v8100_v25, %v8067_v20 }
 0x71a   : > { %v8111_v44 = vpack.c.bf16 %v8090_v19, %v8057_v1 }
 0x720   : > { %10290 = vmatmul.mubr.msk.bf16.gmra.mrb[12].mxu1 %vm14760_vm8, %v8104_v48  ;;  %v8112_v48 = vpack.c.bf16 %v8092_v5, %v8059_v2  ;;  %vm14775_vm8 = vmmov %vm14767_vm0 }
 0x721   : > { %10293 = vmatprep.mubr.msk.bf16.mxu1 %vm14761_vm11, %v8105_v24  ;;  %v8113_v24 = vpack.c.bf16 %v8094_v0, %v8061_v18  ;;  %vm14776_vm11 = vnez %v14565_v42  ;;  %v13684_v42 = vld [vmem:[%s13769_s6] ss:$0 sm:$0xff] }
 0x722   : > { %v8096_v41 = vsel %vm14776_vm11, %v8064_v7, 0.0 }
 0x723   : > { %v8114_v59 = vpack.c.bf16 %v8096_v41, %v8063_v57 }
 0x728   : > { %10294 = vmatmul.mubr.msk.bf16.gmra.mrb[16].mxu1 %vm14762_vm2, %v8106_v51  ;;  %vm14777_vm2 = vmmov %vm14767_vm0 }
 0x729   : > { %10297 = vmatprep.mubr.msk.bf16.mxu1 %vm14763_vm15, %v8107_v9  ;;  %vm14778_vm15 = vmmov %vm14767_vm0 }
 0x730   : > { %10298 = vmatmul.mubr.msk.bf16.gmra.mrb[20].mxu1 %vm14766_vm4, %v8108_v26 }
 0x731   : > { %10301 = vmatprep.mubr.msk.bf16.mxu1 %vm14767_vm0, %v8109_v39 }
 0x738   : > { %10302 = vmatmul.mubr.msk.bf16.gmra.mrb[24].mxu1 %vm14770_vm6, %v8110_v6 }
 0x739   : > { %10305 = vmatprep.mubr.msk.bf16.mxu1 %vm14771_vm12, %v8111_v44 }
 0x740   : > { %10306 = vmatmul.mubr.msk.bf16.gmra.mrb[28].mxu1 %vm14774_vm1, %v8112_v48 }
 0x741   : > { %10309 = vmatprep.mubr.msk.bf16.mxu1 %vm14775_vm8, %v8113_v24 }
 0x748   : > { %10310 = vmatmul.mubr.msk.bf16.gmra.mrb[32].mxu1 %vm14777_vm2, %v8114_v59 }
 0x749   : > { %10313 = vmatprep.mubr.msk.bf16.mxu1 %vm14778_vm15, %v13235_v62 }
 0x750   : > { %10314 = vmatmul.mubr.msk.bf16.gmra.mrb[36].mxu1 %vm14779_vm3, %v8116_v58 }
 0x7eb   : > { %v10287_v51 = vpop.f32.mrb[8].mxu1 }
 0x7ec   : > { %v10325_v21 = vadd.f32 %v10287_v51, %v13420_v47  ;;  %v8232_v9 = vpop.f32.mrb[9].mxu1 }
 0x7ed   : > { %v10326_v30 = vadd.f32 %v8232_v9, %v13422_v28  ;;  %v10288_v27 = vpop.f32.mrb[10].mxu1 }
 0x7ee   : > { %v10327_v62 = vadd.f32 %v10288_v27, %v13424_v38  ;;  %v8235_v23 = vpop.f32.mrb[11].mxu1 }
 0x7ef   : > { %v10328_v61 = vadd.f32 %v8235_v23, %v13426_v4  ;;  %v8398_v13 = vadd.f32 %v10326_v30, %v13684_v42  ;;  %v8400_v4 = vadd.f32 %v10325_v21, %v13684_v42 }
 0x7f0   : > { %v8401_v16 = vadd.f32 %v10327_v62, %v13684_v42 }
 0x7f1   : > { %8430 = vxpose.xlu1.b32.start [1/16] (narrow) %v8398_v13, 8  ;;  %v8399_v47 = vadd.f32 %v10328_v61, %v13684_v42 }
 0x7f3   : > { %v10291_v37 = vpop.f32.mrb[12].mxu1 }
 0x7f4   : > { %v10329_v26 = vadd.f32 %v10291_v37, %v13432_v12  ;;  %v8248_v54 = vpop.f32.mrb[13].mxu1 }
 0x7f5   : > { %v10330_v39 = vadd.f32 %v8248_v54, %v13434_v50  ;;  %8431 = vxpose.xlu1.b32.cont [2/16] (narrow) %v8399_v47, 8  ;;  %v10292_v43 = vpop.f32.mrb[14].mxu1 }
 0x7f6   : > { %v10331_v28 = vadd.f32 %v10292_v43, %v13436_v52  ;;  %v8251_v22 = vpop.f32.mrb[15].mxu1  ;;  %v8404_v48 = vadd.f32 %v10329_v26, %v13684_v42 }
 0x7f7   : > { %v10332_v38 = vadd.f32 %v8251_v22, %v13438_v3  ;;  %v8402_v3 = vadd.f32 %v10330_v39, %v13684_v42 }
 0x7f8   : > { %v8405_v24 = vadd.f32 %v10331_v28, %v13684_v42 }
 0x7f9   : > { %8432 = vxpose.xlu1.b32.cont [3/16] (narrow) %v8400_v4, 8  ;;  %v8403_v36 = vadd.f32 %v10332_v38, %v13684_v42  ;;  %v14781_v38 = vld [vmem:[#allocation75_spill] sm:$0xff] }
 0x7fb   : > { %v10295_v46 = vpop.f32.mrb[16].mxu1 }
 0x7fc   : > { %v10333_v1 = vadd.f32 %v10295_v46, %v13444_v8  ;;  %v8264_v19 = vpop.f32.mrb[17].mxu1 }
 0x7fd   : > { %v10334_v12 = vadd.f32 %v8264_v19, %v13446_v60  ;;  %8433 = vxpose.xlu1.b32.cont [4/16] (narrow) %v8401_v16, 8  ;;  %v10296_v50 = vpop.f32.mrb[18].mxu1  ;;  %v14782_v19 = vld [vmem:[#allocation84_spill] sm:$0xff] }
 0x7fe   : > { %v10335_v6 = vadd.f32 %v10296_v50, %v13448_v17  ;;  %v8267_v44 = vpop.f32.mrb[19].mxu1  ;;  %v8408_v61 = vadd.f32 %v10333_v1, %v13684_v42 }
 0x7ff   : > { %v10336_v52 = vadd.f32 %v8267_v44, %v13450_v34  ;;  %v8406_v45 = vadd.f32 %v10334_v12, %v13684_v42 }
 0x801   : > { %8434 = vxpose.xlu1.b32.cont [5/16] (narrow) %v8402_v3, 8 }
 0x803   : > { %v10299_v49 = vpop.f32.mrb[20].mxu1 }
 0x804   : > { %v13704_v2 = vadd.f32 %v10299_v49, %v13456_v32  ;;  %v8280_v8 = vpop.f32.mrb[21].mxu1  ;;  %v14784_v49 = vld [vmem:[#allocation102_spill] sm:$0xff] }
 0x805   : > { %v10338_v5 = vadd.f32 %v8280_v8, %v13458_v11  ;;  %8435 = vxpose.xlu1.b32.cont [6/16] (narrow) %v8403_v36, 8  ;;  %v10300_v60 = vpop.f32.mrb[22].mxu1 }
 0x806   : > { %v13708_v0 = vadd.f32 %v10300_v60, %v13460_v31  ;;  %v8283_v17 = vpop.f32.mrb[23].mxu1  ;;  %v14785_v60 = vld [vmem:[#allocation111_spill] sm:$0xff] }
 0x807   : > { %v10340_v34 = vadd.f32 %v8283_v17, %v13462_v40  ;;  %v8410_v46 = vadd.f32 %v10338_v5, %v13684_v42 }
 0x809   : > { %8436 = vxpose.xlu1.b32.cont [7/16] (narrow) %v8404_v48, 8  ;;  %v8412_v48 = vadd.f32 %v13704_v2, %v13684_v42 }
 0x80b   : > { %v10303_v18 = vpop.f32.mrb[24].mxu1 }
 0x80c   : > { %v10341_v32 = vadd.f32 %v10303_v18, %v13468_v14  ;;  %v8296_v7 = vpop.f32.mrb[25].mxu1 }
 0x80d   : > { %v10342_v57 = vadd.f32 %v8296_v7, %v13470_v35  ;;  %8437 = vxpose.xlu1.b32.cont [8/16] (narrow) %v8405_v24, 8  ;;  %v10304_v11 = vpop.f32.mrb[26].mxu1  ;;  %v8407_v35 = vadd.f32 %v10336_v52, %v13684_v42  ;;  %v8413_v24 = vadd.f32 %v13708_v0, %v13684_v42 }
 0x80e   : > { %v8416_v41 = vadd.f32 %v10341_v32, %v13684_v42  ;;  %v10343_v31 = vadd.f32 %v10304_v11, %v13472_v55  ;;  %v8299_v59 = vpop.f32.mrb[27].mxu1 }
 0x80f   : > { %v10344_v40 = vadd.f32 %v8299_v59, %v13474_v15  ;;  %v8414_v20 = vadd.f32 %v10342_v57, %v13684_v42 }
 0x810   : > { %v8417_v25 = vadd.f32 %v10343_v31, %v13684_v42 }
 0x811   : > { %v8415_v14 = vadd.f32 %v10344_v40, %v13684_v42  ;;  %8438 = vxpose.xlu1.b32.cont [9/16] (narrow) %v8406_v45, 8 }
 0x813   : > { %v10307_v58 = vpop.f32.mrb[28].mxu1 }
 0x814   : > { %v10345_v51 = vadd.f32 %v10307_v58, %v13482_v29  ;;  %v8312_v21 = vpop.f32.mrb[29].mxu1 }
 0x815   : > { %v10346_v55 = vadd.f32 %v8312_v21, %v13484_v63  ;;  %8439 = vxpose.xlu1.b32.cont [10/16] (narrow) %v8407_v35, 8  ;;  %v10308_v9 = vpop.f32.mrb[30].mxu1  ;;  %v8409_v63 = vadd.f32 %v10335_v6, %v13684_v42  ;;  %v14783_v6 = vld [vmem:[#allocation93_spill] sm:$0xff] }
 0x816   : > { %v8420_v15 = vadd.f32 %v10345_v51, %v13684_v42  ;;  %v10347_v30 = vadd.f32 %v10308_v9, %v13486_v56  ;;  %v8315_v27 = vpop.f32.mrb[31].mxu1 }
 0x817   : > { %v8418_v62 = vadd.f32 %v10346_v55, %v13684_v42  ;;  %v10348_v23 = vadd.f32 %v8315_v27, %v13488_v33  ;;  %v14780_v33 = vld [vmem:[#allocation66_spill] sm:$0xff] }
 0x818   : > { %v8421_v13 = vadd.f32 %v10347_v30, %v13684_v42 }
 0x819   : > { %v8419_v29 = vadd.f32 %v10348_v23, %v13684_v42  ;;  %8440 = vxpose.xlu1.b32.cont [11/16] (narrow) %v8408_v61, 8 }
 0x81b   : > { %v10311_v37 = vpop.f32.mrb[32].mxu1 }
 0x81c   : > { %v10349_v47 = vadd.f32 %v10311_v37, %v13497_v53  ;;  %v8328_v26 = vpop.f32.mrb[33].mxu1 }
 0x81d   : > { %v10350_v56 = vadd.f32 %v8328_v26, %v13499_v10  ;;  %8441 = vxpose.xlu1.b32.cont [12/16] (narrow) %v8409_v63, 8  ;;  %v10312_v54 = vpop.f32.mrb[34].mxu1  ;;  %v8411_v10 = vadd.f32 %v10340_v34, %v13684_v42 }
 0x81e   : > { %v8424_v39 = vadd.f32 %v10349_v47, %v13684_v42  ;;  %v10351_v43 = vadd.f32 %v10312_v54, %v14780_v33  ;;  %v8331_v28 = vpop.f32.mrb[35].mxu1 }
 0x81f   : > { %v8422_v22 = vadd.f32 %v10350_v56, %v13684_v42  ;;  %v10352_v4 = vadd.f32 %v8331_v28, %v14781_v38 }
 0x820   : > { %v8425_v16 = vadd.f32 %v10351_v43, %v13684_v42 }
 0x821   : > { %v8423_v53 = vadd.f32 %v10352_v4, %v13684_v42  ;;  %8442 = vxpose.xlu1.b32.cont [13/16] (narrow) %v8410_v46, 8 }
 0x823   : > { %v10315_v1 = vpop.f32.mrb[36].mxu1 }
 0x824   : > { %v10353_v12 = vadd.f32 %v10315_v1, %v14782_v19  ;;  %v8344_v50 = vpop.f32.mrb[37].mxu1 }
 0x825   : > { %v10354_v44 = vadd.f32 %v8344_v50, %v14783_v6  ;;  %8443 = vxpose.xlu1.b32.cont [14/16] (narrow) %v8411_v10, 8  ;;  %v10316_v52 = vpop.f32.mrb[38].mxu1 }
 0x826   : > { %v8428_v3 = vadd.f32 %v10353_v12, %v13684_v42  ;;  %v10355_v36 = vadd.f32 %v10316_v52, %v14784_v49  ;;  %v8347_v8 = vpop.f32.mrb[39].mxu1 }
 0x827   : > { %v8426_v5 = vadd.f32 %v10354_v44, %v13684_v42  ;;  %v10356_v17 = vadd.f32 %v8347_v8, %v14785_v60 }
 0x828   : > { %v8429_v34 = vadd.f32 %v10355_v36, %v13684_v42 }
 0x829   : > { %v8427_v18 = vadd.f32 %v10356_v17, %v13684_v42  ;;  %8444 = vxpose.xlu1.b32.cont [15/16] (narrow) %v8412_v48, 8 }
 0x82d   : > { %8445 = vxpose.xlu1.b32.end [16/16] (narrow) %v8413_v24, 8 }
 0x831   : > { %8462 = vxpose.xlu1.b32.start [1/16] (narrow) %v8414_v20, 8 }
 0x835   : > { %8463 = vxpose.xlu1.b32.cont [2/16] (narrow) %v8415_v14, 8 }
 0x839   : > { %8464 = vxpose.xlu1.b32.cont [3/16] (narrow) %v8416_v41, 8 }
 0x83d   : > { %8465 = vxpose.xlu1.b32.cont [4/16] (narrow) %v8417_v25, 8 }
 0x841   : > { %8466 = vxpose.xlu1.b32.cont [5/16] (narrow) %v8418_v62, 8 }
 0x845   : > { %8467 = vxpose.xlu1.b32.cont [6/16] (narrow) %v8419_v29, 8 }
 0x849   : > { %8468 = vxpose.xlu1.b32.cont [7/16] (narrow) %v8420_v15, 8 }
 0x84d   : > { %8469 = vxpose.xlu1.b32.cont [8/16] (narrow) %v8421_v13, 8 }
 0x851   : > { %8470 = vxpose.xlu1.b32.cont [9/16] (narrow) %v8422_v22, 8 }
 0x855   : > { %8471 = vxpose.xlu1.b32.cont [10/16] (narrow) %v8423_v53, 8 }
 0x859   : > { %8472 = vxpose.xlu1.b32.cont [11/16] (narrow) %v8424_v39, 8 }
 0x85d   : > { %8473 = vxpose.xlu1.b32.cont [12/16] (narrow) %v8425_v16, 8 }
 0x861   : > { %8474 = vxpose.xlu1.b32.cont [13/16] (narrow) %v8426_v5, 8 }
 0x865   : > { %8475 = vxpose.xlu1.b32.cont [14/16] (narrow) %v8427_v18, 8 }
 0x869   : > { %8476 = vxpose.xlu1.b32.cont [15/16] (narrow) %v8428_v3, 8 }
 0x86d   : > { %8477 = vxpose.xlu1.b32.end [16/16] (narrow) %v8429_v34, 8 }
 0x871   : > { %v8446_v2 = vpop.trf.xlu1 }
 0x8b1   : > { %v8478_v42 = vpop.trf.xlu1 }
 0x8b2   : > { %v8496_v0 = vcombine.low %v8446_v2, %v8478_v42 }
 0x8b4   : > { %8498 = vst [vmem:[%s278_s17] sm:$0x77] %v8496_v0 }
 0x8b5 PF: > { %s17_s24 = sadd.s32 1, %s10982_s24  }
 0x8b6   : > { %p14_p4 = scmp.ge.s32.totalorder %s17_s24, 4  }
 0x8b8   :  { %16 = sbr.rel (!%p14_p4) target bundleno = 1 (0x1), region = 149 }

</bundles_post_ra>
